<compile_context>
chip_gen: v6e
topology: v6e:2x2x1
jax: 0.10.0
libtpu: 0.0.40
codegen_flags: <defaults>
</compile_context>

<pallas_src>
import functools

import jax
import jax.numpy as jnp
from jax import lax
from jax.experimental import pallas as pl
from jax.experimental.pallas import tpu as pltpu


def _pgd_kernel(y_ref, x_ref, *rest, epsilon, step_size, num_steps, rand_start):
    """Per-grid-block refs (batch tile TB rows, classes padded to NCp=128*k).

    y_ref     : (TB, 1)     int32    target labels
    x_ref     : (TB, D)     bfloat16 flattened natural inputs (values in [-1, 1])
    [noise_ref: (TB, D)     bfloat16 uniform(-eps, eps) noise — only if rand_start]
    w_ref     : (D, NCp)    bfloat16 classifier weight (padded cols are 0)
    wt_ref    : (NCp, D)    bfloat16 pre-transposed classifier weight
    b_ref     : (1, NCp)    float32  classifier bias (padded cols are -1e30)
    logits_pert_ref : (TB, NCp) float32  logits on the adversarial x
    probs_nat_ref   : (TB, NCp) float32  softmax of natural logits
    """
    if rand_start:
        noise_ref = rest[0]
        w_ref, wt_ref, b_ref, logits_pert_ref, probs_nat_ref = rest[1:]
    else:
        noise_ref = None
        w_ref, wt_ref, b_ref, logits_pert_ref, probs_nat_ref = rest

    x_nat_bf = x_ref[...]                              # [TB, D] bf16
    x_nat = x_nat_bf.astype(jnp.float32)               # f32 reference point
    w_bf = w_ref[...]                                  # [D, NCp] bf16
    wt_bf = wt_ref[...]                                # [NCp, D] bf16

    TB = x_nat.shape[0]
    NCp = w_bf.shape[1]

    # Hoist the bias broadcast out of the loop (JAX does not CSE broadcasts).
    bias_b = jnp.broadcast_to(b_ref[...], (TB, NCp))   # f32

    def net(x_bf16):
        # bf16 x bf16 -> f32 accumulate on the MXU (single-pass matmul).
        return jnp.dot(x_bf16, w_bf, preferred_element_type=jnp.float32) + bias_b

    # ---- natural prediction (targets_prob in the PyTorch module) ------------
    logits_nat = net(x_nat_bf)
    m = jnp.max(logits_nat, axis=-1, keepdims=True)
    e = jnp.exp(logits_nat - m)
    probs_nat_ref[...] = e / jnp.sum(e, axis=-1, keepdims=True)   # exact divide

    # ---- one-hot targets (padded classes are never hit: targets < NC) -------
    cls_ids = lax.broadcasted_iota(jnp.int32, (TB, NCp), 1)
    onehot = (cls_ids == y_ref[...]).astype(jnp.float32)          # [TB, NCp]

    # ---- random start (torch does NOT clamp the random start) ----------------
    if rand_start:
        x0 = x_nat + noise_ref[...].astype(jnp.float32)
    else:
        x0 = x_nat

    # ---- folded projection bounds: eps-ball intersect [-1, 1] ----------------
    lo = jnp.maximum(x_nat - epsilon, -1.0)
    hi = jnp.minimum(x_nat + epsilon, 1.0)

    # ---- PGD loop (fully unrolled; only sign(grad) is consumed) --------------
    def pgd_step(_, x):
        logits = net(x.astype(jnp.bfloat16))
        mm = jnp.max(logits, axis=-1, keepdims=True)
        ee = jnp.exp(logits - mm)
        # approx reciprocal -> EUP slot; only sign(grad) is consumed.
        p = ee * pl.reciprocal(jnp.sum(ee, axis=-1, keepdims=True), approx=True)
        g_logits = (p - onehot).astype(jnp.bfloat16)              # [TB, NCp]
        # g_x = g_logits @ W^T via the pre-transposed weight (no in-loop xpose).
        g_x = jnp.dot(g_logits, wt_bf, preferred_element_type=jnp.float32)
        # where-select instead of step*sign; differs from torch.sign only at
        # exactly-zero gradient components (torch takes a 0 step there).
        xa = x + jnp.where(g_x >= 0.0, step_size, -step_size)
        return jnp.minimum(jnp.maximum(xa, lo), hi)

    x_adv = lax.fori_loop(0, num_steps, pgd_step, x0, unroll=True)

    # ---- final logits on the perturbed input ----------------------------------
    logits_pert_ref[...] = net(x_adv.astype(jnp.bfloat16))


def _pick_batch_tile(b_pad8: int) -> int:
    """Pick the batch tile (multiple of 8).

    Small/medium batches: split into >= 2 tiles so both v7x TensorCores get a
    tile of the 'parallel' grid axis.  Large batches: pick from {64, 128} to
    minimize padded rows (padded rows run the full attack for nothing).
    """
    if b_pad8 <= 16:
        return b_pad8
    if b_pad8 <= 256:
        half = (b_pad8 + 1) // 2
        return ((half + 7) // 8) * 8
    pad128 = (-b_pad8) % 128
    pad64 = (-b_pad8) % 64
    return 64 if pad64 < pad128 else 128


def attack_pgd_forward(inputs_nchw, targets, params, config, seed=0):
    """Pallas implementation of Attack_PGD.forward(inputs, targets, attack=True).

    inputs_nchw: float32 [B, C, H, W] (values in [-1, 1], like the PyTorch code)
    targets    : int32   [B]
    params     : dict with 'W' [D, NC] and 'b' [NC]
    Returns (logits_pert [B, NC], targets_prob [B, NC]).
    """
    B, C, H, W_ = inputs_nchw.shape
    D = int(C * H * W_)
    NC = int(params['W'].shape[1])

    eps = float(config['epsilon'])
    step_size = float(config['step_size'])
    num_steps = int(config['num_steps'])
    rand_start = bool(config['random_start'])

    # Pad classes to a lane multiple (128): lane-dense stores + full MXU tiles.
    NC_pad = ((NC + 127) // 128) * 128
    # Pad batch to a sublane multiple and pick the batch tile for the 1-D grid.
    B_pad8 = ((B + 7) // 8) * 8
    TB = _pick_batch_tile(B_pad8)
    B_pad = ((B_pad8 + TB - 1) // TB) * TB
    grid = (B_pad // TB,)

    # Inputs in bf16 (halves HBM traffic); PGD state stays f32 inside the kernel.
    x_flat = inputs_nchw.reshape(B, D).astype(jnp.bfloat16)
    x_flat = jnp.pad(x_flat, ((0, B_pad - B), (0, 0)))
    y2d = jnp.pad(targets.astype(jnp.int32), (0, B_pad - B)).reshape(B_pad, 1)

    # Pre-cast / pre-transpose the weights host-side (one-time cost).
    w_f32 = jnp.pad(params['W'].astype(jnp.float32), ((0, 0), (0, NC_pad - NC)))
    w_bf = w_f32.astype(jnp.bfloat16)          # [D, NC_pad]
    wt_bf = jnp.transpose(w_bf)                # [NC_pad, D]
    # Padded bias columns get -1e30 so padded classes never contribute to softmax.
    b2d = jnp.pad(params['b'].astype(jnp.float32), (0, NC_pad - NC),
                  constant_values=-1e30).reshape(1, NC_pad)

    kernel = functools.partial(
        _pgd_kernel,
        epsilon=eps,
        step_size=step_size,
        num_steps=num_steps,
        rand_start=rand_start,
    )

    in_specs = [
        pl.BlockSpec((TB, 1), lambda i: (i, 0)),        # targets
        pl.BlockSpec((TB, D), lambda i: (i, 0)),        # x_flat (bf16)
    ]
    args = [y2d, x_flat]

    if rand_start:
        # Random-start noise generated host-side (pltpu PRNG is TPU-only /
        # does not match the torch.rand stream anyway) at the padded batch
        # shape so no in-kernel row slicing is needed.  bf16: eps ~ 0.06.
        noise = jax.random.uniform(jax.random.PRNGKey(seed), (B_pad, D),
                                   jnp.float32, -eps, eps).astype(jnp.bfloat16)
        in_specs.append(pl.BlockSpec((TB, D), lambda i: (i, 0)))
        args.append(noise)
    # else: no noise operand at all -> no zero-array DMA or VMEM buffers.

    in_specs += [
        pl.BlockSpec((D, NC_pad), lambda i: (0, 0)),    # W  (bf16, resident)
        pl.BlockSpec((NC_pad, D), lambda i: (0, 0)),    # W^T (bf16, resident)
        pl.BlockSpec((1, NC_pad), lambda i: (0, 0)),    # b  (f32, resident)
    ]
    args += [w_bf, wt_bf, b2d]

    logits_pert, probs_nat = pl.pallas_call(
        kernel,
        grid=grid,
        out_shape=(
            jax.ShapeDtypeStruct((B_pad, NC_pad), jnp.float32),   # logits_pert
            jax.ShapeDtypeStruct((B_pad, NC_pad), jnp.float32),   # targets_prob
        ),
        in_specs=in_specs,
        out_specs=(
            pl.BlockSpec((TB, NC_pad), lambda i: (i, 0)),
            pl.BlockSpec((TB, NC_pad), lambda i: (i, 0)),
        ),
        compiler_params=pltpu.CompilerParams(
            dimension_semantics=("parallel",),
            vmem_limit_bytes=32 * 1024 * 1024),
    )(*args)

    # Slice off batch/class padding outside the kernel.
    return logits_pert[:B, :NC], probs_nat[:B, :NC]


if __name__ == "__main__":
    # Small CIFAR-100-like problem: 2 images, 3x16x16, 100 classes.
    B, C, H, W = 2, 3, 16, 16
    D = C * H * W
    NUM_CLASSES = 100

    key = jax.random.PRNGKey(0)
    k_x, k_w, k_b, k_y = jax.random.split(key, 4)

    inputs = jax.random.uniform(k_x, (B, C, H, W), jnp.float32, -1.0, 1.0)
    targets = jax.random.randint(k_y, (B,), 0, NUM_CLASSES, jnp.int32)

    # Deterministic synthetic "basic_net": linear classifier on flattened input.
    params = {
        'W': jax.random.normal(k_w, (D, NUM_CLASSES), jnp.float32) * (1.0 / jnp.sqrt(D)),
        'b': jax.random.normal(k_b, (NUM_CLASSES,), jnp.float32) * 0.01,
    }

    config = {
        'random_start': True,
        'epsilon': 0.062,      # ~8/255 in the [-1, 1] input range
        'step_size': 0.0157,   # ~2/255 in the [-1, 1] input range
        'num_steps': 10,
        'train': True,
        'box_type': 'white',
    }
    # TODO(synk): train/eval mode toggling of basic_net (batch-norm/dropout modes)
    # has no Pallas equivalent for this synthetic stateless linear classifier.

    logits_pert, targets_prob = attack_pgd_forward(inputs, targets, params, config, seed=0)
    jax.block_until_ready((logits_pert, targets_prob))

    assert logits_pert.shape == (B, NUM_CLASSES)
    assert targets_prob.shape == (B, NUM_CLASSES)
    assert bool(jnp.all(jnp.isfinite(logits_pert)))
    assert bool(jnp.allclose(jnp.sum(targets_prob, axis=-1), 1.0, atol=1e-4))
    print("KERNEL_OK")
</pallas_src>

<mosaic_0001>
module attributes {stable_mosaic.version = 11 : i64} {
  func.func @_pgd_kernel(%arg0: i32, %arg1: memref<8x1xi32, #tpu.memory_space<vmem>>, %arg2: memref<8x768xbf16, #tpu.memory_space<vmem>>, %arg3: memref<8x768xbf16, #tpu.memory_space<vmem>>, %arg4: memref<768x128xbf16, #tpu.memory_space<vmem>>, %arg5: memref<128x768xbf16, #tpu.memory_space<vmem>>, %arg6: memref<1x128xf32, #tpu.memory_space<vmem>>, %arg7: memref<8x128xf32, #tpu.memory_space<vmem>>, %arg8: memref<8x128xf32, #tpu.memory_space<vmem>>) attributes {dimension_semantics = [#tpu.dimension_semantics<parallel>], iteration_bounds = array<i64: 1>, scalar_prefetch = 0 : i64, scratch_operands = 0 : i64, tpu.core_type = #tpu.core_type<tc>, window_params = [{transform_indices = @transform_0, window_bounds = array<i64: 8, 1>}, {transform_indices = @transform_1, window_bounds = array<i64: 8, 768>}, {transform_indices = @transform_2, window_bounds = array<i64: 8, 768>}, {pipeline_mode = #tpu.pipeline_mode<synchronous>, transform_indices = @transform_3, window_bounds = array<i64: 768, 128>}, {pipeline_mode = #tpu.pipeline_mode<synchronous>, transform_indices = @transform_4, window_bounds = array<i64: 128, 768>}, {pipeline_mode = #tpu.pipeline_mode<synchronous>, transform_indices = @transform_5, window_bounds = array<i64: 1, 128>}, {transform_indices = @transform_6, window_bounds = array<i64: 8, 128>}, {transform_indices = @transform_7, window_bounds = array<i64: 8, 128>}]} {
    %c0 = arith.constant 0 : index
    %c0_0 = arith.constant 0 : index
    %0 = vector.load %arg2[%c0, %c0_0] : memref<8x768xbf16, #tpu.memory_space<vmem>>, vector<8x768xbf16>
    %1 = arith.extf %0 : vector<8x768xbf16> to vector<8x768xf32>
    %c0_1 = arith.constant 0 : index
    %c0_2 = arith.constant 0 : index
    %2 = vector.load %arg4[%c0_1, %c0_2] : memref<768x128xbf16, #tpu.memory_space<vmem>>, vector<768x128xbf16>
    %c0_3 = arith.constant 0 : index
    %c0_4 = arith.constant 0 : index
    %3 = vector.load %arg5[%c0_3, %c0_4] : memref<128x768xbf16, #tpu.memory_space<vmem>>, vector<128x768xbf16>
    %c0_5 = arith.constant 0 : index
    %c0_6 = arith.constant 0 : index
    %4 = vector.load %arg6[%c0_5, %c0_6] : memref<1x128xf32, #tpu.memory_space<vmem>>, vector<1x128xf32>
    %5 = vector.shape_cast %4 : vector<1x128xf32> to vector<1x128xf32>
    %6 = vector.broadcast %5 : vector<1x128xf32> to vector<8x128xf32>
    %cst = arith.constant dense<0.000000e+00> : vector<8x128xf32>
    %7 = tpu.matmul %0, %2, %cst {dimension_numbers = #tpu.dot_dimension_numbers<[1], [0], [0], [1], [0, 0, 1, 1], [], []>} : vector<8x768xbf16>, vector<768x128xbf16>, vector<8x128xf32> -> vector<8x128xf32>
    %8 = arith.addf %7, %6 : vector<8x128xf32>
    %cst_7 = arith.constant dense<0xFF800000> : vector<8xf32>
    %9 = vector.multi_reduction <maximumf>, %8, %cst_7 [1] : vector<8x128xf32> to vector<8xf32>
    %10 = vector.shape_cast %9 : vector<8xf32> to vector<8x1xf32>
    %11 = vector.broadcast %10 : vector<8x1xf32> to vector<8x128xf32>
    %12 = arith.subf %8, %11 : vector<8x128xf32>
    %13 = math.exp %12 : vector<8x128xf32>
    %cst_8 = arith.constant dense<0.000000e+00> : vector<8xf32>
    %14 = vector.multi_reduction <add>, %13, %cst_8 [1] : vector<8x128xf32> to vector<8xf32>
    %15 = vector.shape_cast %14 : vector<8xf32> to vector<8x1xf32>
    %16 = vector.broadcast %15 : vector<8x1xf32> to vector<8x128xf32>
    %17 = arith.divf %13, %16 : vector<8x128xf32>
    %c0_9 = arith.constant 0 : index
    %c0_10 = arith.constant 0 : index
    %18 = vector.load %arg8[%c0_9, %c0_10] : memref<8x128xf32, #tpu.memory_space<vmem>>, vector<8x128xf32>
    tpu.vector_store %arg8[%c0_9, %c0_10], %17 {strides = array<i32>} : memref<8x128xf32, #tpu.memory_space<vmem>>, vector<8x128xf32>,
    %19 = tpu.iota {dimensions = array<i32: 1>} : vector<8x128xi32>
    %c0_11 = arith.constant 0 : index
    %c0_12 = arith.constant 0 : index
    %20 = vector.load %arg1[%c0_11, %c0_12] : memref<8x1xi32, #tpu.memory_space<vmem>>, vector<8x1xi32>
    %21 = vector.broadcast %20 : vector<8x1xi32> to vector<8x128xi32>
    %22 = arith.cmpi eq, %19, %21 : vector<8x128xi32>
    %23 = arith.extui %22 : vector<8x128xi1> to vector<8x128xi32>
    %24 = arith.sitofp %23 : vector<8x128xi32> to vector<8x128xf32>
    %c0_13 = arith.constant 0 : index
    %c0_14 = arith.constant 0 : index
    %25 = vector.load %arg3[%c0_13, %c0_14] : memref<8x768xbf16, #tpu.memory_space<vmem>>, vector<8x768xbf16>
    %26 = arith.extf %25 : vector<8x768xbf16> to vector<8x768xf32>
    %27 = arith.addf %1, %26 : vector<8x768xf32>
    %cst_15 = arith.constant 6.200000e-02 : f32
    %28 = vector.broadcast %cst_15 : f32 to vector<8x768xf32>
    %29 = arith.subf %1, %28 : vector<8x768xf32>
    %cst_16 = arith.constant -1.000000e+00 : f32
    %30 = vector.broadcast %cst_16 : f32 to vector<8x768xf32>
    %31 = arith.maximumf %29, %30 : vector<8x768xf32>
    %cst_17 = arith.constant 6.200000e-02 : f32
    %32 = vector.broadcast %cst_17 : f32 to vector<8x768xf32>
    %33 = arith.addf %1, %32 : vector<8x768xf32>
    %cst_18 = arith.constant 1.000000e+00 : f32
    %34 = vector.broadcast %cst_18 : f32 to vector<8x768xf32>
    %35 = arith.minimumf %33, %34 : vector<8x768xf32>
    %c0_i32 = arith.constant 0 : i32
    %36 = arith.truncf %27 : vector<8x768xf32> to vector<8x768xbf16>
    %cst_19 = arith.constant dense<0.000000e+00> : vector<8x128xf32>
    %37 = tpu.matmul %36, %2, %cst_19 {dimension_numbers = #tpu.dot_dimension_numbers<[1], [0], [0], [1], [0, 0, 1, 1], [], []>} : vector<8x768xbf16>, vector<768x128xbf16>, vector<8x128xf32> -> vector<8x128xf32>
    %38 = arith.addf %37, %6 : vector<8x128xf32>
    %cst_20 = arith.constant dense<0xFF800000> : vector<8xf32>
    %39 = vector.multi_reduction <maximumf>, %38, %cst_20 [1] : vector<8x128xf32> to vector<8xf32>
    %40 = vector.shape_cast %39 : vector<8xf32> to vector<8x1xf32>
    %41 = vector.broadcast %40 : vector<8x1xf32> to vector<8x128xf32>
    %42 = arith.subf %38, %41 : vector<8x128xf32>
    %43 = math.exp %42 : vector<8x128xf32>
    %cst_21 = arith.constant dense<0.000000e+00> : vector<8xf32>
    %44 = vector.multi_reduction <add>, %43, %cst_21 [1] : vector<8x128xf32> to vector<8xf32>
    %45 = vector.shape_cast %44 : vector<8xf32> to vector<8x1xf32>
    %46 = tpu.reciprocal %45 {approx = true} : vector<8x1xf32> -> vector<8x1xf32>
    %47 = vector.broadcast %46 : vector<8x1xf32> to vector<8x128xf32>
    %48 = arith.mulf %43, %47 : vector<8x128xf32>
    %49 = arith.subf %48, %24 : vector<8x128xf32>
    %50 = arith.truncf %49 : vector<8x128xf32> to vector<8x128xbf16>
    %cst_22 = arith.constant dense<0.000000e+00> : vector<8x768xf32>
    %51 = tpu.matmul %50, %3, %cst_22 {dimension_numbers = #tpu.dot_dimension_numbers<[1], [0], [0], [1], [0, 0, 1, 1], [], []>} : vector<8x128xbf16>, vector<128x768xbf16>, vector<8x768xf32> -> vector<8x768xf32>
    %cst_23 = arith.constant 0.000000e+00 : f32
    %52 = vector.broadcast %cst_23 : f32 to vector<8x768xf32>
    %53 = arith.cmpf oge, %51, %52 : vector<8x768xf32>
    %cst_24 = arith.constant 1.570000e-02 : f32
    %cst_25 = arith.constant -1.570000e-02 : f32
    %54 = vector.broadcast %cst_24 : f32 to vector<8x768xf32>
    %55 = vector.broadcast %cst_25 : f32 to vector<8x768xf32>
    %56 = arith.select %53, %54, %55 : vector<8x768xi1>, vector<8x768xf32>
    %57 = arith.addf %27, %56 : vector<8x768xf32>
    %58 = arith.maximumf %57, %31 : vector<8x768xf32>
    %59 = arith.minimumf %58, %35 : vector<8x768xf32>
    %c1_i32 = arith.constant 1 : i32
    %60 = arith.truncf %59 : vector<8x768xf32> to vector<8x768xbf16>
    %cst_26 = arith.constant dense<0.000000e+00> : vector<8x128xf32>
    %61 = tpu.matmul %60, %2, %cst_26 {dimension_numbers = #tpu.dot_dimension_numbers<[1], [0], [0], [1], [0, 0, 1, 1], [], []>} : vector<8x768xbf16>, vector<768x128xbf16>, vector<8x128xf32> -> vector<8x128xf32>
    %62 = arith.addf %61, %6 : vector<8x128xf32>
    %cst_27 = arith.constant dense<0xFF800000> : vector<8xf32>
    %63 = vector.multi_reduction <maximumf>, %62, %cst_27 [1] : vector<8x128xf32> to vector<8xf32>
    %64 = vector.shape_cast %63 : vector<8xf32> to vector<8x1xf32>
    %65 = vector.broadcast %64 : vector<8x1xf32> to vector<8x128xf32>
    %66 = arith.subf %62, %65 : vector<8x128xf32>
    %67 = math.exp %66 : vector<8x128xf32>
    %cst_28 = arith.constant dense<0.000000e+00> : vector<8xf32>
    %68 = vector.multi_reduction <add>, %67, %cst_28 [1] : vector<8x128xf32> to vector<8xf32>
    %69 = vector.shape_cast %68 : vector<8xf32> to vector<8x1xf32>
    %70 = tpu.reciprocal %69 {approx = true} : vector<8x1xf32> -> vector<8x1xf32>
    %71 = vector.broadcast %70 : vector<8x1xf32> to vector<8x128xf32>
    %72 = arith.mulf %67, %71 : vector<8x128xf32>
    %73 = arith.subf %72, %24 : vector<8x128xf32>
    %74 = arith.truncf %73 : vector<8x128xf32> to vector<8x128xbf16>
    %cst_29 = arith.constant dense<0.000000e+00> : vector<8x768xf32>
    %75 = tpu.matmul %74, %3, %cst_29 {dimension_numbers = #tpu.dot_dimension_numbers<[1], [0], [0], [1], [0, 0, 1, 1], [], []>} : vector<8x128xbf16>, vector<128x768xbf16>, vector<8x768xf32> -> vector<8x768xf32>
    %cst_30 = arith.constant 0.000000e+00 : f32
    %76 = vector.broadcast %cst_30 : f32 to vector<8x768xf32>
    %77 = arith.cmpf oge, %75, %76 : vector<8x768xf32>
    %cst_31 = arith.constant 1.570000e-02 : f32
    %cst_32 = arith.constant -1.570000e-02 : f32
    %78 = vector.broadcast %cst_31 : f32 to vector<8x768xf32>
    %79 = vector.broadcast %cst_32 : f32 to vector<8x768xf32>
    %80 = arith.select %77, %78, %79 : vector<8x768xi1>, vector<8x768xf32>
    %81 = arith.addf %59, %80 : vector<8x768xf32>
    %82 = arith.maximumf %81, %31 : vector<8x768xf32>
    %83 = arith.minimumf %82, %35 : vector<8x768xf32>
    %c2_i32 = arith.constant 2 : i32
    %84 = arith.truncf %83 : vector<8x768xf32> to vector<8x768xbf16>
    %cst_33 = arith.constant dense<0.000000e+00> : vector<8x128xf32>
    %85 = tpu.matmul %84, %2, %cst_33 {dimension_numbers = #tpu.dot_dimension_numbers<[1], [0], [0], [1], [0, 0, 1, 1], [], []>} : vector<8x768xbf16>, vector<768x128xbf16>, vector<8x128xf32> -> vector<8x128xf32>
    %86 = arith.addf %85, %6 : vector<8x128xf32>
    %cst_34 = arith.constant dense<0xFF800000> : vector<8xf32>
    %87 = vector.multi_reduction <maximumf>, %86, %cst_34 [1] : vector<8x128xf32> to vector<8xf32>
    %88 = vector.shape_cast %87 : vector<8xf32> to vector<8x1xf32>
    %89 = vector.broadcast %88 : vector<8x1xf32> to vector<8x128xf32>
    %90 = arith.subf %86, %89 : vector<8x128xf32>
    %91 = math.exp %90 : vector<8x128xf32>
    %cst_35 = arith.constant dense<0.000000e+00> : vector<8xf32>
    %92 = vector.multi_reduction <add>, %91, %cst_35 [1] : vector<8x128xf32> to vector<8xf32>
    %93 = vector.shape_cast %92 : vector<8xf32> to vector<8x1xf32>
    %94 = tpu.reciprocal %93 {approx = true} : vector<8x1xf32> -> vector<8x1xf32>
    %95 = vector.broadcast %94 : vector<8x1xf32> to vector<8x128xf32>
    %96 = arith.mulf %91, %95 : vector<8x128xf32>
    %97 = arith.subf %96, %24 : vector<8x128xf32>
    %98 = arith.truncf %97 : vector<8x128xf32> to vector<8x128xbf16>
    %cst_36 = arith.constant dense<0.000000e+00> : vector<8x768xf32>
    %99 = tpu.matmul %98, %3, %cst_36 {dimension_numbers = #tpu.dot_dimension_numbers<[1], [0], [0], [1], [0, 0, 1, 1], [], []>} : vector<8x128xbf16>, vector<128x768xbf16>, vector<8x768xf32> -> vector<8x768xf32>
    %cst_37 = arith.constant 0.000000e+00 : f32
    %100 = vector.broadcast %cst_37 : f32 to vector<8x768xf32>
    %101 = arith.cmpf oge, %99, %100 : vector<8x768xf32>
    %cst_38 = arith.constant 1.570000e-02 : f32
    %cst_39 = arith.constant -1.570000e-02 : f32
    %102 = vector.broadcast %cst_38 : f32 to vector<8x768xf32>
    %103 = vector.broadcast %cst_39 : f32 to vector<8x768xf32>
    %104 = arith.select %101, %102, %103 : vector<8x768xi1>, vector<8x768xf32>
    %105 = arith.addf %83, %104 : vector<8x768xf32>
    %106 = arith.maximumf %105, %31 : vector<8x768xf32>
    %107 = arith.minimumf %106, %35 : vector<8x768xf32>
    %c3_i32 = arith.constant 3 : i32
    %108 = arith.truncf %107 : vector<8x768xf32> to vector<8x768xbf16>
    %cst_40 = arith.constant dense<0.000000e+00> : vector<8x128xf32>
    %109 = tpu.matmul %108, %2, %cst_40 {dimension_numbers = #tpu.dot_dimension_numbers<[1], [0], [0], [1], [0, 0, 1, 1], [], []>} : vector<8x768xbf16>, vector<768x128xbf16>, vector<8x128xf32> -> vector<8x128xf32>
    %110 = arith.addf %109, %6 : vector<8x128xf32>
    %cst_41 = arith.constant dense<0xFF800000> : vector<8xf32>
    %111 = vector.multi_reduction <maximumf>, %110, %cst_41 [1] : vector<8x128xf32> to vector<8xf32>
    %112 = vector.shape_cast %111 : vector<8xf32> to vector<8x1xf32>
    %113 = vector.broadcast %112 : vector<8x1xf32> to vector<8x128xf32>
    %114 = arith.subf %110, %113 : vector<8x128xf32>
    %115 = math.exp %114 : vector<8x128xf32>
    %cst_42 = arith.constant dense<0.000000e+00> : vector<8xf32>
    %116 = vector.multi_reduction <add>, %115, %cst_42 [1] : vector<8x128xf32> to vector<8xf32>
    %117 = vector.shape_cast %116 : vector<8xf32> to vector<8x1xf32>
    %118 = tpu.reciprocal %117 {approx = true} : vector<8x1xf32> -> vector<8x1xf32>
    %119 = vector.broadcast %118 : vector<8x1xf32> to vector<8x128xf32>
    %120 = arith.mulf %115, %119 : vector<8x128xf32>
    %121 = arith.subf %120, %24 : vector<8x128xf32>
    %122 = arith.truncf %121 : vector<8x128xf32> to vector<8x128xbf16>
    %cst_43 = arith.constant dense<0.000000e+00> : vector<8x768xf32>
    %123 = tpu.matmul %122, %3, %cst_43 {dimension_numbers = #tpu.dot_dimension_numbers<[1], [0], [0], [1], [0, 0, 1, 1], [], []>} : vector<8x128xbf16>, vector<128x768xbf16>, vector<8x768xf32> -> vector<8x768xf32>
    %cst_44 = arith.constant 0.000000e+00 : f32
    %124 = vector.broadcast %cst_44 : f32 to vector<8x768xf32>
    %125 = arith.cmpf oge, %123, %124 : vector<8x768xf32>
    %cst_45 = arith.constant 1.570000e-02 : f32
    %cst_46 = arith.constant -1.570000e-02 : f32
    %126 = vector.broadcast %cst_45 : f32 to vector<8x768xf32>
    %127 = vector.broadcast %cst_46 : f32 to vector<8x768xf32>
    %128 = arith.select %125, %126, %127 : vector<8x768xi1>, vector<8x768xf32>
    %129 = arith.addf %107, %128 : vector<8x768xf32>
    %130 = arith.maximumf %129, %31 : vector<8x768xf32>
    %131 = arith.minimumf %130, %35 : vector<8x768xf32>
    %c4_i32 = arith.constant 4 : i32
    %132 = arith.truncf %131 : vector<8x768xf32> to vector<8x768xbf16>
    %cst_47 = arith.constant dense<0.000000e+00> : vector<8x128xf32>
    %133 = tpu.matmul %132, %2, %cst_47 {dimension_numbers = #tpu.dot_dimension_numbers<[1], [0], [0], [1], [0, 0, 1, 1], [], []>} : vector<8x768xbf16>, vector<768x128xbf16>, vector<8x128xf32> -> vector<8x128xf32>
    %134 = arith.addf %133, %6 : vector<8x128xf32>
    %cst_48 = arith.constant dense<0xFF800000> : vector<8xf32>
    %135 = vector.multi_reduction <maximumf>, %134, %cst_48 [1] : vector<8x128xf32> to vector<8xf32>
    %136 = vector.shape_cast %135 : vector<8xf32> to vector<8x1xf32>
    %137 = vector.broadcast %136 : vector<8x1xf32> to vector<8x128xf32>
    %138 = arith.subf %134, %137 : vector<8x128xf32>
    %139 = math.exp %138 : vector<8x128xf32>
    %cst_49 = arith.constant dense<0.000000e+00> : vector<8xf32>
    %140 = vector.multi_reduction <add>, %139, %cst_49 [1] : vector<8x128xf32> to vector<8xf32>
    %141 = vector.shape_cast %140 : vector<8xf32> to vector<8x1xf32>
    %142 = tpu.reciprocal %141 {approx = true} : vector<8x1xf32> -> vector<8x1xf32>
    %143 = vector.broadcast %142 : vector<8x1xf32> to vector<8x128xf32>
    %144 = arith.mulf %139, %143 : vector<8x128xf32>
    %145 = arith.subf %144, %24 : vector<8x128xf32>
    %146 = arith.truncf %145 : vector<8x128xf32> to vector<8x128xbf16>
    %cst_50 = arith.constant dense<0.000000e+00> : vector<8x768xf32>
    %147 = tpu.matmul %146, %3, %cst_50 {dimension_numbers = #tpu.dot_dimension_numbers<[1], [0], [0], [1], [0, 0, 1, 1], [], []>} : vector<8x128xbf16>, vector<128x768xbf16>, vector<8x768xf32> -> vector<8x768xf32>
    %cst_51 = arith.constant 0.000000e+00 : f32
    %148 = vector.broadcast %cst_51 : f32 to vector<8x768xf32>
    %149 = arith.cmpf oge, %147, %148 : vector<8x768xf32>
    %cst_52 = arith.constant 1.570000e-02 : f32
    %cst_53 = arith.constant -1.570000e-02 : f32
    %150 = vector.broadcast %cst_52 : f32 to vector<8x768xf32>
    %151 = vector.broadcast %cst_53 : f32 to vector<8x768xf32>
    %152 = arith.select %149, %150, %151 : vector<8x768xi1>, vector<8x768xf32>
    %153 = arith.addf %131, %152 : vector<8x768xf32>
    %154 = arith.maximumf %153, %31 : vector<8x768xf32>
    %155 = arith.minimumf %154, %35 : vector<8x768xf32>
    %c5_i32 = arith.constant 5 : i32
    %156 = arith.truncf %155 : vector<8x768xf32> to vector<8x768xbf16>
    %cst_54 = arith.constant dense<0.000000e+00> : vector<8x128xf32>
    %157 = tpu.matmul %156, %2, %cst_54 {dimension_numbers = #tpu.dot_dimension_numbers<[1], [0], [0], [1], [0, 0, 1, 1], [], []>} : vector<8x768xbf16>, vector<768x128xbf16>, vector<8x128xf32> -> vector<8x128xf32>
    %158 = arith.addf %157, %6 : vector<8x128xf32>
    %cst_55 = arith.constant dense<0xFF800000> : vector<8xf32>
    %159 = vector.multi_reduction <maximumf>, %158, %cst_55 [1] : vector<8x128xf32> to vector<8xf32>
    %160 = vector.shape_cast %159 : vector<8xf32> to vector<8x1xf32>
    %161 = vector.broadcast %160 : vector<8x1xf32> to vector<8x128xf32>
    %162 = arith.subf %158, %161 : vector<8x128xf32>
    %163 = math.exp %162 : vector<8x128xf32>
    %cst_56 = arith.constant dense<0.000000e+00> : vector<8xf32>
    %164 = vector.multi_reduction <add>, %163, %cst_56 [1] : vector<8x128xf32> to vector<8xf32>
    %165 = vector.shape_cast %164 : vector<8xf32> to vector<8x1xf32>
    %166 = tpu.reciprocal %165 {approx = true} : vector<8x1xf32> -> vector<8x1xf32>
    %167 = vector.broadcast %166 : vector<8x1xf32> to vector<8x128xf32>
    %168 = arith.mulf %163, %167 : vector<8x128xf32>
    %169 = arith.subf %168, %24 : vector<8x128xf32>
    %170 = arith.truncf %169 : vector<8x128xf32> to vector<8x128xbf16>
    %cst_57 = arith.constant dense<0.000000e+00> : vector<8x768xf32>
    %171 = tpu.matmul %170, %3, %cst_57 {dimension_numbers = #tpu.dot_dimension_numbers<[1], [0], [0], [1], [0, 0, 1, 1], [], []>} : vector<8x128xbf16>, vector<128x768xbf16>, vector<8x768xf32> -> vector<8x768xf32>
    %cst_58 = arith.constant 0.000000e+00 : f32
    %172 = vector.broadcast %cst_58 : f32 to vector<8x768xf32>
    %173 = arith.cmpf oge, %171, %172 : vector<8x768xf32>
    %cst_59 = arith.constant 1.570000e-02 : f32
    %cst_60 = arith.constant -1.570000e-02 : f32
    %174 = vector.broadcast %cst_59 : f32 to vector<8x768xf32>
    %175 = vector.broadcast %cst_60 : f32 to vector<8x768xf32>
    %176 = arith.select %173, %174, %175 : vector<8x768xi1>, vector<8x768xf32>
    %177 = arith.addf %155, %176 : vector<8x768xf32>
    %178 = arith.maximumf %177, %31 : vector<8x768xf32>
    %179 = arith.minimumf %178, %35 : vector<8x768xf32>
    %c6_i32 = arith.constant 6 : i32
    %180 = arith.truncf %179 : vector<8x768xf32> to vector<8x768xbf16>
    %cst_61 = arith.constant dense<0.000000e+00> : vector<8x128xf32>
    %181 = tpu.matmul %180, %2, %cst_61 {dimension_numbers = #tpu.dot_dimension_numbers<[1], [0], [0], [1], [0, 0, 1, 1], [], []>} : vector<8x768xbf16>, vector<768x128xbf16>, vector<8x128xf32> -> vector<8x128xf32>
    %182 = arith.addf %181, %6 : vector<8x128xf32>
    %cst_62 = arith.constant dense<0xFF800000> : vector<8xf32>
    %183 = vector.multi_reduction <maximumf>, %182, %cst_62 [1] : vector<8x128xf32> to vector<8xf32>
    %184 = vector.shape_cast %183 : vector<8xf32> to vector<8x1xf32>
    %185 = vector.broadcast %184 : vector<8x1xf32> to vector<8x128xf32>
    %186 = arith.subf %182, %185 : vector<8x128xf32>
    %187 = math.exp %186 : vector<8x128xf32>
    %cst_63 = arith.constant dense<0.000000e+00> : vector<8xf32>
    %188 = vector.multi_reduction <add>, %187, %cst_63 [1] : vector<8x128xf32> to vector<8xf32>
    %189 = vector.shape_cast %188 : vector<8xf32> to vector<8x1xf32>
    %190 = tpu.reciprocal %189 {approx = true} : vector<8x1xf32> -> vector<8x1xf32>
    %191 = vector.broadcast %190 : vector<8x1xf32> to vector<8x128xf32>
    %192 = arith.mulf %187, %191 : vector<8x128xf32>
    %193 = arith.subf %192, %24 : vector<8x128xf32>
    %194 = arith.truncf %193 : vector<8x128xf32> to vector<8x128xbf16>
    %cst_64 = arith.constant dense<0.000000e+00> : vector<8x768xf32>
    %195 = tpu.matmul %194, %3, %cst_64 {dimension_numbers = #tpu.dot_dimension_numbers<[1], [0], [0], [1], [0, 0, 1, 1], [], []>} : vector<8x128xbf16>, vector<128x768xbf16>, vector<8x768xf32> -> vector<8x768xf32>
    %cst_65 = arith.constant 0.000000e+00 : f32
    %196 = vector.broadcast %cst_65 : f32 to vector<8x768xf32>
    %197 = arith.cmpf oge, %195, %196 : vector<8x768xf32>
    %cst_66 = arith.constant 1.570000e-02 : f32
    %cst_67 = arith.constant -1.570000e-02 : f32
    %198 = vector.broadcast %cst_66 : f32 to vector<8x768xf32>
    %199 = vector.broadcast %cst_67 : f32 to vector<8x768xf32>
    %200 = arith.select %197, %198, %199 : vector<8x768xi1>, vector<8x768xf32>
    %201 = arith.addf %179, %200 : vector<8x768xf32>
    %202 = arith.maximumf %201, %31 : vector<8x768xf32>
    %203 = arith.minimumf %202, %35 : vector<8x768xf32>
    %c7_i32 = arith.constant 7 : i32
    %204 = arith.truncf %203 : vector<8x768xf32> to vector<8x768xbf16>
    %cst_68 = arith.constant dense<0.000000e+00> : vector<8x128xf32>
    %205 = tpu.matmul %204, %2, %cst_68 {dimension_numbers = #tpu.dot_dimension_numbers<[1], [0], [0], [1], [0, 0, 1, 1], [], []>} : vector<8x768xbf16>, vector<768x128xbf16>, vector<8x128xf32> -> vector<8x128xf32>
    %206 = arith.addf %205, %6 : vector<8x128xf32>
    %cst_69 = arith.constant dense<0xFF800000> : vector<8xf32>
    %207 = vector.multi_reduction <maximumf>, %206, %cst_69 [1] : vector<8x128xf32> to vector<8xf32>
    %208 = vector.shape_cast %207 : vector<8xf32> to vector<8x1xf32>
    %209 = vector.broadcast %208 : vector<8x1xf32> to vector<8x128xf32>
    %210 = arith.subf %206, %209 : vector<8x128xf32>
    %211 = math.exp %210 : vector<8x128xf32>
    %cst_70 = arith.constant dense<0.000000e+00> : vector<8xf32>
    %212 = vector.multi_reduction <add>, %211, %cst_70 [1] : vector<8x128xf32> to vector<8xf32>
    %213 = vector.shape_cast %212 : vector<8xf32> to vector<8x1xf32>
    %214 = tpu.reciprocal %213 {approx = true} : vector<8x1xf32> -> vector<8x1xf32>
    %215 = vector.broadcast %214 : vector<8x1xf32> to vector<8x128xf32>
    %216 = arith.mulf %211, %215 : vector<8x128xf32>
    %217 = arith.subf %216, %24 : vector<8x128xf32>
    %218 = arith.truncf %217 : vector<8x128xf32> to vector<8x128xbf16>
    %cst_71 = arith.constant dense<0.000000e+00> : vector<8x768xf32>
    %219 = tpu.matmul %218, %3, %cst_71 {dimension_numbers = #tpu.dot_dimension_numbers<[1], [0], [0], [1], [0, 0, 1, 1], [], []>} : vector<8x128xbf16>, vector<128x768xbf16>, vector<8x768xf32> -> vector<8x768xf32>
    %cst_72 = arith.constant 0.000000e+00 : f32
    %220 = vector.broadcast %cst_72 : f32 to vector<8x768xf32>
    %221 = arith.cmpf oge, %219, %220 : vector<8x768xf32>
    %cst_73 = arith.constant 1.570000e-02 : f32
    %cst_74 = arith.constant -1.570000e-02 : f32
    %222 = vector.broadcast %cst_73 : f32 to vector<8x768xf32>
    %223 = vector.broadcast %cst_74 : f32 to vector<8x768xf32>
    %224 = arith.select %221, %222, %223 : vector<8x768xi1>, vector<8x768xf32>
    %225 = arith.addf %203, %224 : vector<8x768xf32>
    %226 = arith.maximumf %225, %31 : vector<8x768xf32>
    %227 = arith.minimumf %226, %35 : vector<8x768xf32>
    %c8_i32 = arith.constant 8 : i32
    %228 = arith.truncf %227 : vector<8x768xf32> to vector<8x768xbf16>
    %cst_75 = arith.constant dense<0.000000e+00> : vector<8x128xf32>
    %229 = tpu.matmul %228, %2, %cst_75 {dimension_numbers = #tpu.dot_dimension_numbers<[1], [0], [0], [1], [0, 0, 1, 1], [], []>} : vector<8x768xbf16>, vector<768x128xbf16>, vector<8x128xf32> -> vector<8x128xf32>
    %230 = arith.addf %229, %6 : vector<8x128xf32>
    %cst_76 = arith.constant dense<0xFF800000> : vector<8xf32>
    %231 = vector.multi_reduction <maximumf>, %230, %cst_76 [1] : vector<8x128xf32> to vector<8xf32>
    %232 = vector.shape_cast %231 : vector<8xf32> to vector<8x1xf32>
    %233 = vector.broadcast %232 : vector<8x1xf32> to vector<8x128xf32>
    %234 = arith.subf %230, %233 : vector<8x128xf32>
    %235 = math.exp %234 : vector<8x128xf32>
    %cst_77 = arith.constant dense<0.000000e+00> : vector<8xf32>
    %236 = vector.multi_reduction <add>, %235, %cst_77 [1] : vector<8x128xf32> to vector<8xf32>
    %237 = vector.shape_cast %236 : vector<8xf32> to vector<8x1xf32>
    %238 = tpu.reciprocal %237 {approx = true} : vector<8x1xf32> -> vector<8x1xf32>
    %239 = vector.broadcast %238 : vector<8x1xf32> to vector<8x128xf32>
    %240 = arith.mulf %235, %239 : vector<8x128xf32>
    %241 = arith.subf %240, %24 : vector<8x128xf32>
    %242 = arith.truncf %241 : vector<8x128xf32> to vector<8x128xbf16>
    %cst_78 = arith.constant dense<0.000000e+00> : vector<8x768xf32>
    %243 = tpu.matmul %242, %3, %cst_78 {dimension_numbers = #tpu.dot_dimension_numbers<[1], [0], [0], [1], [0, 0, 1, 1], [], []>} : vector<8x128xbf16>, vector<128x768xbf16>, vector<8x768xf32> -> vector<8x768xf32>
    %cst_79 = arith.constant 0.000000e+00 : f32
    %244 = vector.broadcast %cst_79 : f32 to vector<8x768xf32>
    %245 = arith.cmpf oge, %243, %244 : vector<8x768xf32>
    %cst_80 = arith.constant 1.570000e-02 : f32
    %cst_81 = arith.constant -1.570000e-02 : f32
    %246 = vector.broadcast %cst_80 : f32 to vector<8x768xf32>
    %247 = vector.broadcast %cst_81 : f32 to vector<8x768xf32>
    %248 = arith.select %245, %246, %247 : vector<8x768xi1>, vector<8x768xf32>
    %249 = arith.addf %227, %248 : vector<8x768xf32>
    %250 = arith.maximumf %249, %31 : vector<8x768xf32>
    %251 = arith.minimumf %250, %35 : vector<8x768xf32>
    %c9_i32 = arith.constant 9 : i32
    %252 = arith.truncf %251 : vector<8x768xf32> to vector<8x768xbf16>
    %cst_82 = arith.constant dense<0.000000e+00> : vector<8x128xf32>
    %253 = tpu.matmul %252, %2, %cst_82 {dimension_numbers = #tpu.dot_dimension_numbers<[1], [0], [0], [1], [0, 0, 1, 1], [], []>} : vector<8x768xbf16>, vector<768x128xbf16>, vector<8x128xf32> -> vector<8x128xf32>
    %254 = arith.addf %253, %6 : vector<8x128xf32>
    %cst_83 = arith.constant dense<0xFF800000> : vector<8xf32>
    %255 = vector.multi_reduction <maximumf>, %254, %cst_83 [1] : vector<8x128xf32> to vector<8xf32>
    %256 = vector.shape_cast %255 : vector<8xf32> to vector<8x1xf32>
    %257 = vector.broadcast %256 : vector<8x1xf32> to vector<8x128xf32>
    %258 = arith.subf %254, %257 : vector<8x128xf32>
    %259 = math.exp %258 : vector<8x128xf32>
    %cst_84 = arith.constant dense<0.000000e+00> : vector<8xf32>
    %260 = vector.multi_reduction <add>, %259, %cst_84 [1] : vector<8x128xf32> to vector<8xf32>
    %261 = vector.shape_cast %260 : vector<8xf32> to vector<8x1xf32>
    %262 = tpu.reciprocal %261 {approx = true} : vector<8x1xf32> -> vector<8x1xf32>
    %263 = vector.broadcast %262 : vector<8x1xf32> to vector<8x128xf32>
    %264 = arith.mulf %259, %263 : vector<8x128xf32>
    %265 = arith.subf %264, %24 : vector<8x128xf32>
    %266 = arith.truncf %265 : vector<8x128xf32> to vector<8x128xbf16>
    %cst_85 = arith.constant dense<0.000000e+00> : vector<8x768xf32>
    %267 = tpu.matmul %266, %3, %cst_85 {dimension_numbers = #tpu.dot_dimension_numbers<[1], [0], [0], [1], [0, 0, 1, 1], [], []>} : vector<8x128xbf16>, vector<128x768xbf16>, vector<8x768xf32> -> vector<8x768xf32>
    %cst_86 = arith.constant 0.000000e+00 : f32
    %268 = vector.broadcast %cst_86 : f32 to vector<8x768xf32>
    %269 = arith.cmpf oge, %267, %268 : vector<8x768xf32>
    %cst_87 = arith.constant 1.570000e-02 : f32
    %cst_88 = arith.constant -1.570000e-02 : f32
    %270 = vector.broadcast %cst_87 : f32 to vector<8x768xf32>
    %271 = vector.broadcast %cst_88 : f32 to vector<8x768xf32>
    %272 = arith.select %269, %270, %271 : vector<8x768xi1>, vector<8x768xf32>
    %273 = arith.addf %251, %272 : vector<8x768xf32>
    %274 = arith.maximumf %273, %31 : vector<8x768xf32>
    %275 = arith.minimumf %274, %35 : vector<8x768xf32>
    %276 = arith.truncf %275 : vector<8x768xf32> to vector<8x768xbf16>
    %cst_89 = arith.constant dense<0.000000e+00> : vector<8x128xf32>
    %277 = tpu.matmul %276, %2, %cst_89 {dimension_numbers = #tpu.dot_dimension_numbers<[1], [0], [0], [1], [0, 0, 1, 1], [], []>} : vector<8x768xbf16>, vector<768x128xbf16>, vector<8x128xf32> -> vector<8x128xf32>
    %278 = arith.addf %277, %6 : vector<8x128xf32>
    %c0_90 = arith.constant 0 : index
    %c0_91 = arith.constant 0 : index
    %279 = vector.load %arg7[%c0_90, %c0_91] : memref<8x128xf32, #tpu.memory_space<vmem>>, vector<8x128xf32>
    tpu.vector_store %arg7[%c0_90, %c0_91], %278 {strides = array<i32>} : memref<8x128xf32, #tpu.memory_space<vmem>>, vector<8x128xf32>,
    return
  }
  func.func @transform_0(%arg0: i32) -> (i32, i32) {
    %c0_i32 = arith.constant 0 : i32
    %c0_i32_0 = arith.constant 0 : i32
    return %arg0, %c0_i32 : i32, i32
  }
  func.func @transform_1(%arg0: i32) -> (i32, i32) {
    %c0_i32 = arith.constant 0 : i32
    %c0_i32_0 = arith.constant 0 : i32
    return %arg0, %c0_i32 : i32, i32
  }
  func.func @transform_2(%arg0: i32) -> (i32, i32) {
    %c0_i32 = arith.constant 0 : i32
    %c0_i32_0 = arith.constant 0 : i32
    return %arg0, %c0_i32 : i32, i32
  }
  func.func @transform_3(%arg0: i32) -> (i32, i32) {
    %c0_i32 = arith.constant 0 : i32
    %c0_i32_0 = arith.constant 0 : i32
    %c0_i32_1 = arith.constant 0 : i32
    return %c0_i32, %c0_i32_0 : i32, i32
  }
  func.func @transform_4(%arg0: i32) -> (i32, i32) {
    %c0_i32 = arith.constant 0 : i32
    %c0_i32_0 = arith.constant 0 : i32
    %c0_i32_1 = arith.constant 0 : i32
    return %c0_i32, %c0_i32_0 : i32, i32
  }
  func.func @transform_5(%arg0: i32) -> (i32, i32) {
    %c0_i32 = arith.constant 0 : i32
    %c0_i32_0 = arith.constant 0 : i32
    %c0_i32_1 = arith.constant 0 : i32
    return %c0_i32, %c0_i32_0 : i32, i32
  }
  func.func @transform_6(%arg0: i32) -> (i32, i32) {
    %c0_i32 = arith.constant 0 : i32
    %c0_i32_0 = arith.constant 0 : i32
    return %arg0, %c0_i32 : i32, i32
  }
  func.func @transform_7(%arg0: i32) -> (i32, i32) {
    %c0_i32 = arith.constant 0 : i32
    %c0_i32_0 = arith.constant 0 : i32
    return %arg0, %c0_i32 : i32, i32
  }
}

</mosaic_0001>

<bundles_post_ra>
// kernel: tpu_custom_call.1
= control target key start
LH: loop header
LB: loop body
LE: loop exit
PB: predicated region body
PF: predicated region fallthrough
CT: control target
= control target key end

     0   :  { %13 = vsyncpa [#allocation3], 0  ;;  %s7924_s0 = inlined_call_operand.vmem [shape: s32[8,1], index: 0, kind: input, shape index: {}]   ;;  %s7925_s1 = inlined_call_operand.hbm [shape: bf16[8,768], index: 1, kind: input, shape index: {}]   ;;  %s7926_s2 = inlined_call_operand.hbm [shape: bf16[8,768], index: 2, kind: input, shape index: {}]   ;;  %s7927_s3 = inlined_call_operand.hbm [shape: bf16[768,128], index: 3, kind: input, shape index: {}]   ;;  %s7928_s4 = inlined_call_operand.hbm [shape: bf16[128,768], index: 4, kind: input, shape index: {}]   ;;  %s7929_s5 = inlined_call_operand.vmem [shape: f32[1,128], index: 5, kind: input, shape index: {}]   ;;  %s7930_s6 = inlined_call_operand.hbm [shape: f32[8,128], index: 6, kind: output, shape index: {0}]   ;;  %s7931_s7 = inlined_call_operand.hbm [shape: f32[8,128], index: 7, kind: output, shape index: {1}]  }
   0x1   :  { %14 = vsyncpa [#allocation6], 0 }
   0x2   :  { %15 = vsyncpa [#allocation9], 0 }
   0x3   :  { %16 = vsyncpa [#allocation4], 0 }
   0x4   :  { %17 = vsyncpa [#allocation12], 0  ;;  %s5532_s24 = smov [#allocation5]   ;;  %s5533_s26 = smov [#allocation2]  }
   0x5   :  { %s36_s25 = sshll.u32 %s5532_s24, 4  ;;  %s26_s27 = sshll.u32 %s5533_s26, 4  ;;  %s37_s25 = int_to_ptr.vmem [resolvable:$true] %s36_s25  ;;  %s27_s27 = int_to_ptr.vmem [resolvable:$true] %s26_s27 }
   0x6   :  { %s5410_s28 = scalar_lea.vmem %s37_s25, 384  ;;  %p5415_p1 = scmp.lt.s32.totalorder %s37_s25, %s37_s25 }
   0x7   :  { %p5411_p0 = scmp.ne.s32.totalorder %s37_s25, %s5410_s28  ;;  %p5416_p2 = scmp.lt.s32.totalorder %s5410_s28, %s5410_s28 }
   0x9   :  { %p5417_p3 = por %p5416_p2, %p5415_p1 }
   0xb   :  { %p5418_p4 = pnand %p5417_p3, %p5411_p0 }
   0xd   :  { %5421 = shalt.err (!%p5418_p4)
}
   0xe   :  { %39 = dma.hbm_to_vmem [thread:$0]  %s7926_s2, 384, %s37_s25, [#allocation6]  }
   0xf   :  { %s5430_s8 = scalar_lea.vmem %s27_s27, 384  ;;  %p5435_p6 = scmp.lt.s32.totalorder %s27_s27, %s27_s27 }
  0x10   :  { %p5431_p5 = scmp.ne.s32.totalorder %s27_s27, %s5430_s8  ;;  %p5436_p7 = scmp.lt.s32.totalorder %s5430_s8, %s5430_s8 }
  0x12   :  { %p5437_p8 = por %p5436_p7, %p5435_p6 }
  0x14   :  { %p5438_p9 = pnand %p5437_p8, %p5431_p5 }
  0x16   :  { %5441 = shalt.err (!%p5438_p9)
}
  0x17   :  { %29 = dma.hbm_to_vmem [thread:$0]  %s7925_s1, 384, %s27_s27, [#allocation3]  }
  0x18   :  { %s5534_s11 = smov [#allocation7]  }
  0x19   :  { %s45_s12 = sshll.u32 %s5534_s11, 4  ;;  %s46_s12 = int_to_ptr.vmem [resolvable:$true] %s45_s12 }
  0x1a   :  { %s5450_s13 = scalar_lea.vmem %s46_s12, 6144  ;;  %p5455_p11 = scmp.lt.s32.totalorder %s46_s12, %s46_s12 }
  0x1b   :  { %p5451_p10 = scmp.ne.s32.totalorder %s46_s12, %s5450_s13  ;;  %p5456_p12 = scmp.lt.s32.totalorder %s5450_s13, %s5450_s13 }
  0x1d   :  { %p5457_p13 = por %p5456_p12, %p5455_p11 }
  0x1f   :  { %p5458_p0 = pnand %p5457_p13, %p5451_p10 }
  0x21   :  { %5461 = shalt.err (!%p5458_p0)
}
  0x22   :  { %s5535_s2 = smov 64   ;;  %s5536_s14 = smov 4  }
  0x23   :  { %51 = dma.hbm_to_vmem [thread:$0]  %s7927_s3, 6144, %s46_s12, [#allocation6], %s5535_s2, %s5535_s2, %s5536_s14  }
  0x24   :  { %s5537_s17 = smov [#allocation8]  }
  0x25   :  { %s57_s18 = sshll.u32 %s5537_s17, 4  ;;  %s58_s18 = int_to_ptr.vmem [resolvable:$true] %s57_s18 }
  0x26   :  { %s5470_s1 = scalar_lea.vmem %s58_s18, 6144  ;;  %p5475_p2 = scmp.lt.s32.totalorder %s58_s18, %s58_s18 }
  0x27   :  { %p5471_p1 = scmp.ne.s32.totalorder %s58_s18, %s5470_s1  ;;  %p5476_p3 = scmp.lt.s32.totalorder %s5470_s1, %s5470_s1 }
  0x29   :  { %p5477_p4 = por %p5476_p3, %p5475_p2 }
  0x2b   :  { %p5478_p5 = pnand %p5477_p4, %p5471_p1 }
  0x2d   :  { %5481 = shalt.err (!%p5478_p5)
}
  0x2e   :  { %s5538_s19 = smov 384   ;;  %s5539_s20 = smov 24  }
  0x2f   :  { %63 = dma.hbm_to_vmem [thread:$0]  %s7928_s4, 6144, %s58_s18, [#allocation9], %s5538_s19, %s5538_s19, %s5539_s20  }
  0x30   :  { %5522 = dma.done.wait [#allocation3], 384  }
  0x31   :  { %5523 = vsyncadd [#allocation3], 4294966912 }
  0x32   :  { %5524 = dma.done.wait [#allocation6], 6528  }
  0x33   :  { %5525 = vsyncadd [#allocation6], 4294960768 }
  0x34   :  { %5526 = dma.done.wait [#allocation9], 6144  }
  0x35   :  { %5527 = vsyncadd [#allocation9], 4294961152  ;;  %v5597_v0 = vld [vmem:[#allocation7 + $0x78] sm:$0xff]   ;;  %v5608_v4 = vld [vmem:[#allocation7 + $0x70] sm:$0xff]  }
  0x36   :  { %v5599_v1 = vld [vmem:[#allocation7 + $0xf8] sm:$0xff]   ;;  %4134 = vmatprep.subr.bf16.mxu0 %v5597_v0  ;;  %v5611_v5 = vld [vmem:[#allocation7 + $0xf0] sm:$0xff]   ;;  %v5620_v8 = vld [vmem:[#allocation7 + $0x68] sm:$0xff]  }
  0x37   :  { %v5602_v2 = vld [vmem:[#allocation7 + $0x38] sm:$0xff]   ;;  %4156 = vmatprep.subr.bf16.mxu1 %v5599_v1  ;;  %v5614_v6 = vld [vmem:[#allocation7 + $0x30] sm:$0xff]   ;;  %v5623_v9 = vld [vmem:[#allocation7 + $0xe8] sm:$0xff]  }
  0x38   :  { %v5605_v3 = vld [vmem:[#allocation7 + $0xb8] sm:$0xff]   ;;  %4135 = vmatpush3.bf16.msra.mxu0 %v5602_v2  ;;  %v5617_v7 = vld [vmem:[#allocation7 + $0xb0] sm:$0xff]   ;;  %v5626_v10 = vld [vmem:[#allocation7 + $0x28] sm:$0xff]  }
  0x39   :  { %4157 = vmatpush3.bf16.msra.mxu1 %v5605_v3  ;;  %4136 = vmatprep.subr.bf16.mxu0 %v5608_v4  ;;  %v5629_v11 = vld [vmem:[#allocation7 + $0xa8] sm:$0xff]   ;;  %v5632_v12 = vld [vmem:[#allocation7 + $0x60] sm:$0xff]   ;;  %v5644_v16 = vld [vmem:[#allocation7 + $0x58] sm:$0xff]  }
  0x3a   :  { %4158 = vmatprep.subr.bf16.mxu1 %v5611_v5  ;;  %v5635_v13 = vld [vmem:[#allocation7 + $0xe0] sm:$0xff]   ;;  %v5647_v17 = vld [vmem:[#allocation7 + $0xd8] sm:$0xff]   ;;  %v5656_v20 = vld [vmem:[#allocation7 + $0x50] sm:$0xff]  }
  0x3b   :  { %v5638_v14 = vld [vmem:[#allocation7 + $0x20] sm:$0xff]   ;;  %v5650_v18 = vld [vmem:[#allocation7 + $0x18] sm:$0xff]   ;;  %v5659_v21 = vld [vmem:[#allocation7 + $0xd0] sm:$0xff]  }
  0x3c   :  { %4137 = vmatpush3.bf16.msra.mxu0 %v5614_v6  ;;  %v5641_v15 = vld [vmem:[#allocation7 + $0xa0] sm:$0xff]   ;;  %v5653_v19 = vld [vmem:[#allocation7 + $0x98] sm:$0xff]   ;;  %v5662_v22 = vld [vmem:[#allocation7 + $0x10] sm:$0xff]  }
  0x3d   :  { %4159 = vmatpush3.bf16.msra.mxu1 %v5617_v7  ;;  %4138 = vmatprep.subr.bf16.mxu0 %v5620_v8  ;;  %v5665_v23 = vld [vmem:[#allocation7 + $0x90] sm:$0xff]   ;;  %v5668_v24 = vld [vmem:[#allocation7 + $0x48] sm:$0xff]   ;;  %v5680_v28 = vld [vmem:[#allocation7 + $0x40] sm:$0xff]  }
  0x3e   :  { %4160 = vmatprep.subr.bf16.mxu1 %v5623_v9  ;;  %v5671_v25 = vld [vmem:[#allocation7 + $0xc8] sm:$0xff]   ;;  %v5683_v29 = vld [vmem:[#allocation7 + $0xc0] sm:$0xff]   ;;  %v79_v32 = vld [vmem:[#allocation2] sm:$0xff] }
  0x3f   :  { %v5674_v26 = vld [vmem:[#allocation7 + $0x8] sm:$0xff]   ;;  %v5686_v30 = vld [vmem:[#allocation7] sm:$0xff]   ;;  %v5692_v33 = vld [vmem:[#allocation2 + $0x8] sm:$0xff]  ;;  %v4026_v34 = vcombine.high %v79_v32, %v79_v32  ;;  %v4025_v37 = vcombine.low %v79_v32, %v79_v32  ;;  %v5738_v49 = vunpack.c.h.bf16 %v79_v32  ;;  %v5764_v61 = vunpack.c.l.bf16 %v79_v32 }
  0x40   :  { %4139 = vmatpush3.bf16.msra.mxu0 %v5626_v10  ;;  %v5677_v27 = vld [vmem:[#allocation7 + $0x88] sm:$0xff]   ;;  %v5689_v31 = vld [vmem:[#allocation7 + $0x80] sm:$0xff]   ;;  %v5695_v35 = vld [vmem:[#allocation7 + $0x178] sm:$0xff]   ;;  %v4028_v36 = vcombine.high %v5692_v33, %v5692_v33  ;;  %v4027_v38 = vcombine.low %v5692_v33, %v5692_v33 }
  0x41   :  { %4161 = vmatpush3.bf16.msra.mxu1 %v5629_v11  ;;  %4140 = vmatprep.subr.bf16.mxu0 %v5632_v12  ;;  %v5702_v39 = vld [vmem:[#allocation7 + $0x138] sm:$0xff]   ;;  %v5706_v40 = vld [vmem:[#allocation7 + $0x170] sm:$0xff]   ;;  %v5713_v42 = vld [vmem:[#allocation7 + $0x168] sm:$0xff]  }
  0x42   :  { %4162 = vmatprep.subr.bf16.mxu1 %v5635_v13  ;;  %580 = vmatprep.mubr.bf16.mxu0 %v4026_v34  ;;  %8374 = vst [vmem:[#allocation18_spill] sm:$0xff] %v5706_v40  ;;  %v5709_v41 = vld [vmem:[#allocation7 + $0x130] sm:$0xff]   ;;  %8376 = vst [vmem:[#allocation20_spill] sm:$0xff] %v5713_v42  ;;  %v5715_v43 = vld [vmem:[#allocation7 + $0x128] sm:$0xff]   ;;  %v5772_v34 = vunpack.c.h.bf16 %v5692_v33 }
  0x43   :  { %620 = vmatprep.mubr.bf16.mxu1 %v4028_v36  ;;  %8375 = vst [vmem:[#allocation19_spill] sm:$0xff] %v5709_v41  ;;  %8377 = vst [vmem:[#allocation21_spill] sm:$0xff] %v5715_v43  ;;  %v5720_v44 = vld [vmem:[#allocation7 + $0x160] sm:$0xff]   ;;  %v5728_v46 = vld [vmem:[#allocation7 + $0x158] sm:$0xff]  }
  0x44   :  { %4141 = vmatpush3.bf16.msra.mxu0 %v5638_v14  ;;  %8378 = vst [vmem:[#allocation22_spill] sm:$0xff] %v5720_v44  ;;  %v5724_v45 = vld [vmem:[#allocation7 + $0x120] sm:$0xff]   ;;  %8380 = vst [vmem:[#allocation24_spill] sm:$0xff] %v5728_v46  ;;  %v5732_v47 = vld [vmem:[#allocation7 + $0x118] sm:$0xff]  }
  0x45   :  { %4163 = vmatpush3.bf16.msra.mxu1 %v5641_v15  ;;  %4142 = vmatprep.subr.bf16.mxu0 %v5644_v16  ;;  %8379 = vst [vmem:[#allocation23_spill] sm:$0xff] %v5724_v45  ;;  %8381 = vst [vmem:[#allocation25_spill] sm:$0xff] %v5732_v47  ;;  %v5736_v48 = vld [vmem:[#allocation7 + $0x150] sm:$0xff]   ;;  %v5743_v51 = vld [vmem:[#allocation2 + $0x10] sm:$0xff] }
  0x46   :  { %4164 = vmatprep.subr.bf16.mxu1 %v5647_v17  ;;  %8382 = vst [vmem:[#allocation26_spill] sm:$0xff] %v5736_v48  ;;  %v5741_v50 = vld [vmem:[#allocation7 + $0x110] sm:$0xff]   ;;  %v687_v52 = vld [vmem:[#allocation5] sm:$0xff]  ;;  %v4030_v54 = vcombine.high %v5743_v51, %v5743_v51  ;;  %v5760_v59 = vld [vmem:[#allocation5 + $0x10] sm:$0xff] }
  0x47   :  { %8383 = vst [vmem:[#allocation27_spill] sm:$0xff] %v5741_v50  ;;  %v5746_v53 = vld [vmem:[#allocation7 + $0x148] sm:$0xff]   ;;  %v691_v55 = vunpack.c.h.bf16 %v687_v52  ;;  %v5752_v56 = vld [vmem:[#allocation5 + $0x8] sm:$0xff]  ;;  %v5762_v60 = vld [vmem:[#allocation7 + $0x140] sm:$0xff]   ;;  %v690_v62 = vunpack.c.l.bf16 %v687_v52 }
  0x48   :  { %4143 = vmatpush3.bf16.msra.mxu0 %v5650_v18  ;;  %8384 = vst [vmem:[#allocation28_spill] sm:$0xff] %v5746_v53  ;;  %v5755_v57 = vld [vmem:[#allocation7 + $0x108] sm:$0xff]   ;;  %8387 = vst [vmem:[#allocation31_spill] sm:$0xff] %v5762_v60  ;;  %v5775_v36 = vld [vmem:[#allocation7 + $0x100] sm:$0xff]   ;;  %v693_v32 = vunpack.c.h.bf16 %v5752_v56 }
  0x49   :  { %4165 = vmatpush3.bf16.msra.mxu1 %v5653_v19  ;;  %4144 = vmatprep.subr.bf16.mxu0 %v5656_v20  ;;  %8385 = vst [vmem:[#allocation29_spill] sm:$0xff] %v5755_v57  ;;  %v5758_v58 = vadd.f32 %v691_v55, %v5738_v49  ;;  %8388 = vst [vmem:[#allocation32_spill] sm:$0xff] %v5775_v36  ;;  %v5784_v52 = vadd.f32 %v690_v62, %v5764_v61 }
  0x4a   :  { %4166 = vmatprep.subr.bf16.mxu1 %v5659_v21  ;;  %v4029_v55 = vcombine.low %v5743_v51, %v5743_v51 }
  0x4b   :  { %8386 = vst [vmem:[#allocation30_spill] sm:$0xff] %v5758_v58  ;;  %v727_v63 = vpack.c.bf16 %v5758_v58, %v5758_v58  ;;  %v726_v62 = vpack.c.bf16 %v5784_v52, %v5784_v52 }
  0x4c   :  { %4145 = vmatpush3.bf16.msra.mxu0 %v5662_v22 }
  0x4d   :  { %4167 = vmatpush3.bf16.msra.mxu1 %v5665_v23  ;;  %4146 = vmatprep.subr.bf16.mxu0 %v5668_v24 }
  0x4e   :  { %4168 = vmatprep.subr.bf16.mxu1 %v5671_v25 }
  0x50   :  { %4147 = vmatpush3.bf16.msra.mxu0 %v5674_v26 }
  0x51   :  { %4169 = vmatpush3.bf16.msra.mxu1 %v5677_v27  ;;  %4148 = vmatprep.subr.bf16.mxu0 %v5680_v28 }
  0x52   :  { %4170 = vmatprep.subr.bf16.mxu1 %v5683_v29 }
  0x54   :  { %4149 = vmatpush3.bf16.msra.mxu0 %v5686_v30 }
  0x55   :  { %4171 = vmatpush3.bf16.msra.mxu1 %v5689_v31  ;;  %4178 = vmatprep.subr.bf16.mxu0 %v5695_v35 }
  0x56   :  { %4200 = vmatprep.subr.bf16.mxu1 %v5597_v0 }
  0x57   :  { %581 = vmatmul.mubr.bf16.vlgmr.msra.gmra.mxu0 %v4025_v37  ;;  %v5779_v37 = vunpack.c.h.bf16 %v5743_v51 }
  0x58   :  { %621 = vmatmul.mubr.bf16.vlgmr.msra.gmra.mxu1 %v4027_v38  ;;  %4179 = vmatpush3.bf16.msra.mxu0 %v5702_v39  ;;  %v695_v38 = vunpack.c.h.bf16 %v5760_v59 }
  0x59   :  { %4201 = vmatpush3.bf16.msra.mxu1 %v5602_v2  ;;  %4180 = vmatprep.subr.bf16.mxu0 %v5706_v40  ;;  %8389 = vst [vmem:[#allocation33_spill] sm:$0xff] %v5779_v37 }
  0x5a   :  { %4202 = vmatprep.subr.bf16.mxu1 %v5608_v4  ;;  %660 = vmatprep.mubr.bf16.mxu0 %v4030_v54  ;;  %v5790_v54 = vadd.f32 %v693_v32, %v5772_v34 }
  0x5b   :  { %764 = vmatprep.mubr.bf16.mxu1 %v727_v63  ;;  %v5795_v63 = vadd.f32 %v695_v38, %v5779_v37  ;;  %v692_v38 = vunpack.c.l.bf16 %v5752_v56 }
  0x5c   :  { %4181 = vmatpush3.bf16.msra.mxu0 %v5709_v41  ;;  %v729_v32 = vpack.c.bf16 %v5790_v54, %v5790_v54 }
  0x5d   :  { %4203 = vmatpush3.bf16.msra.mxu1 %v5614_v6  ;;  %4182 = vmatprep.subr.bf16.mxu0 %v5713_v42  ;;  %8390 = vst [vmem:[#allocation34_spill] sm:$0xff] %v5795_v63  ;;  %v731_v58 = vpack.c.bf16 %v5795_v63, %v5795_v63 }
  0x5e   :  { %4204 = vmatprep.subr.bf16.mxu1 %v5620_v8 }
  0x60   :  { %4183 = vmatpush3.bf16.msra.mxu0 %v5715_v43 }
  0x61   :  { %4205 = vmatpush3.bf16.msra.mxu1 %v5626_v10  ;;  %4184 = vmatprep.subr.bf16.mxu0 %v5720_v44 }
  0x62   :  { %4206 = vmatprep.subr.bf16.mxu1 %v5632_v12 }
  0x64   :  { %4185 = vmatpush3.bf16.msra.mxu0 %v5724_v45 }
  0x65   :  { %4207 = vmatpush3.bf16.msra.mxu1 %v5638_v14  ;;  %4186 = vmatprep.subr.bf16.mxu0 %v5728_v46 }
  0x66   :  { %4208 = vmatprep.subr.bf16.mxu1 %v5644_v16 }
  0x68   :  { %4187 = vmatpush3.bf16.msra.mxu0 %v5732_v47 }
  0x69   :  { %4209 = vmatpush3.bf16.msra.mxu1 %v5650_v18  ;;  %4188 = vmatprep.subr.bf16.mxu0 %v5736_v48 }
  0x6a   :  { %4210 = vmatprep.subr.bf16.mxu1 %v5656_v20 }
  0x6c   :  { %4189 = vmatpush3.bf16.msra.mxu0 %v5741_v50 }
  0x6d   :  { %4211 = vmatpush3.bf16.msra.mxu1 %v5662_v22  ;;  %4190 = vmatprep.subr.bf16.mxu0 %v5746_v53 }
  0x6e   :  { %4212 = vmatprep.subr.bf16.mxu1 %v5668_v24 }
  0x70   :  { %4191 = vmatpush3.bf16.msra.mxu0 %v5755_v57 }
  0x71   :  { %4213 = vmatpush3.bf16.msra.mxu1 %v5674_v26  ;;  %4192 = vmatprep.subr.bf16.mxu0 %v5762_v60 }
  0x72   :  { %4214 = vmatprep.subr.bf16.mxu1 %v5680_v28 }
  0x74   :  { %4193 = vmatpush3.bf16.msra.mxu0 %v5775_v36 }
  0x75   :  { %4215 = vmatpush3.bf16.msra.mxu1 %v5686_v30  ;;  %4222 = vmatprep.subr.bf16.mxu0 %v5599_v1 }
  0x76   :  { %4244 = vmatprep.subr.bf16.mxu1 %v5695_v35 }
  0x77   :  { %661 = vmatmul.mubr.bf16.vlgmr.msra.gmra.mxu0 %v4029_v55  ;;  %v5832_v55 = vunpack.c.l.bf16 %v5743_v51 }
  0x78   :  { %765 = vmatmul.mubr.bf16.vlgmr.msra.gmra.mxu1 %v726_v62  ;;  %4223 = vmatpush3.bf16.msra.mxu0 %v5605_v3  ;;  %v694_v62 = vunpack.c.l.bf16 %v5760_v59 }
  0x79   :  { %4245 = vmatpush3.bf16.msra.mxu1 %v5702_v39  ;;  %4224 = vmatprep.subr.bf16.mxu0 %v5611_v5  ;;  %8391 = vst [vmem:[#allocation35_spill] sm:$0xff] %v5832_v55 }
  0x7a   :  { %4246 = vmatprep.subr.bf16.mxu1 %v5706_v40  ;;  %804 = vmatprep.mubr.bf16.mxu0 %v729_v32 }
  0x7b   :  { %844 = vmatprep.mubr.bf16.mxu1 %v731_v58  ;;  %v5828_v58 = vunpack.c.l.bf16 %v5692_v33  ;;  %v5844_v33 = vadd.f32 %v694_v62, %v5832_v55  ;;  %v5858_v62 = vld [vmem:[%s7929_s5] ss:$0 sm:$0xff] }
  0x7c   :  { %4225 = vmatpush3.bf16.msra.mxu0 %v5617_v7  ;;  %8393 = vst [vmem:[#allocation37_spill] sm:$0xff] %v5858_v62 }
  0x7d   :  { %4247 = vmatpush3.bf16.msra.mxu1 %v5709_v41  ;;  %4226 = vmatprep.subr.bf16.mxu0 %v5623_v9  ;;  %v5840_v32 = vadd.f32 %v692_v38, %v5828_v58  ;;  %8392 = vst [vmem:[#allocation36_spill] sm:$0xff] %v5844_v33  ;;  %v730_v56 = vpack.c.bf16 %v5844_v33, %v5844_v33 }
  0x7e   :  { %4248 = vmatprep.subr.bf16.mxu1 %v5713_v42 }
  0x7f   :  { %v728_v51 = vpack.c.bf16 %v5840_v32, %v5840_v32 }
  0x80   :  { %4227 = vmatpush3.bf16.msra.mxu0 %v5629_v11 }
  0x81   :  { %4249 = vmatpush3.bf16.msra.mxu1 %v5715_v43  ;;  %4228 = vmatprep.subr.bf16.mxu0 %v5635_v13 }
  0x82   :  { %4250 = vmatprep.subr.bf16.mxu1 %v5720_v44 }
  0x84   :  { %4229 = vmatpush3.bf16.msra.mxu0 %v5641_v15 }
  0x85   :  { %4251 = vmatpush3.bf16.msra.mxu1 %v5724_v45  ;;  %4230 = vmatprep.subr.bf16.mxu0 %v5647_v17 }
  0x86   :  { %4252 = vmatprep.subr.bf16.mxu1 %v5728_v46 }
  0x88   :  { %4231 = vmatpush3.bf16.msra.mxu0 %v5653_v19 }
  0x89   :  { %4253 = vmatpush3.bf16.msra.mxu1 %v5732_v47  ;;  %4232 = vmatprep.subr.bf16.mxu0 %v5659_v21 }
  0x8a   :  { %4254 = vmatprep.subr.bf16.mxu1 %v5736_v48 }
  0x8c   :  { %4233 = vmatpush3.bf16.msra.mxu0 %v5665_v23 }
  0x8d   :  { %4255 = vmatpush3.bf16.msra.mxu1 %v5741_v50  ;;  %4234 = vmatprep.subr.bf16.mxu0 %v5671_v25 }
  0x8e   :  { %4256 = vmatprep.subr.bf16.mxu1 %v5746_v53 }
  0x90   :  { %4235 = vmatpush3.bf16.msra.mxu0 %v5677_v27 }
  0x91   :  { %4257 = vmatpush3.bf16.msra.mxu1 %v5755_v57  ;;  %4236 = vmatprep.subr.bf16.mxu0 %v5683_v29 }
  0x92   :  { %4258 = vmatprep.subr.bf16.mxu1 %v5762_v60 }
  0x94   :  { %4237 = vmatpush3.bf16.msra.mxu0 %v5689_v31 }
  0x95   :  { %4259 = vmatpush3.bf16.msra.mxu1 %v5775_v36 }
  0x97   :  { %805 = vmatmul.mubr.bf16.vlgmr.msra.gmra.mxu0 %v728_v51 }
  0x98   :  { %845 = vmatmul.mubr.bf16.vlgmr.msra.gmra.mxu1 %v730_v56 }
 0x117   :  { %v4150_v59 = vpop.f32.mrf.mxu0 }
 0x118   :  { %v4172_v38 = vpop.f32.mrf.mxu1 }
 0x119   :  { %v4151_v60 = vpop.f32.mrf.mxu0 }
 0x11a   :  { %v4152_v57 = vadd.f32 %v4151_v60, %v4150_v59  ;;  %v4173_v63 = vpop.f32.mrf.mxu1 }
 0x11b   :  { %v4174_v53 = vadd.f32 %v4173_v63, %v4172_v38  ;;  %v4153_v50 = vpop.f32.mrf.mxu0 }
 0x11c   :  { %v583_v48 = vadd.f32 %v4152_v57, %v5858_v62  ;;  %v4175_v47 = vpop.f32.mrf.mxu1 }
 0x11d   :  { %v4154_v33 = vpop.f32.mrf.mxu0 }
 0x11e   :  { %v623_v37 = vadd.f32 %v4174_v53, %v583_v48  ;;  %v4176_v36 = vpop.f32.mrf.mxu1 }
 0x137   :  { %v4194_v51 = vpop.f32.mrf.mxu0 }
 0x138   :  { %v4216_v56 = vpop.f32.mrf.mxu1 }
 0x139   :  { %v4195_v55 = vpop.f32.mrf.mxu0 }
 0x13a   :  { %v4196_v46 = vadd.f32 %v4195_v55, %v4194_v51  ;;  %v4217_v45 = vpop.f32.mrf.mxu1 }
 0x13b   :  { %v4197_v44 = vpop.f32.mrf.mxu0  ;;  %v4218_v59 = vadd.f32 %v4217_v45, %v4216_v56  ;;  %v5869_v45 = vld [vmem:[#allocation8 + $0x150] ss:$24 sps:$4 sm:$0xff]  }
 0x13c   :  { %v4219_v43 = vpop.f32.mrf.mxu1  ;;  %v5861_v42 = vadd.f32 %v4196_v46, %v623_v37  ;;  %v7953_v46 = vmov 0   ;;  %v5872_v37 = vld [vmem:[#allocation8 + $0x15c] ss:$24 sps:$4 sm:$0xff]   ;;  %v5874_v56 = vld [vmem:[#allocation8 + $0x158] ss:$24 sps:$4 sm:$0xff]  }
 0x13d   :  { %v4198_v41 = vpop.f32.mrf.mxu0  ;;  %v767_v47 = vadd.f32 %v4218_v59, %v5858_v62  ;;  %v5867_v43 = vld [vmem:[#allocation8 + $0x154] ss:$24 sps:$4 sm:$0xff]   ;;  %4939 = vset.pattern.permute.xlu1 %v7953_v46  ;;  %8395 = vst [vmem:[#allocation39_spill] sm:$0xff] %v5872_v37  ;;  %8396 = vst [vmem:[#allocation40_spill] sm:$0xff] %v5874_v56  ;;  %1135 = vmatprep.mubr.bf16.mxu0 %v7953_v46  ;;  %v5884_v59 = vld [vmem:[#allocation8 + $0x120] ss:$24 sps:$4 sm:$0xff]  }
 0x13e   :  { %8394 = vst [vmem:[#allocation38_spill] sm:$0xff] %v5861_v42  ;;  %v4220_v60 = vpop.f32.mrf.mxu1  ;;  %v680_v41 = vld [vmem:[%s7924_s0] sm:$0xff]  ;;  %1103 = vmatprep.subr.bf16.mxu0 %v5867_v43  ;;  %1144 = vmatprep.subr.bf16.mxu1 %v5872_v37  ;;  %v678_v37 = vlaneseq }
 0x13f   :  { %682 = vperm.xlu1 %4939, %v680_v41   ;;  %v5880_v60 = vld [vmem:[#allocation8 + $0x12c] ss:$24 sps:$4 sm:$0xff]   ;;  %1104 = vmatpush1.bf16.msra.mxu0 %v5869_v45  ;;  %v5920_v62 = vld [vmem:[#allocation8 + $0x90] ss:$24 sps:$4 sm:$0xff]  }
 0x140   :  { %8397 = vst [vmem:[#allocation41_spill] sm:$0xff] %v5880_v60  ;;  %1145 = vmatpush1.bf16.msra.mxu1 %v5874_v56  ;;  %1176 = vmatprep.mubr.bf16.mxu1 %v7953_v46  ;;  %v5912_v41 = vld [vmem:[#allocation8 + $0xcc] ss:$24 sps:$4 sm:$0xff]   ;;  %8403 = vst [vmem:[#allocation47_spill] sm:$0xff] %v5920_v62  ;;  %v5962_v56 = vld [vmem:[#allocation8 + $0x8] ss:$24 sps:$4 sm:$0xff]  }
 0x141   :  { %1146 = vmatprep.subr.bf16.mxu1 %v5880_v60  ;;  %4940 = vset.pattern.permute.xlu0 %v7953_v46  ;;  %8401 = vst [vmem:[#allocation45_spill] sm:$0xff] %v5912_v41  ;;  %v5914_v46 = vld [vmem:[#allocation8 + $0xc8] ss:$24 sps:$4 sm:$0xff]   ;;  %v5916_v42 = vld [vmem:[#allocation8 + $0x94] ss:$24 sps:$4 sm:$0xff]   ;;  %8417 = vst [vmem:[#allocation61_spill] sm:$0xff] %v5962_v56 }
 0x142   :  { %8402 = vst [vmem:[#allocation46_spill] sm:$0xff] %v5914_v46  ;;  %v5955_v60 = vld [vmem:[#allocation8 + $0xc] ss:$24 sps:$4 sm:$0xff]  }
 0x143   :  { %8415 = vst [vmem:[#allocation59_spill] sm:$0xff] %v5955_v60 }
 0x157   :  { %v4238_v63 = vpop.f32.mrf.mxu0 }
 0x158   :  { %v4260_v50 = vpop.f32.mrf.mxu1 }
 0x159   :  { %v4239_v38 = vpop.f32.mrf.mxu0 }
 0x15a   :  { %v4240_v57 = vadd.f32 %v4239_v38, %v4238_v63  ;;  %v4261_v48 = vpop.f32.mrf.mxu1  ;;  %v5888_v63 = vld [vmem:[#allocation8 + $0x128] ss:$24 sps:$4 sm:$0xff]   ;;  %v5893_v38 = vld [vmem:[#allocation8 + $0xfc] ss:$24 sps:$4 sm:$0xff]  }
 0x15b   :  { %v4241_v53 = vpop.f32.mrf.mxu0  ;;  %v4262_v33 = vadd.f32 %v4261_v48, %v4260_v50  ;;  %8398 = vst [vmem:[#allocation42_spill] sm:$0xff] %v5888_v63  ;;  %v5890_v50 = vld [vmem:[#allocation8 + $0xf4] ss:$24 sps:$4 sm:$0xff]   ;;  %8399 = vst [vmem:[#allocation43_spill] sm:$0xff] %v5893_v38  ;;  %1147 = vmatpush1.bf16.msra.mxu1 %v5888_v63  ;;  %v5904_v48 = vld [vmem:[#allocation8 + $0xc4] ss:$24 sps:$4 sm:$0xff]  }
 0x15c   :  { %v807_v36 = vadd.f32 %v4240_v57, %v767_v47  ;;  %v4263_v40 = vpop.f32.mrf.mxu1  ;;  %v5898_v47 = vld [vmem:[#allocation8 + $0xf0] ss:$24 sps:$4 sm:$0xff]   ;;  %1148 = vmatprep.subr.bf16.mxu1 %v5893_v38  ;;  %v5943_v38 = vld [vmem:[#allocation8 + $0x3c] ss:$24 sps:$4 sm:$0xff]  }
 0x15d   :  { %v4242_v55 = vpop.f32.mrf.mxu0  ;;  %v5876_v40 = vld [vmem:[#allocation8 + $0x124] ss:$24 sps:$4 sm:$0xff]   ;;  %v5902_v57 = vld [vmem:[#allocation8 + $0xf8] ss:$24 sps:$4 sm:$0xff]   ;;  %8411 = vst [vmem:[#allocation55_spill] sm:$0xff] %v5943_v38 }
 0x15e   :  { %v4264_v51 = vpop.f32.mrf.mxu1  ;;  %v847_v44 = vadd.f32 %v4262_v33, %v807_v36  ;;  %1105 = vmatprep.subr.bf16.mxu0 %v5876_v40  ;;  %8400 = vst [vmem:[#allocation44_spill] sm:$0xff] %v5902_v57  ;;  %v5950_v63 = vld [vmem:[#allocation8 + $0x38] ss:$24 sps:$4 sm:$0xff]  }
 0x15f   :  { %1106 = vmatpush1.bf16.msra.mxu0 %v5884_v59  ;;  %1149 = vmatpush1.bf16.msra.mxu1 %v5902_v57  ;;  %v5910_v51 = vld [vmem:[#allocation8 + $0xc0] ss:$24 sps:$4 sm:$0xff]   ;;  %v5922_v57 = vld [vmem:[#allocation8 + $0x9c] ss:$24 sps:$4 sm:$0xff]   ;;  %8413 = vst [vmem:[#allocation57_spill] sm:$0xff] %v5950_v63 }
 0x160   :  { %852 = vmax.xlane.f32.xlu0 %v847_v44  ;;  %1107 = vmatprep.subr.bf16.mxu0 %v5890_v50  ;;  %8404 = vst [vmem:[#allocation48_spill] sm:$0xff] %v5922_v57 }
 0x161   :  { %1150 = vmatprep.subr.bf16.mxu1 %v5912_v41  ;;  %v5938_v41 = vld [vmem:[#allocation8 + $0x68] ss:$24 sps:$4 sm:$0xff]  }
 0x162   :  { %8409 = vst [vmem:[#allocation53_spill] sm:$0xff] %v5938_v41 }
 0x163   :  { %1108 = vmatpush1.bf16.msra.mxu0 %v5898_v47  ;;  %1151 = vmatpush1.bf16.msra.mxu1 %v5914_v46  ;;  %v5940_v46 = vld [vmem:[#allocation8 + $0x34] ss:$24 sps:$4 sm:$0xff]  }
 0x164   :  { %1109 = vmatprep.subr.bf16.mxu0 %v5904_v48  ;;  %1152 = vmatprep.subr.bf16.mxu1 %v5922_v57  ;;  %8410 = vst [vmem:[#allocation54_spill] sm:$0xff] %v5940_v46  ;;  %v5946_v57 = vld [vmem:[#allocation8 + $0x30] ss:$24 sps:$4 sm:$0xff]  }
 0x165   :  { %8412 = vst [vmem:[#allocation56_spill] sm:$0xff] %v5946_v57 }
 0x167   :  { %1110 = vmatpush1.bf16.msra.mxu0 %v5910_v51 }
 0x168   :  { %1111 = vmatprep.subr.bf16.mxu0 %v5916_v42 }
 0x16b   :  { %1112 = vmatpush1.bf16.msra.mxu0 %v5920_v62  ;;  %v5976_v62 = vld [vmem:[#allocation8 + $0x134] ss:$24 sps:$4 sm:$0xff]  }
 0x1e9   :  { %v853_v53 = vpop.xlane.xlu0 %852 }
 0x1ea   :  { %v854_v36 = vsub.f32 %v847_v44, %v853_v53  ;;  %v5926_v44 = vld [vmem:[#allocation8 + $0x98] ss:$24 sps:$4 sm:$0xff]   ;;  %v5928_v53 = vld [vmem:[#allocation8 + $0x64] ss:$24 sps:$4 sm:$0xff]  }
 0x1eb   :  { %8405 = vst [vmem:[#allocation49_spill] sm:$0xff] %v5926_v44  ;;  %8406 = vst [vmem:[#allocation50_spill] sm:$0xff] %v5928_v53  ;;  %1153 = vmatpush1.bf16.msra.mxu1 %v5926_v44  ;;  %1113 = vmatprep.subr.bf16.mxu0 %v5928_v53  ;;  %v5952_v44 = vld [vmem:[#allocation8 + $0x4] ss:$24 sps:$4 sm:$0xff]  }
 0x1ec   :  { %v855_v33 = vmul.f32 1.442695, %v854_v36  ;;  %v5931_v36 = vld [vmem:[#allocation8 + $0x6c] ss:$24 sps:$4 sm:$0xff]   ;;  %8414 = vst [vmem:[#allocation58_spill] sm:$0xff] %v5952_v44 }
 0x1ed   :  { %8407 = vst [vmem:[#allocation51_spill] sm:$0xff] %v5931_v36  ;;  %1154 = vmatprep.subr.bf16.mxu1 %v5931_v36  ;;  %v5958_v36 = vld [vmem:[#allocation8] ss:$24 sps:$4 sm:$0xff]  }
 0x1ee   :  { %5067 = vpow2.f32 %v855_v33  ;;  %v5934_v33 = vld [vmem:[#allocation8 + $0x60] ss:$24 sps:$4 sm:$0xff]   ;;  %8416 = vst [vmem:[#allocation60_spill] sm:$0xff] %v5958_v36 }
 0x1ef   :  { %8408 = vst [vmem:[#allocation52_spill] sm:$0xff] %v5934_v33  ;;  %1114 = vmatpush1.bf16.msra.mxu0 %v5934_v33  ;;  %1155 = vmatpush1.bf16.msra.mxu1 %v5938_v41  ;;  %v5964_v41 = vld [vmem:[#allocation8 + $0x164] ss:$24 sps:$4 sm:$0xff]  }
 0x1f0   :  { %1115 = vmatprep.subr.bf16.mxu0 %v5940_v46  ;;  %1156 = vmatprep.subr.bf16.mxu1 %v5943_v38  ;;  %8418 = vst [vmem:[#allocation62_spill] sm:$0xff] %v5964_v41  ;;  %v5541_v46 = vmov 0.0  }
 0x1f3   :  { %1116 = vmatpush1.bf16.msra.mxu0 %v5946_v57  ;;  %1157 = vmatpush1.bf16.msra.mxu1 %v5950_v63  ;;  %v679_v63 = vand.u32 127, %v678_v37  ;;  %v683_v57 = vpop.permute.xlu1 %682  ;;  %v8419_v37 = vmov 0  }
 0x1f4   :  { %1117 = vmatprep.subr.bf16.mxu0 %v5952_v44  ;;  %1158 = vmatprep.subr.bf16.mxu1 %v5955_v60 }
 0x1f5   :  { %vm684_vm0 = vcmp.eq.s32.totalorder %v679_v63, %v683_v57  ;;  %v5991_v63 = vld [vmem:[#allocation8 + $0xd4] ss:$24 sps:$4 sm:$0xff]  }
 0x1f6   :  { %v5971_v33 = vsel %vm684_vm0, 1.0, %v5541_v46  ;;  %v5983_v46 = vld [vmem:[#allocation8 + $0x104] ss:$24 sps:$4 sm:$0xff]  }
 0x1f7   :  { %1118 = vmatpush1.bf16.msra.mxu0 %v5958_v36  ;;  %1159 = vmatpush1.bf16.msra.mxu1 %v5962_v56  ;;  %v5974_v36 = vld [vmem:[#allocation8 + $0x160] ss:$24 sps:$4 sm:$0xff]  }
 0x1f8   :  { %1185 = vmatprep.subr.bf16.mxu0 %v5964_v41  ;;  %4266 = vmatprep.subr.bf16.mxu1 %v5597_v0  ;;  %v5979_v0 = vld [vmem:[#allocation8 + $0x130] ss:$24 sps:$4 sm:$0xff]  }
 0x1fb   :  { %v5068_v55 = vpop.eup %5067 }
 0x1fc   :  { %857 = vadd.xlane.f32.xlu0 %v5068_v55 }
 0x285   :  { %v858_v38 = vpop.xlane.xlu0 %857 }
 0x286   :  { %5069 = vrcp.f32 %v858_v38  ;;  %v5996_v38 = vld [vmem:[#allocation8 + $0xd0] ss:$24 sps:$4 sm:$0xff]  }
 0x293   :  { %v5070_v44 = vpop.eup %5069 }
 0x294   :  { %v860_v53 = vmul.f32 %v5070_v44, %v5068_v55  ;;  %v8423_v44 = vld [vmem:[#allocation30_spill] sm:$0xff] }
 0x296   :  { %v861_v60 = vsub.f32 %v860_v53, %v5971_v33 }
 0x298   :  { %v862_v56 = vpack.c.bf16 %v861_v60, %v861_v60  ;;  %v5988_v60 = vld [vmem:[#allocation8 + $0x100] ss:$24 sps:$4 sm:$0xff]  }
 0x29a   :  { %1136 = vmatmul.mubr.bf16.vlgmr.msra.gmra.mxu0 %v862_v56  ;;  %1177 = vmatmul.mubr.bf16.vlgmr.msra.gmra.mxu1 %v862_v56 }
 0x29b   :  { %1186 = vmatpush1.bf16.msra.mxu0 %v5974_v36  ;;  %1217 = vmatprep.mubr.bf16.mxu0 %v8419_v37 }
 0x29c   :  { %1187 = vmatprep.subr.bf16.mxu0 %v5976_v62  ;;  %4267 = vmatpush3.bf16.msra.mxu1 %v5602_v2  ;;  %v5999_v2 = vld [vmem:[#allocation8 + $0xa4] ss:$24 sps:$4 sm:$0xff]  }
 0x29d   :  { %4268 = vmatprep.subr.bf16.mxu1 %v5608_v4  ;;  %v6004_v4 = vld [vmem:[#allocation8 + $0xa0] ss:$24 sps:$4 sm:$0xff]  }
 0x29f   :  { %1188 = vmatpush1.bf16.msra.mxu0 %v5979_v0 }
 0x2a0   :  { %1189 = vmatprep.subr.bf16.mxu0 %v5983_v46  ;;  %4269 = vmatpush3.bf16.msra.mxu1 %v5614_v6  ;;  %v6007_v6 = vld [vmem:[#allocation8 + $0x74] ss:$24 sps:$4 sm:$0xff]  }
 0x2a1   :  { %4270 = vmatprep.subr.bf16.mxu1 %v5620_v8  ;;  %v6012_v8 = vld [vmem:[#allocation8 + $0x70] ss:$24 sps:$4 sm:$0xff]  }
 0x2a3   :  { %1190 = vmatpush1.bf16.msra.mxu0 %v5988_v60 }
 0x2a4   :  { %1191 = vmatprep.subr.bf16.mxu0 %v5991_v63  ;;  %4271 = vmatpush3.bf16.msra.mxu1 %v5626_v10  ;;  %v6015_v10 = vld [vmem:[#allocation8 + $0x44] ss:$24 sps:$4 sm:$0xff]  }
 0x2a5   :  { %4272 = vmatprep.subr.bf16.mxu1 %v5632_v12  ;;  %v6020_v12 = vld [vmem:[#allocation8 + $0x40] ss:$24 sps:$4 sm:$0xff]  }
 0x2a6   :  { %8420 = vst [vmem:[#allocation63_spill] sm:$0xff] %v6020_v12 }
 0x2a7   :  { %1192 = vmatpush1.bf16.msra.mxu0 %v5996_v38 }
 0x2a8   :  { %1193 = vmatprep.subr.bf16.mxu0 %v5999_v2  ;;  %4273 = vmatpush3.bf16.msra.mxu1 %v5638_v14  ;;  %v6023_v14 = vld [vmem:[#allocation8 + $0x14] ss:$24 sps:$4 sm:$0xff]  }
 0x2a9   :  { %4274 = vmatprep.subr.bf16.mxu1 %v5644_v16  ;;  %8421 = vst [vmem:[#allocation64_spill] sm:$0xff] %v6023_v14  ;;  %v6028_v16 = vld [vmem:[#allocation8 + $0x10] ss:$24 sps:$4 sm:$0xff]  }
 0x2aa   :  { %8422 = vst [vmem:[#allocation65_spill] sm:$0xff] %v6028_v16 }
 0x2ab   :  { %1194 = vmatpush1.bf16.msra.mxu0 %v6004_v4 }
 0x2ac   :  { %1195 = vmatprep.subr.bf16.mxu0 %v6007_v6  ;;  %4275 = vmatpush3.bf16.msra.mxu1 %v5650_v18  ;;  %v717_v18 = vadd.f32 0.062, %v5772_v34 }
 0x2ad   :  { %4276 = vmatprep.subr.bf16.mxu1 %v5656_v20 }
 0x2af   :  { %1196 = vmatpush1.bf16.msra.mxu0 %v6012_v8 }
 0x2b0   :  { %1197 = vmatprep.subr.bf16.mxu0 %v6015_v10  ;;  %4277 = vmatpush3.bf16.msra.mxu1 %v5662_v22 }
 0x2b1   :  { %4278 = vmatprep.subr.bf16.mxu1 %v5668_v24 }
 0x2b3   :  { %1198 = vmatpush1.bf16.msra.mxu0 %v6020_v12 }
 0x2b4   :  { %1199 = vmatprep.subr.bf16.mxu0 %v6023_v14  ;;  %4279 = vmatpush3.bf16.msra.mxu1 %v5674_v26 }
 0x2b5   :  { %4280 = vmatprep.subr.bf16.mxu1 %v5680_v28 }
 0x2b7   :  { %1200 = vmatpush1.bf16.msra.mxu0 %v6028_v16 }
 0x2b8   :  { %4288 = vmatprep.subr.bf16.mxu0 %v5599_v1  ;;  %4281 = vmatpush3.bf16.msra.mxu1 %v5686_v30  ;;  %v4080_v1 = vadd.f32 -0.062, %v5764_v61 }
 0x2b9   :  { %4310 = vmatprep.subr.bf16.mxu1 %v5695_v35 }
 0x2ba   :  { %1218 = vmatmul.mubr.bf16.vlgmr.msra.gmra.mxu0 %v862_v56 }
 0x2bb   :  { %4289 = vmatpush3.bf16.msra.mxu0 %v5605_v3  ;;  %v4081_v3 = vadd.f32 -0.062, %v5738_v49 }
 0x2bc   :  { %4290 = vmatprep.subr.bf16.mxu0 %v5611_v5  ;;  %v714_v5 = vadd.f32 0.062, %v5764_v61 }
 0x2bf   :  { %4291 = vmatpush3.bf16.msra.mxu0 %v5617_v7  ;;  %v4082_v7 = vadd.f32 -0.062, %v5828_v58 }
 0x2c0   :  { %4292 = vmatprep.subr.bf16.mxu0 %v5623_v9  ;;  %v715_v9 = vadd.f32 0.062, %v5738_v49  ;;  %v6079_v49 = vmin.f32 %v717_v18, 1.0 }
 0x2c1   :  { %v6067_v22 = vmax.f32 %v4082_v7, -1.0 }
 0x2c3   :  { %4293 = vmatpush3.bf16.msra.mxu0 %v5629_v11  ;;  %v4083_v11 = vadd.f32 -0.062, %v5772_v34 }
 0x2c4   :  { %4294 = vmatprep.subr.bf16.mxu0 %v5635_v13  ;;  %v6059_v13 = vmax.f32 %v4080_v1, -1.0 }
 0x2c5   :  { %v6071_v24 = vmax.f32 %v4083_v11, -1.0 }
 0x2c7   :  { %4295 = vmatpush3.bf16.msra.mxu0 %v5641_v15  ;;  %v6061_v15 = vmax.f32 %v4081_v3, -1.0 }
 0x2c8   :  { %4296 = vmatprep.subr.bf16.mxu0 %v5647_v17  ;;  %v716_v17 = vadd.f32 0.062, %v5828_v58 }
 0x2ca   :  { %v6077_v35 = vmin.f32 %v716_v17, 1.0 }
 0x2cb   :  { %4297 = vmatpush3.bf16.msra.mxu0 %v5653_v19 }
 0x2cc   :  { %4298 = vmatprep.subr.bf16.mxu0 %v5659_v21  ;;  %v6065_v21 = vmin.f32 %v714_v5, 1.0 }
 0x2cf   :  { %4299 = vmatpush3.bf16.msra.mxu0 %v5665_v23  ;;  %v6069_v23 = vmin.f32 %v715_v9, 1.0 }
 0x2d0   :  { %4300 = vmatprep.subr.bf16.mxu0 %v5671_v25  ;;  %v8003_v25 = vmov -0.0157  }
 0x2d3   :  { %4301 = vmatpush3.bf16.msra.mxu0 %v5677_v27 }
 0x2d4   :  { %4302 = vmatprep.subr.bf16.mxu0 %v5683_v29 }
 0x2d7   :  { %4303 = vmatpush3.bf16.msra.mxu0 %v5689_v31 }
 0x2d8   :  { %1393 = vmatprep.subr.bf16.mxu0 %v5867_v43 }
 0x35a   :  { %v1137_v19 = vpop.f32.mrf.mxu0  ;;  %v1178_v20 = vpop.f32.mrf.mxu1 }
 0x35b   :  { %vm1226_vm1 = vcmp.ge.f32.partialorder %v1137_v19, 0.0  ;;  %vm1228_vm2 = vcmp.ge.f32.partialorder %v1178_v20, 0.0 }
 0x35c   :  { %v1232_v26 = vsel %vm1226_vm1, 0.0157, %v8003_v25  ;;  %v1234_v27 = vsel %vm1228_vm2, 0.0157, %v8003_v25  ;;  %v1139_v28 = vpop.f32.mrf.mxu0  ;;  %v1180_v29 = vpop.f32.mrf.mxu1 }
 0x35d   :  { %v1238_v30 = vadd.f32 %v1232_v26, %v5784_v52  ;;  %v1240_v31 = vadd.f32 %v1234_v27, %v5840_v32  ;;  %vm1227_vm3 = vcmp.ge.f32.partialorder %v1139_v28, 0.0  ;;  %vm1229_vm4 = vcmp.ge.f32.partialorder %v1180_v29, 0.0  ;;  %v8424_v26 = vld [vmem:[#allocation18_spill] sm:$0xff]  ;;  %v8425_v27 = vld [vmem:[#allocation19_spill] sm:$0xff]  ;;  %v8426_v28 = vld [vmem:[#allocation20_spill] sm:$0xff] }
 0x35e   :  { %v1233_v61 = vsel %vm1227_vm3, 0.0157, %v8003_v25  ;;  %v1235_v34 = vsel %vm1229_vm4, 0.0157, %v8003_v25  ;;  %v1141_v58 = vpop.f32.mrf.mxu0  ;;  %v1182_v56 = vpop.f32.mrf.mxu1  ;;  %v8427_v29 = vld [vmem:[#allocation21_spill] sm:$0xff] }
 0x35f   :  { %v1244_v57 = vmax.f32 %v1238_v30, %v6059_v13  ;;  %v1246_v55 = vmax.f32 %v1240_v31, %v6067_v22  ;;  %v1239_v52 = vadd.f32 %v1233_v61, %v8423_v44  ;;  %v1241_v32 = vadd.f32 %v1235_v34, %v5790_v54  ;;  %v8429_v30 = vld [vmem:[#allocation23_spill] sm:$0xff]  ;;  %v8430_v31 = vld [vmem:[#allocation24_spill] sm:$0xff]  ;;  %v8432_v58 = vld [vmem:[#allocation33_spill] sm:$0xff] }
 0x360   :  { %v1142_v53 = vpop.f32.mrf.mxu0  ;;  %v1183_v1 = vpop.f32.mrf.mxu1  ;;  %v8431_v61 = vld [vmem:[#allocation35_spill] sm:$0xff]  ;;  %v4085_v56 = vadd.f32 -0.062, %v8432_v58 }
 0x361   :  { %v1245_v3 = vmax.f32 %v1239_v52, %v6061_v15  ;;  %v1247_v5 = vmax.f32 %v1241_v32, %v6071_v24  ;;  %v6090_v7 = vmin.f32 %v1244_v57, %v6065_v21  ;;  %v6093_v9 = vmin.f32 %v1246_v55, %v6077_v35  ;;  %v8433_v57 = vld [vmem:[#allocation25_spill] sm:$0xff]  ;;  %v8434_v55 = vld [vmem:[#allocation47_spill] sm:$0xff]  ;;  %v8435_v32 = vld [vmem:[#allocation26_spill] sm:$0xff] }
 0x362   :  { %v4084_v34 = vadd.f32 -0.062, %v8431_v61  ;;  %v718_v44 = vadd.f32 0.062, %v8431_v61  ;;  %v8436_v53 = vld [vmem:[#allocation50_spill] sm:$0xff] }
 0x363   :  { %v6096_v11 = vmin.f32 %v1245_v3, %v6069_v23  ;;  %v6099_v17 = vmin.f32 %v1247_v5, %v6079_v49  ;;  %v1256_v19 = vpack.c.bf16 %v6090_v7, %v6090_v7  ;;  %v1258_v20 = vpack.c.bf16 %v6093_v9, %v6093_v9 }
 0x364   :  { %v6133_v1 = vmax.f32 %v4084_v34, -1.0  ;;  %v719_v3 = vadd.f32 0.062, %v8432_v58  ;;  %v8446_v58 = vld [vmem:[#allocation34_spill] sm:$0xff] }
 0x365   :  { %v1257_v54 = vpack.c.bf16 %v6096_v11, %v6096_v11  ;;  %v1259_v18 = vpack.c.bf16 %v6099_v17, %v6099_v17 }
 0x366   :  { %8437 = vst [vmem:[#allocation30_spill] sm:$0xff] %v6133_v1  ;;  %v6147_v61 = vmin.f32 %v719_v3, 1.0 }
 0x367   :  { %1294 = vmatprep.mubr.bf16.mxu1 %v1257_v54  ;;  %1334 = vmatprep.mubr.bf16.mxu0 %v1259_v18  ;;  %v6137_v18 = vmax.f32 %v4085_v56, -1.0 }
 0x368   :  { %1295 = vmatmul.mubr.bf16.vlgmr.msra.gmra.mxu1 %v1256_v19  ;;  %1335 = vmatmul.mubr.bf16.vlgmr.msra.gmra.mxu0 %v1258_v20  ;;  %v8439_v19 = vld [vmem:[#allocation36_spill] sm:$0xff]  ;;  %8445 = vst [vmem:[#allocation20_spill] sm:$0xff] %v6147_v61 }
 0x369   :  { %4311 = vmatpush3.bf16.msra.mxu1 %v5702_v39  ;;  %1394 = vmatpush1.bf16.msra.mxu0 %v5869_v45  ;;  %v8428_v39 = vld [vmem:[#allocation22_spill] sm:$0xff]  ;;  %8438 = vst [vmem:[#allocation18_spill] sm:$0xff] %v6137_v18 }
 0x36a   :  { %4312 = vmatprep.subr.bf16.mxu1 %v8424_v26  ;;  %1395 = vmatprep.subr.bf16.mxu0 %v5876_v40  ;;  %v8440_v26 = vld [vmem:[#allocation27_spill] sm:$0xff] }
 0x36b   :  { %1425 = vmatprep.mubr.bf16.mxu0 %v8419_v37 }
 0x36d   :  { %4313 = vmatpush3.bf16.msra.mxu1 %v8425_v27  ;;  %1396 = vmatpush1.bf16.msra.mxu0 %v5884_v59  ;;  %v8441_v27 = vld [vmem:[#allocation52_spill] sm:$0xff] }
 0x36e   :  { %4314 = vmatprep.subr.bf16.mxu1 %v8426_v28  ;;  %1397 = vmatprep.subr.bf16.mxu0 %v5890_v50  ;;  %v6142_v28 = vmin.f32 %v718_v44, 1.0  ;;  %v8448_v44 = vld [vmem:[#allocation56_spill] sm:$0xff] }
 0x370   :  { %8442 = vst [vmem:[#allocation19_spill] sm:$0xff] %v6142_v28 }
 0x371   :  { %4315 = vmatpush3.bf16.msra.mxu1 %v8427_v29  ;;  %1398 = vmatpush1.bf16.msra.mxu0 %v5898_v47 }
 0x372   :  { %4316 = vmatprep.subr.bf16.mxu1 %v8428_v39  ;;  %1399 = vmatprep.subr.bf16.mxu0 %v5904_v48 }
 0x375   :  { %4317 = vmatpush3.bf16.msra.mxu1 %v8429_v30  ;;  %1400 = vmatpush1.bf16.msra.mxu0 %v5910_v51  ;;  %v8443_v30 = vld [vmem:[#allocation28_spill] sm:$0xff] }
 0x376   :  { %4318 = vmatprep.subr.bf16.mxu1 %v8430_v31  ;;  %1401 = vmatprep.subr.bf16.mxu0 %v5916_v42  ;;  %v8444_v31 = vld [vmem:[#allocation54_spill] sm:$0xff] }
 0x379   :  { %4319 = vmatpush3.bf16.msra.mxu1 %v8433_v57  ;;  %1402 = vmatpush1.bf16.msra.mxu0 %v8434_v55 }
 0x37a   :  { %v1219_v52 = vpop.f32.mrf.mxu0  ;;  %4320 = vmatprep.subr.bf16.mxu1 %v8435_v32  ;;  %1403 = vmatprep.subr.bf16.mxu0 %v8436_v53  ;;  %v8447_v32 = vld [vmem:[#allocation29_spill] sm:$0xff] }
 0x37b   :  { %vm1230_vm5 = vcmp.ge.f32.partialorder %v1219_v52, 0.0 }
 0x37c   :  { %v1236_v5 = vsel %vm1230_vm5, 0.0157, %v8003_v25  ;;  %v1221_v54 = vpop.f32.mrf.mxu0 }
 0x37d   :  { %v1242_v20 = vadd.f32 %v1236_v5, %v8439_v19  ;;  %vm1231_vm6 = vcmp.ge.f32.partialorder %v1221_v54, 0.0  ;;  %4321 = vmatpush3.bf16.msra.mxu1 %v8440_v26  ;;  %1404 = vmatpush1.bf16.msra.mxu0 %v8441_v27  ;;  %v8449_v54 = vld [vmem:[#allocation31_spill] sm:$0xff]  ;;  %v8450_v19 = vld [vmem:[#allocation58_spill] sm:$0xff] }
 0x37e   :  { %v1237_v29 = vsel %vm1231_vm6, 0.0157, %v8003_v25  ;;  %v1223_v39 = vpop.f32.mrf.mxu0  ;;  %4322 = vmatprep.subr.bf16.mxu1 %v8443_v30  ;;  %1405 = vmatprep.subr.bf16.mxu0 %v8444_v31  ;;  %v8454_v30 = vld [vmem:[#allocation39_spill] sm:$0xff]  ;;  %v8465_v25 = vld [vmem:[#allocation53_spill] sm:$0xff] }
 0x37f   :  { %v1248_v34 = vmax.f32 %v1242_v20, %v6133_v1  ;;  %v1243_v56 = vadd.f32 %v1237_v29, %v8446_v58  ;;  %v8452_v20 = vld [vmem:[#allocation32_spill] sm:$0xff]  ;;  %v8456_v58 = vld [vmem:[#allocation41_spill] sm:$0xff] }
 0x380   :  { %v1224_v57 = vpop.f32.mrf.mxu0  ;;  %v8453_v29 = vld [vmem:[#allocation60_spill] sm:$0xff] }
 0x381   :  { %v1249_v52 = vmax.f32 %v1243_v56, %v6137_v18  ;;  %4323 = vmatpush3.bf16.msra.mxu1 %v8447_v32  ;;  %1406 = vmatpush1.bf16.msra.mxu0 %v8448_v44  ;;  %v6155_v5 = vmin.f32 %v1248_v34, %v6142_v28  ;;  %v8455_v34 = vld [vmem:[#allocation40_spill] sm:$0xff]  ;;  %v8457_v56 = vld [vmem:[#allocation42_spill] sm:$0xff]  ;;  %v8458_v57 = vld [vmem:[#allocation43_spill] sm:$0xff] }
 0x382   :  { %4324 = vmatprep.subr.bf16.mxu1 %v8449_v54  ;;  %1407 = vmatprep.subr.bf16.mxu0 %v8450_v19  ;;  %v8460_v32 = vld [vmem:[#allocation45_spill] sm:$0xff]  ;;  %v8461_v54 = vld [vmem:[#allocation46_spill] sm:$0xff] }
 0x383   :  { %v6160_v3 = vmin.f32 %v1249_v52, %v6147_v61  ;;  %v1260_v39 = vpack.c.bf16 %v6155_v5, %v6155_v5  ;;  %v8459_v52 = vld [vmem:[#allocation44_spill] sm:$0xff] }
 0x385   :  { %8451 = vst [vmem:[#allocation21_spill] sm:$0xff] %v6160_v3  ;;  %4325 = vmatpush3.bf16.msra.mxu1 %v8452_v20  ;;  %v1261_v26 = vpack.c.bf16 %v6160_v3, %v6160_v3  ;;  %1408 = vmatpush1.bf16.msra.mxu0 %v8453_v29  ;;  %v8462_v20 = vld [vmem:[#allocation48_spill] sm:$0xff] }
 0x386   :  { %1434 = vmatprep.subr.bf16.mxu1 %v8454_v30  ;;  %1475 = vmatprep.subr.bf16.mxu0 %v5964_v41 }
 0x387   :  { %1374 = vmatprep.mubr.bf16.mxu1 %v1261_v26  ;;  %v8463_v26 = vld [vmem:[#allocation49_spill] sm:$0xff] }
 0x388   :  { %1375 = vmatmul.mubr.bf16.vlgmr.msra.gmra.mxu1 %v1260_v39  ;;  %v8464_v39 = vld [vmem:[#allocation51_spill] sm:$0xff] }
 0x389   :  { %1435 = vmatpush1.bf16.msra.mxu1 %v8455_v34  ;;  %1466 = vmatprep.mubr.bf16.mxu1 %v8419_v37  ;;  %v8466_v34 = vld [vmem:[#allocation55_spill] sm:$0xff] }
 0x38a   :  { %1436 = vmatprep.subr.bf16.mxu1 %v8456_v58  ;;  %v8467_v58 = vld [vmem:[#allocation57_spill] sm:$0xff] }
 0x38d   :  { %1437 = vmatpush1.bf16.msra.mxu1 %v8457_v56  ;;  %v8468_v56 = vld [vmem:[#allocation59_spill] sm:$0xff] }
 0x38e   :  { %1438 = vmatprep.subr.bf16.mxu1 %v8458_v57  ;;  %v8469_v57 = vld [vmem:[#allocation61_spill] sm:$0xff] }
 0x391   :  { %1439 = vmatpush1.bf16.msra.mxu1 %v8459_v52  ;;  %v6186_v52 = vld [vmem:[#allocation7 + $0x78] sm:$0xff]  }
 0x392   :  { %1440 = vmatprep.subr.bf16.mxu1 %v8460_v32  ;;  %8470 = vst [vmem:[#allocation22_spill] sm:$0xff] %v6186_v52 }
 0x395   :  { %1441 = vmatpush1.bf16.msra.mxu1 %v8461_v54 }
 0x396   :  { %1442 = vmatprep.subr.bf16.mxu1 %v8462_v20 }
 0x399   :  { %1443 = vmatpush1.bf16.msra.mxu1 %v8463_v26 }
 0x39a   :  { %1444 = vmatprep.subr.bf16.mxu1 %v8464_v39 }
 0x39d   :  { %1445 = vmatpush1.bf16.msra.mxu1 %v8465_v25 }
 0x39e   :  { %1446 = vmatprep.subr.bf16.mxu1 %v8466_v34  ;;  %v8471_v34 = vld [vmem:[#allocation37_spill] sm:$0xff] }
 0x3a1   :  { %1447 = vmatpush1.bf16.msra.mxu1 %v8467_v58 }
 0x3a2   :  { %1448 = vmatprep.subr.bf16.mxu1 %v8468_v56 }
 0x3a5   :  { %1449 = vmatpush1.bf16.msra.mxu1 %v8469_v57 }
 0x3a6   :  { %4332 = vmatprep.subr.bf16.mxu1 %v6186_v52 }
 0x428   :  { %v4282_v54 = vpop.f32.mrf.mxu1  ;;  %v4304_v20 = vpop.f32.mrf.mxu0 }
 0x42a   :  { %v4283_v32 = vpop.f32.mrf.mxu1  ;;  %v4305_v26 = vpop.f32.mrf.mxu0 }
 0x42b   :  { %v4284_v29 = vadd.f32 %v4283_v32, %v4282_v54  ;;  %v4306_v19 = vadd.f32 %v4305_v26, %v4304_v20  ;;  %v6242_v54 = vld [vmem:[#allocation7 + $0x8] sm:$0xff]   ;;  %v6245_v20 = vld [vmem:[#allocation7 + $0x40] sm:$0xff]   ;;  %v6249_v26 = vld [vmem:[#allocation7 + $0xf8] sm:$0xff]  }
 0x42c   :  { %v4285_v41 = vpop.f32.mrf.mxu1  ;;  %v4307_v39 = vpop.f32.mrf.mxu0  ;;  %8474 = vst [vmem:[#allocation35_spill] sm:$0xff] %v6242_v54  ;;  %8475 = vst [vmem:[#allocation33_spill] sm:$0xff] %v6245_v20 }
 0x42d   :  { %v1297_v61 = vadd.f32 %v4284_v29, %v8471_v34  ;;  %8476 = vst [vmem:[#allocation25_spill] sm:$0xff] %v6249_v26  ;;  %v6252_v39 = vld [vmem:[#allocation7] sm:$0xff]  }
 0x42e   :  { %v4286_v30 = vpop.f32.mrf.mxu1  ;;  %v4308_v25 = vpop.f32.mrf.mxu0  ;;  %8477 = vst [vmem:[#allocation47_spill] sm:$0xff] %v6252_v39 }
 0x42f   :  { %v1337_v28 = vadd.f32 %v4306_v19, %v1297_v61  ;;  %v6210_v61 = vld [vmem:[#allocation7 + $0x28] sm:$0xff]   ;;  %v6218_v19 = vld [vmem:[#allocation7 + $0x20] sm:$0xff]  }
 0x448   :  { %v4326_v58 = vpop.f32.mrf.mxu1 }
 0x44a   :  { %v4327_v56 = vpop.f32.mrf.mxu1 }
 0x44b   :  { %v4328_v57 = vadd.f32 %v4327_v56, %v4326_v58  ;;  %v6226_v58 = vld [vmem:[#allocation7 + $0x18] sm:$0xff]   ;;  %v6229_v56 = vld [vmem:[#allocation7 + $0x50] sm:$0xff]  }
 0x44c   :  { %v4329_v44 = vpop.f32.mrf.mxu1 }
 0x44d   :  { %v1377_v18 = vadd.f32 %v4328_v57, %v1337_v28  ;;  %v6202_v28 = vld [vmem:[#allocation7 + $0x30] sm:$0xff]   ;;  %v6213_v44 = vld [vmem:[#allocation7 + $0x60] sm:$0xff]  }
 0x44e   :  { %v4330_v3 = vpop.f32.mrf.mxu1  ;;  %v6234_v57 = vld [vmem:[#allocation7 + $0x10] sm:$0xff]  }
 0x44f   :  { %1382 = vmax.xlane.f32.xlu1 %v1377_v18  ;;  %v6221_v3 = vld [vmem:[#allocation7 + $0x58] sm:$0xff]   ;;  %8472 = vst [vmem:[#allocation23_spill] sm:$0xff] %v6234_v57 }
 0x4d8   :  { %v1383_v52 = vpop.xlane.xlu1 %1382 }
 0x4d9   :  { %v1384_v1 = vsub.f32 %v1377_v18, %v1383_v52  ;;  %v6194_v18 = vld [vmem:[#allocation7 + $0x38] sm:$0xff]   ;;  %v6237_v52 = vld [vmem:[#allocation7 + $0x48] sm:$0xff]  }
 0x4da   :  { %8473 = vst [vmem:[#allocation24_spill] sm:$0xff] %v6237_v52 }
 0x4db   :  { %v1385_v31 = vmul.f32 1.442695, %v1384_v1  ;;  %v6197_v1 = vld [vmem:[#allocation7 + $0x70] sm:$0xff]  }
 0x4dd   :  { %5071 = vpow2.f32 %v1385_v31  ;;  %v6205_v31 = vld [vmem:[#allocation7 + $0x68] sm:$0xff]  }
 0x4ea   :  { %v5072_v41 = vpop.eup %5071 }
 0x4eb   :  { %1387 = vadd.xlane.f32.xlu0 %v5072_v41 }
 0x574   :  { %v1388_v30 = vpop.xlane.xlu0 %1387 }
 0x575   :  { %5073 = vrcp.f32 %v1388_v30  ;;  %v6258_v30 = vld [vmem:[#allocation7 + $0xb8] sm:$0xff]  }
 0x576   :  { %8479 = vst [vmem:[#allocation50_spill] sm:$0xff] %v6258_v30 }
 0x582   :  { %v5074_v25 = vpop.eup %5073 }
 0x583   :  { %v1390_v32 = vmul.f32 %v5074_v25, %v5072_v41  ;;  %v6255_v41 = vld [vmem:[#allocation7 + $0x178] sm:$0xff]   ;;  %v6261_v25 = vld [vmem:[#allocation7 + $0xf0] sm:$0xff]  }
 0x584   :  { %8478 = vst [vmem:[#allocation26_spill] sm:$0xff] %v6255_v41  ;;  %8480 = vst [vmem:[#allocation36_spill] sm:$0xff] %v6261_v25 }
 0x585   :  { %v1391_v29 = vsub.f32 %v1390_v32, %v5971_v33  ;;  %v6264_v32 = vld [vmem:[#allocation7 + $0xb0] sm:$0xff]  }
 0x586   :  { %8481 = vst [vmem:[#allocation27_spill] sm:$0xff] %v6264_v32 }
 0x587   :  { %v1392_v34 = vpack.c.bf16 %v1391_v29, %v1391_v29  ;;  %v6267_v29 = vld [vmem:[#allocation7 + $0xe8] sm:$0xff]  }
 0x588   :  { %8482 = vst [vmem:[#allocation52_spill] sm:$0xff] %v6267_v29 }
 0x589   :  { %1426 = vmatmul.mubr.bf16.vlgmr.msra.gmra.mxu0 %v1392_v34  ;;  %1467 = vmatmul.mubr.bf16.vlgmr.msra.gmra.mxu1 %v1392_v34 }
 0x58a   :  { %1476 = vmatpush1.bf16.msra.mxu0 %v5974_v36  ;;  %1507 = vmatprep.mubr.bf16.mxu0 %v8419_v37 }
 0x58b   :  { %1477 = vmatprep.subr.bf16.mxu0 %v5976_v62  ;;  %4333 = vmatpush3.bf16.msra.mxu1 %v6194_v18 }
 0x58c   :  { %4334 = vmatprep.subr.bf16.mxu1 %v6197_v1 }
 0x58e   :  { %1478 = vmatpush1.bf16.msra.mxu0 %v5979_v0 }
 0x58f   :  { %1479 = vmatprep.subr.bf16.mxu0 %v5983_v46  ;;  %4335 = vmatpush3.bf16.msra.mxu1 %v6202_v28 }
 0x590   :  { %4336 = vmatprep.subr.bf16.mxu1 %v6205_v31 }
 0x592   :  { %1480 = vmatpush1.bf16.msra.mxu0 %v5988_v60 }
 0x593   :  { %1481 = vmatprep.subr.bf16.mxu0 %v5991_v63  ;;  %4337 = vmatpush3.bf16.msra.mxu1 %v6210_v61 }
 0x594   :  { %4338 = vmatprep.subr.bf16.mxu1 %v6213_v44 }
 0x596   :  { %1482 = vmatpush1.bf16.msra.mxu0 %v5996_v38 }
 0x597   :  { %1483 = vmatprep.subr.bf16.mxu0 %v5999_v2  ;;  %4339 = vmatpush3.bf16.msra.mxu1 %v6218_v19 }
 0x598   :  { %4340 = vmatprep.subr.bf16.mxu1 %v6221_v3 }
 0x59a   :  { %1484 = vmatpush1.bf16.msra.mxu0 %v6004_v4 }
 0x59b   :  { %1485 = vmatprep.subr.bf16.mxu0 %v6007_v6  ;;  %4341 = vmatpush3.bf16.msra.mxu1 %v6226_v58 }
 0x59c   :  { %4342 = vmatprep.subr.bf16.mxu1 %v6229_v56 }
 0x59e   :  { %1486 = vmatpush1.bf16.msra.mxu0 %v6012_v8 }
 0x59f   :  { %1487 = vmatprep.subr.bf16.mxu0 %v6015_v10  ;;  %4343 = vmatpush3.bf16.msra.mxu1 %v6234_v57 }
 0x5a0   :  { %4344 = vmatprep.subr.bf16.mxu1 %v6237_v52 }
 0x5a2   :  { %1488 = vmatpush1.bf16.msra.mxu0 %v6020_v12 }
 0x5a3   :  { %1489 = vmatprep.subr.bf16.mxu0 %v6023_v14  ;;  %4345 = vmatpush3.bf16.msra.mxu1 %v6242_v54 }
 0x5a4   :  { %4346 = vmatprep.subr.bf16.mxu1 %v6245_v20 }
 0x5a6   :  { %1490 = vmatpush1.bf16.msra.mxu0 %v6028_v16 }
 0x5a7   :  { %4354 = vmatprep.subr.bf16.mxu0 %v6249_v26  ;;  %4347 = vmatpush3.bf16.msra.mxu1 %v6252_v39  ;;  %v6270_v39 = vld [vmem:[#allocation7 + $0xa8] sm:$0xff]  }
 0x5a8   :  { %4376 = vmatprep.subr.bf16.mxu1 %v6255_v41  ;;  %8483 = vst [vmem:[#allocation28_spill] sm:$0xff] %v6270_v39  ;;  %v8494_v41 = vmov -0.0157  }
 0x5a9   :  { %1508 = vmatmul.mubr.bf16.vlgmr.msra.gmra.mxu0 %v1392_v34  ;;  %v6273_v34 = vld [vmem:[#allocation7 + $0xe0] sm:$0xff]  }
 0x5aa   :  { %4355 = vmatpush3.bf16.msra.mxu0 %v6258_v30  ;;  %8484 = vst [vmem:[#allocation34_spill] sm:$0xff] %v6273_v34  ;;  %v6276_v30 = vld [vmem:[#allocation7 + $0xa0] sm:$0xff]  }
 0x5ab   :  { %4356 = vmatprep.subr.bf16.mxu0 %v6261_v25  ;;  %8485 = vst [vmem:[#allocation29_spill] sm:$0xff] %v6276_v30  ;;  %v6279_v25 = vld [vmem:[#allocation7 + $0xd8] sm:$0xff]  }
 0x5ac   :  { %8486 = vst [vmem:[#allocation31_spill] sm:$0xff] %v6279_v25 }
 0x5ae   :  { %4357 = vmatpush3.bf16.msra.mxu0 %v6264_v32  ;;  %v6282_v32 = vld [vmem:[#allocation7 + $0x98] sm:$0xff]  }
 0x5af   :  { %4358 = vmatprep.subr.bf16.mxu0 %v6267_v29  ;;  %8487 = vst [vmem:[#allocation32_spill] sm:$0xff] %v6282_v32  ;;  %v6285_v29 = vld [vmem:[#allocation7 + $0xd0] sm:$0xff]  }
 0x5b0   :  { %8488 = vst [vmem:[#allocation37_spill] sm:$0xff] %v6285_v29 }
 0x5b2   :  { %4359 = vmatpush3.bf16.msra.mxu0 %v6270_v39  ;;  %v6288_v39 = vld [vmem:[#allocation7 + $0x90] sm:$0xff]  }
 0x5b3   :  { %4360 = vmatprep.subr.bf16.mxu0 %v6273_v34  ;;  %8489 = vst [vmem:[#allocation66_spill] sm:$0xff] %v6288_v39  ;;  %v6291_v34 = vld [vmem:[#allocation7 + $0xc8] sm:$0xff]  }
 0x5b4   :  { %8490 = vst [vmem:[#allocation67_spill] sm:$0xff] %v6291_v34 }
 0x5b6   :  { %4361 = vmatpush3.bf16.msra.mxu0 %v6276_v30  ;;  %v6294_v30 = vld [vmem:[#allocation7 + $0x88] sm:$0xff]  }
 0x5b7   :  { %4362 = vmatprep.subr.bf16.mxu0 %v6279_v25  ;;  %8491 = vst [vmem:[#allocation68_spill] sm:$0xff] %v6294_v30  ;;  %v6297_v25 = vld [vmem:[#allocation7 + $0xc0] sm:$0xff]  }
 0x5b8   :  { %8492 = vst [vmem:[#allocation69_spill] sm:$0xff] %v6297_v25 }
 0x5ba   :  { %4363 = vmatpush3.bf16.msra.mxu0 %v6282_v32  ;;  %v6300_v32 = vld [vmem:[#allocation7 + $0x80] sm:$0xff]  }
 0x5bb   :  { %4364 = vmatprep.subr.bf16.mxu0 %v6285_v29  ;;  %8493 = vst [vmem:[#allocation70_spill] sm:$0xff] %v6300_v32 }
 0x5be   :  { %4365 = vmatpush3.bf16.msra.mxu0 %v6288_v39 }
 0x5bf   :  { %4366 = vmatprep.subr.bf16.mxu0 %v6291_v34 }
 0x5c2   :  { %4367 = vmatpush3.bf16.msra.mxu0 %v6294_v30 }
 0x5c3   :  { %4368 = vmatprep.subr.bf16.mxu0 %v6297_v25 }
 0x5c6   :  { %4369 = vmatpush3.bf16.msra.mxu0 %v6300_v32 }
 0x5c7   :  { %1683 = vmatprep.subr.bf16.mxu0 %v5867_v43 }
 0x649   :  { %v1427_v29 = vpop.f32.mrf.mxu0  ;;  %v1468_v39 = vpop.f32.mrf.mxu1 }
 0x64a   :  { %vm1516_vm7 = vcmp.ge.f32.partialorder %v1427_v29, 0.0  ;;  %vm1518_vm8 = vcmp.ge.f32.partialorder %v1468_v39, 0.0 }
 0x64b   :  { %v1522_v34 = vsel %vm1516_vm7, 0.0157, %v8494_v41  ;;  %v1524_v26 = vsel %vm1518_vm8, 0.0157, %v8494_v41  ;;  %v1429_v16 = vpop.f32.mrf.mxu0  ;;  %v1470_v30 = vpop.f32.mrf.mxu1 }
 0x64c   :  { %v1528_v20 = vadd.f32 %v1522_v34, %v6090_v7  ;;  %v1530_v25 = vadd.f32 %v1524_v26, %v6093_v9  ;;  %vm1517_vm9 = vcmp.ge.f32.partialorder %v1429_v16, 0.0  ;;  %vm1519_vm10 = vcmp.ge.f32.partialorder %v1470_v30, 0.0  ;;  %v6340_v30 = vld [vmem:[#allocation7 + $0x170] sm:$0xff]   ;;  %v6361_v34 = vld [vmem:[#allocation7 + $0x120] sm:$0xff]  }
 0x64d   :  { %v1523_v32 = vsel %vm1517_vm9, 0.0157, %v8494_v41  ;;  %v1525_v43 = vsel %vm1519_vm10, 0.0157, %v8494_v41  ;;  %v1431_v54 = vpop.f32.mrf.mxu0  ;;  %v1472_v14 = vpop.f32.mrf.mxu1  ;;  %8495 = vst [vmem:[#allocation71_spill] sm:$0xff] %v6340_v30  ;;  %8500 = vst [vmem:[#allocation76_spill] sm:$0xff] %v6361_v34 }
 0x64e   :  { %v1534_v39 = vmax.f32 %v1528_v20, %v6059_v13  ;;  %v1536_v29 = vmax.f32 %v1530_v25, %v6067_v22  ;;  %v1529_v12 = vadd.f32 %v1523_v32, %v6096_v11  ;;  %v1531_v52 = vadd.f32 %v1525_v43, %v6099_v17  ;;  %v6345_v25 = vld [vmem:[#allocation7 + $0x130] sm:$0xff]   ;;  %v6349_v32 = vld [vmem:[#allocation7 + $0x168] sm:$0xff]  }
 0x64f   :  { %v1432_v57 = vpop.f32.mrf.mxu0  ;;  %v1473_v7 = vpop.f32.mrf.mxu1  ;;  %8496 = vst [vmem:[#allocation72_spill] sm:$0xff] %v6345_v25  ;;  %8497 = vst [vmem:[#allocation73_spill] sm:$0xff] %v6349_v32 }
 0x650   :  { %v1535_v9 = vmax.f32 %v1529_v12, %v6061_v15  ;;  %v1537_v16 = vmax.f32 %v1531_v52, %v6071_v24  ;;  %v6317_v26 = vmin.f32 %v1534_v39, %v6065_v21  ;;  %v6320_v54 = vmin.f32 %v1536_v29, %v6077_v35  ;;  %v6336_v52 = vld [vmem:[#allocation7 + $0x138] sm:$0xff]   ;;  %v6384_v7 = vld [vmem:[#allocation7 + $0x148] sm:$0xff]  }
 0x651   :  { %8505 = vst [vmem:[#allocation81_spill] sm:$0xff] %v6384_v7 }
 0x652   :  { %v6323_v14 = vmin.f32 %v1535_v9, %v6069_v23  ;;  %v6326_v20 = vmin.f32 %v1537_v16, %v6079_v49  ;;  %v1546_v17 = vpack.c.bf16 %v6317_v26, %v6317_v26  ;;  %v1548_v57 = vpack.c.bf16 %v6320_v54, %v6320_v54  ;;  %v8507_v9 = vld [vmem:[#allocation30_spill] sm:$0xff] }
 0x654   :  { %v1547_v11 = vpack.c.bf16 %v6323_v14, %v6323_v14  ;;  %v1549_v12 = vpack.c.bf16 %v6326_v20, %v6326_v20 }
 0x656   :  { %1584 = vmatprep.mubr.bf16.mxu1 %v1547_v11  ;;  %1624 = vmatprep.mubr.bf16.mxu0 %v1549_v12  ;;  %v8508_v11 = vld [vmem:[#allocation21_spill] sm:$0xff] }
 0x657   :  { %1585 = vmatmul.mubr.bf16.vlgmr.msra.gmra.mxu1 %v1546_v17  ;;  %1625 = vmatmul.mubr.bf16.vlgmr.msra.gmra.mxu0 %v1548_v57  ;;  %v8509_v17 = vld [vmem:[#allocation18_spill] sm:$0xff] }
 0x658   :  { %4377 = vmatpush3.bf16.msra.mxu1 %v6336_v52  ;;  %1684 = vmatpush1.bf16.msra.mxu0 %v5869_v45  ;;  %v6353_v45 = vld [vmem:[#allocation7 + $0x128] sm:$0xff]  }
 0x659   :  { %4378 = vmatprep.subr.bf16.mxu1 %v6340_v30  ;;  %1685 = vmatprep.subr.bf16.mxu0 %v5876_v40  ;;  %8498 = vst [vmem:[#allocation74_spill] sm:$0xff] %v6353_v45  ;;  %v6357_v40 = vld [vmem:[#allocation7 + $0x160] sm:$0xff]  }
 0x65a   :  { %1715 = vmatprep.mubr.bf16.mxu0 %v8419_v37  ;;  %8499 = vst [vmem:[#allocation75_spill] sm:$0xff] %v6357_v40 }
 0x65c   :  { %4379 = vmatpush3.bf16.msra.mxu1 %v6345_v25  ;;  %1686 = vmatpush1.bf16.msra.mxu0 %v5884_v59  ;;  %v6365_v59 = vld [vmem:[#allocation7 + $0x158] sm:$0xff]  }
 0x65d   :  { %4380 = vmatprep.subr.bf16.mxu1 %v6349_v32  ;;  %1687 = vmatprep.subr.bf16.mxu0 %v5890_v50  ;;  %8501 = vst [vmem:[#allocation77_spill] sm:$0xff] %v6365_v59  ;;  %v6369_v50 = vld [vmem:[#allocation7 + $0x118] sm:$0xff]  }
 0x65e   :  { %8502 = vst [vmem:[#allocation78_spill] sm:$0xff] %v6369_v50 }
 0x660   :  { %4381 = vmatpush3.bf16.msra.mxu1 %v6353_v45  ;;  %1688 = vmatpush1.bf16.msra.mxu0 %v5898_v47 }
 0x661   :  { %4382 = vmatprep.subr.bf16.mxu1 %v6357_v40  ;;  %1689 = vmatprep.subr.bf16.mxu0 %v5904_v48  ;;  %v6373_v48 = vld [vmem:[#allocation7 + $0x150] sm:$0xff]  }
 0x662   :  { %8503 = vst [vmem:[#allocation79_spill] sm:$0xff] %v6373_v48 }
 0x664   :  { %4383 = vmatpush3.bf16.msra.mxu1 %v6361_v34  ;;  %1690 = vmatpush1.bf16.msra.mxu0 %v5910_v51 }
 0x665   :  { %4384 = vmatprep.subr.bf16.mxu1 %v6365_v59  ;;  %1691 = vmatprep.subr.bf16.mxu0 %v5916_v42  ;;  %v6379_v42 = vld [vmem:[#allocation7 + $0x110] sm:$0xff]  }
 0x666   :  { %8504 = vst [vmem:[#allocation80_spill] sm:$0xff] %v6379_v42 }
 0x668   :  { %4385 = vmatpush3.bf16.msra.mxu1 %v6369_v50  ;;  %1692 = vmatpush1.bf16.msra.mxu0 %v8434_v55 }
 0x669   :  { %v1509_v47 = vpop.f32.mrf.mxu0  ;;  %4386 = vmatprep.subr.bf16.mxu1 %v6373_v48  ;;  %1693 = vmatprep.subr.bf16.mxu0 %v8436_v53  ;;  %v8506_v53 = vld [vmem:[#allocation54_spill] sm:$0xff] }
 0x66a   :  { %vm1520_vm11 = vcmp.ge.f32.partialorder %v1509_v47, 0.0  ;;  %v6391_v47 = vld [vmem:[#allocation7 + $0x108] sm:$0xff]  }
 0x66b   :  { %v1526_v51 = vsel %vm1520_vm11, 0.0157, %v8494_v41  ;;  %v1511_v43 = vpop.f32.mrf.mxu0  ;;  %8510 = vst [vmem:[#allocation54_spill] sm:$0xff] %v6391_v47 }
 0x66c   :  { %v1532_v39 = vadd.f32 %v1526_v51, %v6155_v5  ;;  %vm1521_vm12 = vcmp.ge.f32.partialorder %v1511_v43, 0.0  ;;  %4387 = vmatpush3.bf16.msra.mxu1 %v6379_v42  ;;  %1694 = vmatpush1.bf16.msra.mxu0 %v8441_v27  ;;  %v8511_v27 = vld [vmem:[#allocation56_spill] sm:$0xff]  ;;  %v8512_v51 = vld [vmem:[#allocation19_spill] sm:$0xff] }
 0x66d   :  { %v1527_v55 = vsel %vm1521_vm12, 0.0157, %v8494_v41  ;;  %v1513_v29 = vpop.f32.mrf.mxu0  ;;  %4388 = vmatprep.subr.bf16.mxu1 %v6384_v7  ;;  %1695 = vmatprep.subr.bf16.mxu0 %v8506_v53  ;;  %v8515_v53 = vld [vmem:[#allocation58_spill] sm:$0xff] }
 0x66e   :  { %v1538_v16 = vmax.f32 %v1532_v39, %v8507_v9  ;;  %v1533_v5 = vadd.f32 %v1527_v55, %v8508_v11  ;;  %v6398_v29 = vld [vmem:[#allocation7 + $0x140] sm:$0xff]  }
 0x66f   :  { %v1514_v12 = vpop.f32.mrf.mxu0  ;;  %8514 = vst [vmem:[#allocation56_spill] sm:$0xff] %v6398_v29  ;;  %v8516_v39 = vld [vmem:[#allocation20_spill] sm:$0xff] }
 0x670   :  { %v1539_v57 = vmax.f32 %v1533_v5, %v8509_v17  ;;  %4389 = vmatpush3.bf16.msra.mxu1 %v6391_v47  ;;  %1696 = vmatpush1.bf16.msra.mxu0 %v8511_v27  ;;  %v6396_v43 = vmin.f32 %v1538_v16, %v8512_v51  ;;  %v6405_v11 = vld [vmem:[#allocation7 + $0x100] sm:$0xff]   ;;  %v8520_v27 = vld [vmem:[#allocation39_spill] sm:$0xff]  ;;  %v8527_v51 = vld [vmem:[#allocation45_spill] sm:$0xff] }
 0x671   :  { %4390 = vmatprep.subr.bf16.mxu1 %v6398_v29  ;;  %1697 = vmatprep.subr.bf16.mxu0 %v8515_v53  ;;  %8518 = vst [vmem:[#allocation82_spill] sm:$0xff] %v6405_v11  ;;  %v8519_v12 = vld [vmem:[#allocation60_spill] sm:$0xff]  ;;  %v8521_v29 = vld [vmem:[#allocation62_spill] sm:$0xff]  ;;  %v8523_v53 = vld [vmem:[#allocation41_spill] sm:$0xff] }
 0x672   :  { %8513 = vst [vmem:[#allocation21_spill] sm:$0xff] %v6396_v43  ;;  %v6403_v55 = vmin.f32 %v1539_v57, %v8516_v39  ;;  %v1550_v16 = vpack.c.bf16 %v6396_v43, %v6396_v43  ;;  %v8522_v57 = vld [vmem:[#allocation40_spill] sm:$0xff]  ;;  %v8525_v39 = vld [vmem:[#allocation43_spill] sm:$0xff]  ;;  %v8528_v47 = vld [vmem:[#allocation46_spill] sm:$0xff] }
 0x674   :  { %8517 = vst [vmem:[#allocation58_spill] sm:$0xff] %v6403_v55  ;;  %4391 = vmatpush3.bf16.msra.mxu1 %v6405_v11  ;;  %v1551_v5 = vpack.c.bf16 %v6403_v55, %v6403_v55  ;;  %1698 = vmatpush1.bf16.msra.mxu0 %v8519_v12  ;;  %v8524_v11 = vld [vmem:[#allocation42_spill] sm:$0xff]  ;;  %v8526_v12 = vld [vmem:[#allocation44_spill] sm:$0xff] }
 0x675   :  { %1724 = vmatprep.subr.bf16.mxu1 %v8520_v27  ;;  %1765 = vmatprep.subr.bf16.mxu0 %v8521_v29  ;;  %v8529_v27 = vld [vmem:[#allocation48_spill] sm:$0xff]  ;;  %v8530_v29 = vld [vmem:[#allocation49_spill] sm:$0xff] }
 0x676   :  { %1664 = vmatprep.mubr.bf16.mxu1 %v1551_v5  ;;  %v8531_v5 = vld [vmem:[#allocation51_spill] sm:$0xff] }
 0x677   :  { %1665 = vmatmul.mubr.bf16.vlgmr.msra.gmra.mxu1 %v1550_v16  ;;  %v8532_v16 = vld [vmem:[#allocation53_spill] sm:$0xff] }
 0x678   :  { %1725 = vmatpush1.bf16.msra.mxu1 %v8522_v57  ;;  %1756 = vmatprep.mubr.bf16.mxu1 %v8419_v37  ;;  %v8533_v57 = vld [vmem:[#allocation55_spill] sm:$0xff] }
 0x679   :  { %1726 = vmatprep.subr.bf16.mxu1 %v8523_v53  ;;  %v8534_v53 = vld [vmem:[#allocation57_spill] sm:$0xff] }
 0x67c   :  { %1727 = vmatpush1.bf16.msra.mxu1 %v8524_v11  ;;  %v8535_v11 = vld [vmem:[#allocation59_spill] sm:$0xff] }
 0x67d   :  { %1728 = vmatprep.subr.bf16.mxu1 %v8525_v39  ;;  %v8536_v39 = vld [vmem:[#allocation61_spill] sm:$0xff] }
 0x680   :  { %1729 = vmatpush1.bf16.msra.mxu1 %v8526_v12  ;;  %v8537_v12 = vld [vmem:[#allocation22_spill] sm:$0xff] }
 0x681   :  { %1730 = vmatprep.subr.bf16.mxu1 %v8527_v51 }
 0x684   :  { %1731 = vmatpush1.bf16.msra.mxu1 %v8528_v47 }
 0x685   :  { %1732 = vmatprep.subr.bf16.mxu1 %v8529_v27 }
 0x688   :  { %1733 = vmatpush1.bf16.msra.mxu1 %v8530_v29 }
 0x689   :  { %1734 = vmatprep.subr.bf16.mxu1 %v8531_v5 }
 0x68c   :  { %1735 = vmatpush1.bf16.msra.mxu1 %v8532_v16  ;;  %v6435_v16 = vld [vmem:[%s7929_s5] ss:$0 sm:$0xff] }
 0x68d   :  { %1736 = vmatprep.subr.bf16.mxu1 %v8533_v57 }
 0x690   :  { %1737 = vmatpush1.bf16.msra.mxu1 %v8534_v53 }
 0x691   :  { %1738 = vmatprep.subr.bf16.mxu1 %v8535_v11 }
 0x694   :  { %1739 = vmatpush1.bf16.msra.mxu1 %v8536_v39 }
 0x695   :  { %4398 = vmatprep.subr.bf16.mxu1 %v8537_v12 }
 0x717   :  { %v4348_v51 = vpop.f32.mrf.mxu1  ;;  %v4370_v47 = vpop.f32.mrf.mxu0 }
 0x719   :  { %v4349_v17 = vpop.f32.mrf.mxu1  ;;  %v4371_v27 = vpop.f32.mrf.mxu0 }
 0x71a   :  { %v4350_v7 = vadd.f32 %v4349_v17, %v4348_v51  ;;  %v4372_v11 = vadd.f32 %v4371_v27, %v4370_v47  ;;  %v8556_v27 = vld [vmem:[#allocation32_spill] sm:$0xff] }
 0x71b   :  { %v4351_v55 = vpop.f32.mrf.mxu1  ;;  %v4373_v29 = vpop.f32.mrf.mxu0 }
 0x71c   :  { %v1587_v57 = vadd.f32 %v6435_v16, %v4350_v7 }
 0x71d   :  { %v4352_v9 = vpop.f32.mrf.mxu1  ;;  %v4374_v5 = vpop.f32.mrf.mxu0 }
 0x71e   :  { %v1627_v12 = vadd.f32 %v4372_v11, %v1587_v57  ;;  %v8557_v57 = vld [vmem:[#allocation37_spill] sm:$0xff]  ;;  %v8559_v11 = vld [vmem:[#allocation67_spill] sm:$0xff] }
 0x737   :  { %v4392_v53 = vpop.f32.mrf.mxu1 }
 0x739   :  { %v4393_v39 = vpop.f32.mrf.mxu1 }
 0x73a   :  { %v4394_v42 = vadd.f32 %v4393_v39, %v4392_v53  ;;  %v8558_v53 = vld [vmem:[#allocation66_spill] sm:$0xff]  ;;  %v8560_v39 = vld [vmem:[#allocation68_spill] sm:$0xff] }
 0x73b   :  { %v4395_v43 = vpop.f32.mrf.mxu1 }
 0x73c   :  { %v1667_v48 = vadd.f32 %v4394_v42, %v1627_v12  ;;  %v8553_v42 = vld [vmem:[#allocation34_spill] sm:$0xff]  ;;  %v8554_v43 = vld [vmem:[#allocation29_spill] sm:$0xff]  ;;  %v8555_v12 = vld [vmem:[#allocation31_spill] sm:$0xff] }
 0x73d   :  { %v4396_v50 = vpop.f32.mrf.mxu1 }
 0x73e   :  { %1672 = vmax.xlane.f32.xlu0 %v1667_v48  ;;  %v8551_v50 = vld [vmem:[#allocation52_spill] sm:$0xff] }
 0x7c7   :  { %v1673_v55 = vpop.xlane.xlu0 %1672 }
 0x7c8   :  { %v1674_v9 = vsub.f32 %v1667_v48, %v1673_v55  ;;  %v8552_v48 = vld [vmem:[#allocation28_spill] sm:$0xff]  ;;  %v8561_v55 = vld [vmem:[#allocation69_spill] sm:$0xff] }
 0x7ca   :  { %v1675_v29 = vmul.f32 1.442695, %v1674_v9  ;;  %v8562_v9 = vld [vmem:[#allocation70_spill] sm:$0xff] }
 0x7cc   :  { %5075 = vpow2.f32 %v1675_v29  ;;  %v6487_v29 = vld [vmem:[#allocation8 + $0x154] ss:$24 sps:$4 sm:$0xff]  }
 0x7cd   :  { %8563 = vst [vmem:[#allocation60_spill] sm:$0xff] %v6487_v29 }
 0x7d9   :  { %v5076_v17 = vpop.eup %5075 }
 0x7da   :  { %1677 = vadd.xlane.f32.xlu0 %v5076_v17 }
 0x863   :  { %v1678_v51 = vpop.xlane.xlu0 %1677 }
 0x864   :  { %5077 = vrcp.f32 %v1678_v51 }
 0x871   :  { %v5078_v5 = vpop.eup %5077 }
 0x872   :  { %v1680_v59 = vmul.f32 %v5078_v5, %v5076_v17 }
 0x874   :  { %v1681_v7 = vsub.f32 %v1680_v59, %v5971_v33  ;;  %v8550_v59 = vld [vmem:[#allocation27_spill] sm:$0xff] }
 0x876   :  { %v1682_v47 = vpack.c.bf16 %v1681_v7, %v1681_v7 }
 0x878   :  { %1716 = vmatmul.mubr.bf16.vlgmr.msra.gmra.mxu0 %v1682_v47  ;;  %1757 = vmatmul.mubr.bf16.vlgmr.msra.gmra.mxu1 %v1682_v47 }
 0x879   :  { %1766 = vmatpush1.bf16.msra.mxu0 %v5974_v36  ;;  %1797 = vmatprep.mubr.bf16.mxu0 %v8419_v37  ;;  %v8539_v36 = vld [vmem:[#allocation24_spill] sm:$0xff] }
 0x87a   :  { %1767 = vmatprep.subr.bf16.mxu0 %v5976_v62  ;;  %4399 = vmatpush3.bf16.msra.mxu1 %v6194_v18  ;;  %v8538_v62 = vld [vmem:[#allocation23_spill] sm:$0xff] }
 0x87b   :  { %4400 = vmatprep.subr.bf16.mxu1 %v6197_v1 }
 0x87d   :  { %1768 = vmatpush1.bf16.msra.mxu0 %v5979_v0  ;;  %v8540_v0 = vld [vmem:[#allocation63_spill] sm:$0xff] }
 0x87e   :  { %1769 = vmatprep.subr.bf16.mxu0 %v5983_v46  ;;  %4401 = vmatpush3.bf16.msra.mxu1 %v6202_v28  ;;  %v8541_v46 = vld [vmem:[#allocation64_spill] sm:$0xff] }
 0x87f   :  { %4402 = vmatprep.subr.bf16.mxu1 %v6205_v31 }
 0x881   :  { %1770 = vmatpush1.bf16.msra.mxu0 %v5988_v60  ;;  %v8542_v60 = vld [vmem:[#allocation35_spill] sm:$0xff] }
 0x882   :  { %1771 = vmatprep.subr.bf16.mxu0 %v5991_v63  ;;  %4403 = vmatpush3.bf16.msra.mxu1 %v6210_v61  ;;  %v8543_v63 = vld [vmem:[#allocation33_spill] sm:$0xff] }
 0x883   :  { %4404 = vmatprep.subr.bf16.mxu1 %v6213_v44 }
 0x885   :  { %1772 = vmatpush1.bf16.msra.mxu0 %v5996_v38  ;;  %v8544_v38 = vld [vmem:[#allocation65_spill] sm:$0xff] }
 0x886   :  { %1773 = vmatprep.subr.bf16.mxu0 %v5999_v2  ;;  %4405 = vmatpush3.bf16.msra.mxu1 %v6218_v19  ;;  %v8545_v2 = vld [vmem:[#allocation25_spill] sm:$0xff] }
 0x887   :  { %4406 = vmatprep.subr.bf16.mxu1 %v6221_v3 }
 0x889   :  { %1774 = vmatpush1.bf16.msra.mxu0 %v6004_v4  ;;  %v8546_v4 = vld [vmem:[#allocation47_spill] sm:$0xff] }
 0x88a   :  { %1775 = vmatprep.subr.bf16.mxu0 %v6007_v6  ;;  %4407 = vmatpush3.bf16.msra.mxu1 %v6226_v58  ;;  %v8547_v6 = vld [vmem:[#allocation26_spill] sm:$0xff] }
 0x88b   :  { %4408 = vmatprep.subr.bf16.mxu1 %v6229_v56 }
 0x88d   :  { %1776 = vmatpush1.bf16.msra.mxu0 %v6012_v8  ;;  %v8548_v8 = vld [vmem:[#allocation50_spill] sm:$0xff] }
 0x88e   :  { %1777 = vmatprep.subr.bf16.mxu0 %v6015_v10  ;;  %4409 = vmatpush3.bf16.msra.mxu1 %v8538_v62  ;;  %v8549_v10 = vld [vmem:[#allocation36_spill] sm:$0xff] }
 0x88f   :  { %4410 = vmatprep.subr.bf16.mxu1 %v8539_v36 }
 0x891   :  { %1778 = vmatpush1.bf16.msra.mxu0 %v8540_v0 }
 0x892   :  { %1779 = vmatprep.subr.bf16.mxu0 %v8541_v46  ;;  %4411 = vmatpush3.bf16.msra.mxu1 %v8542_v60 }
 0x893   :  { %4412 = vmatprep.subr.bf16.mxu1 %v8543_v63 }
 0x895   :  { %1780 = vmatpush1.bf16.msra.mxu0 %v8544_v38 }
 0x896   :  { %4420 = vmatprep.subr.bf16.mxu0 %v8545_v2  ;;  %4413 = vmatpush3.bf16.msra.mxu1 %v8546_v4 }
 0x897   :  { %4442 = vmatprep.subr.bf16.mxu1 %v8547_v6 }
 0x898   :  { %1798 = vmatmul.mubr.bf16.vlgmr.msra.gmra.mxu0 %v1682_v47 }
 0x899   :  { %4421 = vmatpush3.bf16.msra.mxu0 %v8548_v8 }
 0x89a   :  { %4422 = vmatprep.subr.bf16.mxu0 %v8549_v10 }
 0x89d   :  { %4423 = vmatpush3.bf16.msra.mxu0 %v8550_v59 }
 0x89e   :  { %4424 = vmatprep.subr.bf16.mxu0 %v8551_v50 }
 0x8a1   :  { %4425 = vmatpush3.bf16.msra.mxu0 %v8552_v48 }
 0x8a2   :  { %4426 = vmatprep.subr.bf16.mxu0 %v8553_v42 }
 0x8a5   :  { %4427 = vmatpush3.bf16.msra.mxu0 %v8554_v43 }
 0x8a6   :  { %4428 = vmatprep.subr.bf16.mxu0 %v8555_v12 }
 0x8a9   :  { %4429 = vmatpush3.bf16.msra.mxu0 %v8556_v27 }
 0x8aa   :  { %4430 = vmatprep.subr.bf16.mxu0 %v8557_v57 }
 0x8ad   :  { %4431 = vmatpush3.bf16.msra.mxu0 %v8558_v53 }
 0x8ae   :  { %4432 = vmatprep.subr.bf16.mxu0 %v8559_v11 }
 0x8b1   :  { %4433 = vmatpush3.bf16.msra.mxu0 %v8560_v39 }
 0x8b2   :  { %4434 = vmatprep.subr.bf16.mxu0 %v8561_v55 }
 0x8b5   :  { %4435 = vmatpush3.bf16.msra.mxu0 %v8562_v9 }
 0x8b6   :  { %1973 = vmatprep.subr.bf16.mxu0 %v6487_v29 }
 0x938   :  { %v1717_v17 = vpop.f32.mrf.mxu0  ;;  %v1758_v51 = vpop.f32.mrf.mxu1 }
 0x939   :  { %vm1806_vm13 = vcmp.ge.f32.partialorder %v1717_v17, 0.0  ;;  %vm1808_vm14 = vcmp.ge.f32.partialorder %v1758_v51, 0.0 }
 0x93a   :  { %v1812_v5 = vsel %vm1806_vm13, 0.0157, %v8494_v41  ;;  %v1814_v7 = vsel %vm1808_vm14, 0.0157, %v8494_v41  ;;  %v1719_v47 = vpop.f32.mrf.mxu0  ;;  %v1760_v0 = vpop.f32.mrf.mxu1 }
 0x93b   :  { %v1818_v46 = vadd.f32 %v1812_v5, %v6317_v26  ;;  %v1820_v38 = vadd.f32 %v1814_v7, %v6320_v54  ;;  %vm1807_vm15 = vcmp.ge.f32.partialorder %v1719_v47, 0.0  ;;  %vm1809_vm0 = vcmp.ge.f32.partialorder %v1760_v0, 0.0  ;;  %v6536_v0 = vld [vmem:[#allocation8 + $0xf4] ss:$24 sps:$4 sm:$0xff]  }
 0x93c   :  { %v1813_v9 = vsel %vm1807_vm15, 0.0157, %v8494_v41  ;;  %v1815_v29 = vsel %vm1809_vm0, 0.0157, %v8494_v41  ;;  %v1721_v55 = vpop.f32.mrf.mxu0  ;;  %v1762_v39 = vpop.f32.mrf.mxu1  ;;  %8567 = vst [vmem:[#allocation41_spill] sm:$0xff] %v6536_v0 }
 0x93d   :  { %v1824_v17 = vmax.f32 %v1818_v46, %v6059_v13  ;;  %v1826_v51 = vmax.f32 %v1820_v38, %v6067_v22  ;;  %v1819_v11 = vadd.f32 %v1813_v9, %v6323_v14  ;;  %v1821_v53 = vadd.f32 %v1815_v29, %v6326_v20  ;;  %v6527_v9 = vld [vmem:[#allocation8 + $0x124] ss:$24 sps:$4 sm:$0xff]   ;;  %v6532_v29 = vld [vmem:[#allocation8 + $0x120] ss:$24 sps:$4 sm:$0xff]   ;;  %v6540_v46 = vld [vmem:[#allocation8 + $0xf0] ss:$24 sps:$4 sm:$0xff]  }
 0x93e   :  { %v1722_v57 = vpop.f32.mrf.mxu0  ;;  %v1763_v26 = vpop.f32.mrf.mxu1  ;;  %8565 = vst [vmem:[#allocation62_spill] sm:$0xff] %v6527_v9  ;;  %8566 = vst [vmem:[#allocation40_spill] sm:$0xff] %v6532_v29  ;;  %v6544_v38 = vld [vmem:[#allocation8 + $0xc4] ss:$24 sps:$4 sm:$0xff]  }
 0x93f   :  { %v1825_v54 = vmax.f32 %v1819_v11, %v6061_v15  ;;  %v1827_v5 = vmax.f32 %v1821_v53, %v6071_v24  ;;  %v6503_v7 = vmin.f32 %v1824_v17, %v6065_v21  ;;  %v6506_v55 = vmin.f32 %v1826_v51, %v6077_v35  ;;  %v6523_v11 = vld [vmem:[#allocation8 + $0x150] ss:$24 sps:$4 sm:$0xff]   ;;  %8568 = vst [vmem:[#allocation42_spill] sm:$0xff] %v6540_v46  ;;  %v6548_v17 = vld [vmem:[#allocation8 + $0xc0] ss:$24 sps:$4 sm:$0xff]  }
 0x940   :  { %8564 = vst [vmem:[#allocation39_spill] sm:$0xff] %v6523_v11  ;;  %8569 = vst [vmem:[#allocation43_spill] sm:$0xff] %v6544_v38  ;;  %v8571_v51 = vld [vmem:[#allocation77_spill] sm:$0xff] }
 0x941   :  { %v6509_v39 = vmin.f32 %v1825_v54, %v6069_v23  ;;  %v6512_v47 = vmin.f32 %v1827_v5, %v6079_v49  ;;  %v1836_v57 = vpack.c.bf16 %v6503_v7, %v6503_v7  ;;  %v1838_v53 = vpack.c.bf16 %v6506_v55, %v6506_v55  ;;  %8570 = vst [vmem:[#allocation44_spill] sm:$0xff] %v6548_v17  ;;  %v6552_v26 = vld [vmem:[#allocation8 + $0x94] ss:$24 sps:$4 sm:$0xff]   ;;  %v6556_v5 = vld [vmem:[#allocation8 + $0x90] ss:$24 sps:$4 sm:$0xff]  }
 0x942   :  { %8572 = vst [vmem:[#allocation45_spill] sm:$0xff] %v6552_v26  ;;  %v8573_v54 = vld [vmem:[#allocation78_spill] sm:$0xff]  ;;  %8574 = vst [vmem:[#allocation46_spill] sm:$0xff] %v6556_v5 }
 0x943   :  { %v1837_v14 = vpack.c.bf16 %v6509_v39, %v6509_v39  ;;  %v1839_v20 = vpack.c.bf16 %v6512_v47, %v6512_v47 }
 0x945   :  { %1874 = vmatprep.mubr.bf16.mxu1 %v1837_v14  ;;  %1914 = vmatprep.mubr.bf16.mxu0 %v1839_v20  ;;  %v8575_v20 = vld [vmem:[#allocation79_spill] sm:$0xff] }
 0x946   :  { %1875 = vmatmul.mubr.bf16.vlgmr.msra.gmra.mxu1 %v1836_v57  ;;  %1915 = vmatmul.mubr.bf16.vlgmr.msra.gmra.mxu0 %v1838_v53  ;;  %v6560_v57 = vld [vmem:[#allocation8 + $0x64] ss:$24 sps:$4 sm:$0xff]  }
 0x947   :  { %4443 = vmatpush3.bf16.msra.mxu1 %v6336_v52  ;;  %1974 = vmatpush1.bf16.msra.mxu0 %v6523_v11  ;;  %8576 = vst [vmem:[#allocation48_spill] sm:$0xff] %v6560_v57 }
 0x948   :  { %4444 = vmatprep.subr.bf16.mxu1 %v6340_v30  ;;  %1975 = vmatprep.subr.bf16.mxu0 %v6527_v9 }
 0x949   :  { %2005 = vmatprep.mubr.bf16.mxu0 %v8419_v37 }
 0x94b   :  { %4445 = vmatpush3.bf16.msra.mxu1 %v6345_v25  ;;  %1976 = vmatpush1.bf16.msra.mxu0 %v6532_v29 }
 0x94c   :  { %4446 = vmatprep.subr.bf16.mxu1 %v6349_v32  ;;  %1977 = vmatprep.subr.bf16.mxu0 %v6536_v0  ;;  %v6578_v0 = vld [vmem:[#allocation8 + $0x30] ss:$24 sps:$4 sm:$0xff]   ;;  %v6585_v32 = vld [vmem:[#allocation8 + $0x4] ss:$24 sps:$4 sm:$0xff]  }
 0x94d   :  { %8586 = vst [vmem:[#allocation53_spill] sm:$0xff] %v6578_v0  ;;  %8590 = vst [vmem:[#allocation57_spill] sm:$0xff] %v6585_v32 }
 0x94f   :  { %4447 = vmatpush3.bf16.msra.mxu1 %v6353_v45  ;;  %1978 = vmatpush1.bf16.msra.mxu0 %v6540_v46  ;;  %v8583_v46 = vld [vmem:[#allocation58_spill] sm:$0xff] }
 0x950   :  { %4448 = vmatprep.subr.bf16.mxu1 %v6357_v40  ;;  %1979 = vmatprep.subr.bf16.mxu0 %v6544_v38  ;;  %v8580_v38 = vld [vmem:[#allocation81_spill] sm:$0xff]  ;;  %v8585_v45 = vld [vmem:[#allocation54_spill] sm:$0xff] }
 0x951   :  { %v6571_v40 = vld [vmem:[#allocation8 + $0x34] ss:$24 sps:$4 sm:$0xff]  }
 0x952   :  { %8581 = vst [vmem:[#allocation51_spill] sm:$0xff] %v6571_v40 }
 0x953   :  { %4449 = vmatpush3.bf16.msra.mxu1 %v6361_v34  ;;  %1980 = vmatpush1.bf16.msra.mxu0 %v6548_v17  ;;  %v8577_v17 = vld [vmem:[#allocation21_spill] sm:$0xff] }
 0x954   :  { %4450 = vmatprep.subr.bf16.mxu1 %v8571_v51  ;;  %1981 = vmatprep.subr.bf16.mxu0 %v6552_v26  ;;  %v8578_v26 = vld [vmem:[#allocation80_spill] sm:$0xff] }
 0x957   :  { %4451 = vmatpush3.bf16.msra.mxu1 %v8573_v54  ;;  %1982 = vmatpush1.bf16.msra.mxu0 %v6556_v5  ;;  %v6566_v54 = vld [vmem:[#allocation8 + $0x60] ss:$24 sps:$4 sm:$0xff]  }
 0x958   :  { %v1799_v14 = vpop.f32.mrf.mxu0  ;;  %4452 = vmatprep.subr.bf16.mxu1 %v8575_v20  ;;  %1983 = vmatprep.subr.bf16.mxu0 %v6560_v57  ;;  %8579 = vst [vmem:[#allocation49_spill] sm:$0xff] %v6566_v54 }
 0x959   :  { %vm1810_vm1 = vcmp.ge.f32.partialorder %v1799_v14, 0.0  ;;  %v8582_v14 = vld [vmem:[#allocation30_spill] sm:$0xff] }
 0x95a   :  { %v1816_v53 = vsel %vm1810_vm1, 0.0157, %v8494_v41  ;;  %v1801_v51 = vpop.f32.mrf.mxu0 }
 0x95b   :  { %v1822_v34 = vadd.f32 %v1816_v53, %v8577_v17  ;;  %vm1811_vm2 = vcmp.ge.f32.partialorder %v1801_v51, 0.0  ;;  %4453 = vmatpush3.bf16.msra.mxu1 %v8578_v26  ;;  %1984 = vmatpush1.bf16.msra.mxu0 %v6566_v54  ;;  %v8584_v53 = vld [vmem:[#allocation18_spill] sm:$0xff] }
 0x95c   :  { %v1817_v5 = vsel %vm1811_vm2, 0.0157, %v8494_v41  ;;  %v1803_v20 = vpop.f32.mrf.mxu0  ;;  %4454 = vmatprep.subr.bf16.mxu1 %v8580_v38  ;;  %1985 = vmatprep.subr.bf16.mxu0 %v6571_v40  ;;  %v8589_v38 = vld [vmem:[#allocation56_spill] sm:$0xff] }
 0x95d   :  { %v1828_v57 = vmax.f32 %v1822_v34, %v8582_v14  ;;  %v1823_v17 = vadd.f32 %v1817_v5, %v8583_v46  ;;  %v8587_v20 = vld [vmem:[#allocation19_spill] sm:$0xff]  ;;  %v8591_v34 = vld [vmem:[#allocation20_spill] sm:$0xff]  ;;  %v8593_v5 = vld [vmem:[#allocation82_spill] sm:$0xff] }
 0x95e   :  { %v1804_v51 = vpop.f32.mrf.mxu0 }
 0x95f   :  { %v1829_v26 = vmax.f32 %v1823_v17, %v8584_v53  ;;  %4455 = vmatpush3.bf16.msra.mxu1 %v8585_v45  ;;  %1986 = vmatpush1.bf16.msra.mxu0 %v6578_v0  ;;  %v6582_v54 = vmin.f32 %v1828_v57, %v8587_v20  ;;  %v6594_v51 = vld [vmem:[#allocation8] ss:$24 sps:$4 sm:$0xff]  }
 0x960   :  { %4456 = vmatprep.subr.bf16.mxu1 %v8589_v38  ;;  %1987 = vmatprep.subr.bf16.mxu0 %v6585_v32  ;;  %8594 = vst [vmem:[#allocation61_spill] sm:$0xff] %v6594_v51  ;;  %v6599_v38 = vld [vmem:[#allocation8 + $0x15c] ss:$24 sps:$4 sm:$0xff]  }
 0x961   :  { %8588 = vst [vmem:[#allocation55_spill] sm:$0xff] %v6582_v54  ;;  %v6589_v46 = vmin.f32 %v1829_v26, %v8591_v34  ;;  %v1840_v57 = vpack.c.bf16 %v6582_v54, %v6582_v54  ;;  %8595 = vst [vmem:[#allocation23_spill] sm:$0xff] %v6599_v38  ;;  %v6602_v32 = vld [vmem:[#allocation8 + $0x164] ss:$24 sps:$4 sm:$0xff]   ;;  %v6605_v26 = vld [vmem:[#allocation8 + $0x158] ss:$24 sps:$4 sm:$0xff]  }
 0x962   :  { %8596 = vst [vmem:[#allocation24_spill] sm:$0xff] %v6602_v32  ;;  %8597 = vst [vmem:[#allocation63_spill] sm:$0xff] %v6605_v26 }
 0x963   :  { %8592 = vst [vmem:[#allocation59_spill] sm:$0xff] %v6589_v46  ;;  %4457 = vmatpush3.bf16.msra.mxu1 %v8593_v5  ;;  %v1841_v17 = vpack.c.bf16 %v6589_v46, %v6589_v46  ;;  %1988 = vmatpush1.bf16.msra.mxu0 %v6594_v51  ;;  %v6609_v51 = vld [vmem:[#allocation8 + $0x12c] ss:$24 sps:$4 sm:$0xff]   ;;  %v6612_v5 = vld [vmem:[#allocation8 + $0x128] ss:$24 sps:$4 sm:$0xff]  }
 0x964   :  { %2014 = vmatprep.subr.bf16.mxu1 %v6599_v38  ;;  %2055 = vmatprep.subr.bf16.mxu0 %v6602_v32  ;;  %8598 = vst [vmem:[#allocation64_spill] sm:$0xff] %v6609_v51  ;;  %8599 = vst [vmem:[#allocation35_spill] sm:$0xff] %v6612_v5  ;;  %v6615_v38 = vld [vmem:[#allocation8 + $0xfc] ss:$24 sps:$4 sm:$0xff]  }
 0x965   :  { %1954 = vmatprep.mubr.bf16.mxu1 %v1841_v17  ;;  %8600 = vst [vmem:[#allocation33_spill] sm:$0xff] %v6615_v38  ;;  %v6618_v17 = vld [vmem:[#allocation8 + $0xf8] ss:$24 sps:$4 sm:$0xff]  }
 0x966   :  { %1955 = vmatmul.mubr.bf16.vlgmr.msra.gmra.mxu1 %v1840_v57  ;;  %8601 = vst [vmem:[#allocation65_spill] sm:$0xff] %v6618_v17  ;;  %v6621_v57 = vld [vmem:[#allocation8 + $0xcc] ss:$24 sps:$4 sm:$0xff]  }
 0x967   :  { %2015 = vmatpush1.bf16.msra.mxu1 %v6605_v26  ;;  %2046 = vmatprep.mubr.bf16.mxu1 %v8419_v37  ;;  %8602 = vst [vmem:[#allocation25_spill] sm:$0xff] %v6621_v57  ;;  %v6624_v26 = vld [vmem:[#allocation8 + $0xc8] ss:$24 sps:$4 sm:$0xff]  }
 0x968   :  { %2016 = vmatprep.subr.bf16.mxu1 %v6609_v51  ;;  %8603 = vst [vmem:[#allocation47_spill] sm:$0xff] %v6624_v26  ;;  %v6627_v51 = vld [vmem:[#allocation8 + $0x9c] ss:$24 sps:$4 sm:$0xff]  }
 0x969   :  { %8604 = vst [vmem:[#allocation26_spill] sm:$0xff] %v6627_v51 }
 0x96b   :  { %2017 = vmatpush1.bf16.msra.mxu1 %v6612_v5  ;;  %v6630_v5 = vld [vmem:[#allocation8 + $0x98] ss:$24 sps:$4 sm:$0xff]  }
 0x96c   :  { %2018 = vmatprep.subr.bf16.mxu1 %v6615_v38  ;;  %8605 = vst [vmem:[#allocation50_spill] sm:$0xff] %v6630_v5  ;;  %v6633_v38 = vld [vmem:[#allocation8 + $0x6c] ss:$24 sps:$4 sm:$0xff]  }
 0x96d   :  { %8606 = vst [vmem:[#allocation36_spill] sm:$0xff] %v6633_v38 }
 0x96f   :  { %2019 = vmatpush1.bf16.msra.mxu1 %v6618_v17  ;;  %v6636_v17 = vld [vmem:[#allocation8 + $0x68] ss:$24 sps:$4 sm:$0xff]  }
 0x970   :  { %2020 = vmatprep.subr.bf16.mxu1 %v6621_v57  ;;  %8607 = vst [vmem:[#allocation27_spill] sm:$0xff] %v6636_v17  ;;  %v6639_v57 = vld [vmem:[#allocation8 + $0x3c] ss:$24 sps:$4 sm:$0xff]  }
 0x971   :  { %8608 = vst [vmem:[#allocation52_spill] sm:$0xff] %v6639_v57 }
 0x973   :  { %2021 = vmatpush1.bf16.msra.mxu1 %v6624_v26  ;;  %v6642_v26 = vld [vmem:[#allocation8 + $0x38] ss:$24 sps:$4 sm:$0xff]  }
 0x974   :  { %2022 = vmatprep.subr.bf16.mxu1 %v6627_v51  ;;  %8609 = vst [vmem:[#allocation28_spill] sm:$0xff] %v6642_v26  ;;  %v6645_v51 = vld [vmem:[#allocation8 + $0xc] ss:$24 sps:$4 sm:$0xff]  }
 0x975   :  { %8610 = vst [vmem:[#allocation34_spill] sm:$0xff] %v6645_v51 }
 0x977   :  { %2023 = vmatpush1.bf16.msra.mxu1 %v6630_v5  ;;  %v6648_v5 = vld [vmem:[#allocation8 + $0x8] ss:$24 sps:$4 sm:$0xff]  }
 0x978   :  { %2024 = vmatprep.subr.bf16.mxu1 %v6633_v38  ;;  %8611 = vst [vmem:[#allocation29_spill] sm:$0xff] %v6648_v5  ;;  %v8612_v38 = vld [vmem:[#allocation22_spill] sm:$0xff] }
 0x97b   :  { %2025 = vmatpush1.bf16.msra.mxu1 %v6636_v17 }
 0x97c   :  { %2026 = vmatprep.subr.bf16.mxu1 %v6639_v57 }
 0x97f   :  { %2027 = vmatpush1.bf16.msra.mxu1 %v6642_v26 }
 0x980   :  { %2028 = vmatprep.subr.bf16.mxu1 %v6645_v51 }
 0x983   :  { %2029 = vmatpush1.bf16.msra.mxu1 %v6648_v5 }
 0x984   :  { %4464 = vmatprep.subr.bf16.mxu1 %v8612_v38 }
 0xa06   :  { %v4414_v32 = vpop.f32.mrf.mxu1  ;;  %v4436_v17 = vpop.f32.mrf.mxu0 }
 0xa08   :  { %v4415_v34 = vpop.f32.mrf.mxu1  ;;  %v4437_v20 = vpop.f32.mrf.mxu0 }
 0xa09   :  { %v4416_v46 = vadd.f32 %v4415_v34, %v4414_v32  ;;  %v4438_v40 = vadd.f32 %v4437_v20, %v4436_v17 }
 0xa0a   :  { %v4417_v0 = vpop.f32.mrf.mxu1  ;;  %v4439_v57 = vpop.f32.mrf.mxu0 }
 0xa0b   :  { %v1877_v26 = vadd.f32 %v6435_v16, %v4416_v46 }
 0xa0c   :  { %v4418_v45 = vpop.f32.mrf.mxu1  ;;  %v4440_v53 = vpop.f32.mrf.mxu0 }
 0xa0d   :  { %v1917_v54 = vadd.f32 %v4438_v40, %v1877_v26  ;;  %v6654_v40 = vld [vmem:[#allocation8 + $0x160] ss:$24 sps:$4 sm:$0xff]  }
 0xa26   :  { %v4458_v14 = vpop.f32.mrf.mxu1 }
 0xa28   :  { %v4459_v51 = vpop.f32.mrf.mxu1 }
 0xa29   :  { %v4460_v29 = vadd.f32 %v4459_v51, %v4458_v14 }
 0xa2a   :  { %v4461_v25 = vpop.f32.mrf.mxu1 }
 0xa2b   :  { %v1957_v5 = vadd.f32 %v4460_v29, %v1917_v54  ;;  %v6658_v25 = vld [vmem:[#allocation8 + $0x134] ss:$24 sps:$4 sm:$0xff]  }
 0xa2c   :  { %v4462_v9 = vpop.f32.mrf.mxu1  ;;  %v6674_v29 = vld [vmem:[#allocation8 + $0xd4] ss:$24 sps:$4 sm:$0xff]  }
 0xa2d   :  { %1962 = vmax.xlane.f32.xlu0 %v1957_v5  ;;  %v6671_v9 = vld [vmem:[#allocation8 + $0x100] ss:$24 sps:$4 sm:$0xff]  }
 0xab6   :  { %v1963_v38 = vpop.xlane.xlu0 %1962 }
 0xab7   :  { %v1964_v30 = vsub.f32 %v1957_v5, %v1963_v38 }
 0xab9   :  { %v1965_v11 = vmul.f32 1.442695, %v1964_v30  ;;  %v6663_v30 = vld [vmem:[#allocation8 + $0x130] ss:$24 sps:$4 sm:$0xff]  }
 0xabb   :  { %5079 = vpow2.f32 %v1965_v11  ;;  %v6666_v11 = vld [vmem:[#allocation8 + $0x104] ss:$24 sps:$4 sm:$0xff]  }
 0xac8   :  { %v5080_v0 = vpop.eup %5079 }
 0xac9   :  { %1967 = vadd.xlane.f32.xlu0 %v5080_v0 }
 0xb52   :  { %v1968_v45 = vpop.xlane.xlu0 %1967 }
 0xb53   :  { %5081 = vrcp.f32 %v1968_v45 }
 0xb60   :  { %v5082_v32 = vpop.eup %5081 }
 0xb61   :  { %v1970_v53 = vmul.f32 %v5082_v32, %v5080_v0 }
 0xb63   :  { %v1971_v34 = vsub.f32 %v1970_v53, %v5971_v33 }
 0xb65   :  { %v1972_v20 = vpack.c.bf16 %v1971_v34, %v1971_v34 }
 0xb67   :  { %2006 = vmatmul.mubr.bf16.vlgmr.msra.gmra.mxu0 %v1972_v20  ;;  %2047 = vmatmul.mubr.bf16.vlgmr.msra.gmra.mxu1 %v1972_v20 }
 0xb68   :  { %2056 = vmatpush1.bf16.msra.mxu0 %v6654_v40  ;;  %2087 = vmatprep.mubr.bf16.mxu0 %v8419_v37 }
 0xb69   :  { %2057 = vmatprep.subr.bf16.mxu0 %v6658_v25  ;;  %4465 = vmatpush3.bf16.msra.mxu1 %v6194_v18  ;;  %v6679_v18 = vld [vmem:[#allocation8 + $0xd0] ss:$24 sps:$4 sm:$0xff]  }
 0xb6a   :  { %4466 = vmatprep.subr.bf16.mxu1 %v6197_v1  ;;  %v6682_v1 = vld [vmem:[#allocation8 + $0xa4] ss:$24 sps:$4 sm:$0xff]  }
 0xb6c   :  { %2058 = vmatpush1.bf16.msra.mxu0 %v6663_v30 }
 0xb6d   :  { %2059 = vmatprep.subr.bf16.mxu0 %v6666_v11  ;;  %4467 = vmatpush3.bf16.msra.mxu1 %v6202_v28  ;;  %v6687_v28 = vld [vmem:[#allocation8 + $0xa0] ss:$24 sps:$4 sm:$0xff]  }
 0xb6e   :  { %4468 = vmatprep.subr.bf16.mxu1 %v6205_v31  ;;  %v6690_v31 = vld [vmem:[#allocation8 + $0x74] ss:$24 sps:$4 sm:$0xff]  }
 0xb70   :  { %2060 = vmatpush1.bf16.msra.mxu0 %v6671_v9 }
 0xb71   :  { %2061 = vmatprep.subr.bf16.mxu0 %v6674_v29  ;;  %4469 = vmatpush3.bf16.msra.mxu1 %v6210_v61  ;;  %v6695_v61 = vld [vmem:[#allocation8 + $0x70] ss:$24 sps:$4 sm:$0xff]  }
 0xb72   :  { %4470 = vmatprep.subr.bf16.mxu1 %v6213_v44  ;;  %v6698_v44 = vld [vmem:[#allocation8 + $0x44] ss:$24 sps:$4 sm:$0xff]  }
 0xb74   :  { %2062 = vmatpush1.bf16.msra.mxu0 %v6679_v18 }
 0xb75   :  { %2063 = vmatprep.subr.bf16.mxu0 %v6682_v1  ;;  %4471 = vmatpush3.bf16.msra.mxu1 %v6218_v19  ;;  %v6703_v19 = vld [vmem:[#allocation8 + $0x40] ss:$24 sps:$4 sm:$0xff]  }
 0xb76   :  { %4472 = vmatprep.subr.bf16.mxu1 %v6221_v3  ;;  %8613 = vst [vmem:[#allocation31_spill] sm:$0xff] %v6703_v19  ;;  %v6706_v3 = vld [vmem:[#allocation8 + $0x14] ss:$24 sps:$4 sm:$0xff]  }
 0xb77   :  { %8614 = vst [vmem:[#allocation32_spill] sm:$0xff] %v6706_v3 }
 0xb78   :  { %2064 = vmatpush1.bf16.msra.mxu0 %v6687_v28 }
 0xb79   :  { %2065 = vmatprep.subr.bf16.mxu0 %v6690_v31  ;;  %4473 = vmatpush3.bf16.msra.mxu1 %v6226_v58  ;;  %v6711_v58 = vld [vmem:[#allocation8 + $0x10] ss:$24 sps:$4 sm:$0xff]  }
 0xb7a   :  { %4474 = vmatprep.subr.bf16.mxu1 %v6229_v56  ;;  %8615 = vst [vmem:[#allocation21_spill] sm:$0xff] %v6711_v58  ;;  %v8616_v56 = vld [vmem:[#allocation37_spill] sm:$0xff] }
 0xb7c   :  { %2066 = vmatpush1.bf16.msra.mxu0 %v6695_v61 }
 0xb7d   :  { %2067 = vmatprep.subr.bf16.mxu0 %v6698_v44  ;;  %4475 = vmatpush3.bf16.msra.mxu1 %v8538_v62  ;;  %v8617_v62 = vld [vmem:[#allocation66_spill] sm:$0xff] }
 0xb7e   :  { %4476 = vmatprep.subr.bf16.mxu1 %v8539_v36  ;;  %v8618_v36 = vld [vmem:[#allocation67_spill] sm:$0xff] }
 0xb80   :  { %2068 = vmatpush1.bf16.msra.mxu0 %v6703_v19 }
 0xb81   :  { %2069 = vmatprep.subr.bf16.mxu0 %v6706_v3  ;;  %4477 = vmatpush3.bf16.msra.mxu1 %v8542_v60  ;;  %v8619_v60 = vld [vmem:[#allocation68_spill] sm:$0xff] }
 0xb82   :  { %4478 = vmatprep.subr.bf16.mxu1 %v8543_v63  ;;  %v8620_v63 = vld [vmem:[#allocation69_spill] sm:$0xff] }
 0xb84   :  { %2070 = vmatpush1.bf16.msra.mxu0 %v6711_v58 }
 0xb85   :  { %4486 = vmatprep.subr.bf16.mxu0 %v8545_v2  ;;  %4479 = vmatpush3.bf16.msra.mxu1 %v8546_v4  ;;  %v8621_v2 = vld [vmem:[#allocation70_spill] sm:$0xff]  ;;  %v8622_v4 = vld [vmem:[#allocation60_spill] sm:$0xff] }
 0xb86   :  { %4508 = vmatprep.subr.bf16.mxu1 %v8547_v6 }
 0xb87   :  { %2088 = vmatmul.mubr.bf16.vlgmr.msra.gmra.mxu0 %v1972_v20  ;;  %v8623_v20 = vld [vmem:[#allocation39_spill] sm:$0xff] }
 0xb88   :  { %4487 = vmatpush3.bf16.msra.mxu0 %v8548_v8 }
 0xb89   :  { %4488 = vmatprep.subr.bf16.mxu0 %v8549_v10 }
 0xb8c   :  { %4489 = vmatpush3.bf16.msra.mxu0 %v8550_v59 }
 0xb8d   :  { %4490 = vmatprep.subr.bf16.mxu0 %v8551_v50 }
 0xb90   :  { %4491 = vmatpush3.bf16.msra.mxu0 %v8552_v48 }
 0xb91   :  { %4492 = vmatprep.subr.bf16.mxu0 %v8553_v42 }
 0xb94   :  { %4493 = vmatpush3.bf16.msra.mxu0 %v8554_v43 }
 0xb95   :  { %4494 = vmatprep.subr.bf16.mxu0 %v8555_v12 }
 0xb98   :  { %4495 = vmatpush3.bf16.msra.mxu0 %v8556_v27 }
 0xb99   :  { %4496 = vmatprep.subr.bf16.mxu0 %v8616_v56  ;;  %v8624_v56 = vld [vmem:[#allocation71_spill] sm:$0xff] }
 0xb9c   :  { %4497 = vmatpush3.bf16.msra.mxu0 %v8617_v62  ;;  %v8625_v62 = vld [vmem:[#allocation62_spill] sm:$0xff] }
 0xb9d   :  { %4498 = vmatprep.subr.bf16.mxu0 %v8618_v36  ;;  %v8626_v36 = vld [vmem:[#allocation72_spill] sm:$0xff] }
 0xba0   :  { %4499 = vmatpush3.bf16.msra.mxu0 %v8619_v60  ;;  %v8627_v60 = vld [vmem:[#allocation40_spill] sm:$0xff] }
 0xba1   :  { %4500 = vmatprep.subr.bf16.mxu0 %v8620_v63  ;;  %v8628_v63 = vld [vmem:[#allocation73_spill] sm:$0xff] }
 0xba4   :  { %4501 = vmatpush3.bf16.msra.mxu0 %v8621_v2  ;;  %v8629_v2 = vld [vmem:[#allocation41_spill] sm:$0xff] }
 0xba5   :  { %2263 = vmatprep.subr.bf16.mxu0 %v8622_v4 }
 0xc27   :  { %v2007_v6 = vpop.f32.mrf.mxu0  ;;  %v2048_v8 = vpop.f32.mrf.mxu1 }
 0xc28   :  { %vm2096_vm3 = vcmp.ge.f32.partialorder %v2007_v6, 0.0  ;;  %vm2098_vm4 = vcmp.ge.f32.partialorder %v2048_v8, 0.0  ;;  %v8630_v6 = vld [vmem:[#allocation74_spill] sm:$0xff] }
 0xc29   :  { %v2102_v10 = vsel %vm2096_vm3, 0.0157, %v8494_v41  ;;  %v2104_v59 = vsel %vm2098_vm4, 0.0157, %v8494_v41  ;;  %v2009_v50 = vpop.f32.mrf.mxu0  ;;  %v2050_v48 = vpop.f32.mrf.mxu1  ;;  %v8631_v8 = vld [vmem:[#allocation42_spill] sm:$0xff] }
 0xc2a   :  { %v2108_v42 = vadd.f32 %v2102_v10, %v6503_v7  ;;  %v2110_v43 = vadd.f32 %v2104_v59, %v6506_v55  ;;  %vm2097_vm5 = vcmp.ge.f32.partialorder %v2009_v50, 0.0  ;;  %vm2099_vm6 = vcmp.ge.f32.partialorder %v2050_v48, 0.0  ;;  %v8633_v10 = vld [vmem:[#allocation43_spill] sm:$0xff]  ;;  %v8634_v59 = vld [vmem:[#allocation76_spill] sm:$0xff]  ;;  %v8636_v48 = vld [vmem:[#allocation77_spill] sm:$0xff] }
 0xc2b   :  { %v2103_v12 = vsel %vm2097_vm5, 0.0157, %v8494_v41  ;;  %v2105_v27 = vsel %vm2099_vm6, 0.0157, %v8494_v41  ;;  %v2011_v54 = vpop.f32.mrf.mxu0  ;;  %v2052_v14 = vpop.f32.mrf.mxu1  ;;  %v8635_v50 = vld [vmem:[#allocation44_spill] sm:$0xff] }
 0xc2c   :  { %v2114_v46 = vmax.f32 %v2108_v42, %v6059_v13  ;;  %v2116_v5 = vmax.f32 %v2110_v43, %v6067_v22  ;;  %v2109_v51 = vadd.f32 %v2103_v12, %v6509_v39  ;;  %v2111_v26 = vadd.f32 %v2105_v27, %v6512_v47  ;;  %v8637_v42 = vld [vmem:[#allocation45_spill] sm:$0xff]  ;;  %v8638_v43 = vld [vmem:[#allocation78_spill] sm:$0xff]  ;;  %v8640_v54 = vld [vmem:[#allocation79_spill] sm:$0xff] }
 0xc2d   :  { %v2012_v17 = vpop.f32.mrf.mxu0  ;;  %v2053_v7 = vpop.f32.mrf.mxu1  ;;  %v8639_v12 = vld [vmem:[#allocation46_spill] sm:$0xff]  ;;  %v8641_v14 = vld [vmem:[#allocation48_spill] sm:$0xff] }
 0xc2e   :  { %v2115_v55 = vmax.f32 %v2109_v51, %v6061_v15  ;;  %v2117_v57 = vmax.f32 %v2111_v26, %v6071_v24  ;;  %v6746_v38 = vmin.f32 %v2114_v46, %v6065_v21  ;;  %v6749_v0 = vmin.f32 %v2116_v5, %v6077_v35  ;;  %v8642_v51 = vld [vmem:[#allocation55_spill] sm:$0xff]  ;;  %v8643_v17 = vld [vmem:[#allocation80_spill] sm:$0xff]  ;;  %v8644_v7 = vld [vmem:[#allocation49_spill] sm:$0xff] }
 0xc30   :  { %v6752_v45 = vmin.f32 %v2115_v55, %v6069_v23  ;;  %v6755_v32 = vmin.f32 %v2117_v57, %v6079_v49  ;;  %v2126_v53 = vpack.c.bf16 %v6746_v38, %v6746_v38  ;;  %v2128_v34 = vpack.c.bf16 %v6749_v0, %v6749_v0 }
 0xc32   :  { %v2127_v39 = vpack.c.bf16 %v6752_v45, %v6752_v45  ;;  %v2129_v47 = vpack.c.bf16 %v6755_v32, %v6755_v32 }
 0xc34   :  { %2164 = vmatprep.mubr.bf16.mxu1 %v2127_v39  ;;  %2204 = vmatprep.mubr.bf16.mxu0 %v2129_v47  ;;  %v8645_v39 = vld [vmem:[#allocation81_spill] sm:$0xff]  ;;  %v8646_v47 = vld [vmem:[#allocation51_spill] sm:$0xff] }
 0xc35   :  { %2165 = vmatmul.mubr.bf16.vlgmr.msra.gmra.mxu1 %v2126_v53  ;;  %2205 = vmatmul.mubr.bf16.vlgmr.msra.gmra.mxu0 %v2128_v34  ;;  %v8647_v53 = vld [vmem:[#allocation30_spill] sm:$0xff] }
 0xc36   :  { %4509 = vmatpush3.bf16.msra.mxu1 %v6336_v52  ;;  %2264 = vmatpush1.bf16.msra.mxu0 %v8623_v20  ;;  %v8632_v52 = vld [vmem:[#allocation75_spill] sm:$0xff] }
 0xc37   :  { %4510 = vmatprep.subr.bf16.mxu1 %v8624_v56  ;;  %2265 = vmatprep.subr.bf16.mxu0 %v8625_v62  ;;  %v8648_v56 = vld [vmem:[#allocation59_spill] sm:$0xff] }
 0xc38   :  { %2295 = vmatprep.mubr.bf16.mxu0 %v8419_v37 }
 0xc3a   :  { %4511 = vmatpush3.bf16.msra.mxu1 %v8626_v36  ;;  %2266 = vmatpush1.bf16.msra.mxu0 %v8627_v60 }
 0xc3b   :  { %4512 = vmatprep.subr.bf16.mxu1 %v8628_v63  ;;  %2267 = vmatprep.subr.bf16.mxu0 %v8629_v2 }
 0xc3e   :  { %4513 = vmatpush3.bf16.msra.mxu1 %v8630_v6  ;;  %2268 = vmatpush1.bf16.msra.mxu0 %v8631_v8  ;;  %v8649_v6 = vld [vmem:[#allocation18_spill] sm:$0xff] }
 0xc3f   :  { %4514 = vmatprep.subr.bf16.mxu1 %v8632_v52  ;;  %2269 = vmatprep.subr.bf16.mxu0 %v8633_v10 }
 0xc42   :  { %4515 = vmatpush3.bf16.msra.mxu1 %v8634_v59  ;;  %2270 = vmatpush1.bf16.msra.mxu0 %v8635_v50  ;;  %v8650_v59 = vld [vmem:[#allocation54_spill] sm:$0xff] }
 0xc43   :  { %4516 = vmatprep.subr.bf16.mxu1 %v8636_v48  ;;  %2271 = vmatprep.subr.bf16.mxu0 %v8637_v42  ;;  %v8651_v48 = vld [vmem:[#allocation53_spill] sm:$0xff] }
 0xc46   :  { %4517 = vmatpush3.bf16.msra.mxu1 %v8638_v43  ;;  %2272 = vmatpush1.bf16.msra.mxu0 %v8639_v12  ;;  %v8652_v43 = vld [vmem:[#allocation19_spill] sm:$0xff] }
 0xc47   :  { %v2089_v27 = vpop.f32.mrf.mxu0  ;;  %4518 = vmatprep.subr.bf16.mxu1 %v8640_v54  ;;  %2273 = vmatprep.subr.bf16.mxu0 %v8641_v14  ;;  %v8653_v54 = vld [vmem:[#allocation56_spill] sm:$0xff] }
 0xc48   :  { %vm2100_vm7 = vcmp.ge.f32.partialorder %v2089_v27, 0.0 }
 0xc49   :  { %v2106_v46 = vsel %vm2100_vm7, 0.0157, %v8494_v41  ;;  %v2091_v5 = vpop.f32.mrf.mxu0 }
 0xc4a   :  { %v2112_v26 = vadd.f32 %v2106_v46, %v8642_v51  ;;  %vm2101_vm8 = vcmp.ge.f32.partialorder %v2091_v5, 0.0  ;;  %4519 = vmatpush3.bf16.msra.mxu1 %v8643_v17  ;;  %2274 = vmatpush1.bf16.msra.mxu0 %v8644_v7  ;;  %v8654_v46 = vld [vmem:[#allocation57_spill] sm:$0xff]  ;;  %v8655_v5 = vld [vmem:[#allocation20_spill] sm:$0xff] }
 0xc4b   :  { %v2107_v55 = vsel %vm2101_vm8, 0.0157, %v8494_v41  ;;  %v2093_v57 = vpop.f32.mrf.mxu0  ;;  %4520 = vmatprep.subr.bf16.mxu1 %v8645_v39  ;;  %2275 = vmatprep.subr.bf16.mxu0 %v8646_v47  ;;  %v8659_v39 = vld [vmem:[#allocation23_spill] sm:$0xff] }
 0xc4c   :  { %v2118_v34 = vmax.f32 %v2112_v26, %v8647_v53  ;;  %v2113_v36 = vadd.f32 %v2107_v55, %v8648_v56  ;;  %v8657_v26 = vld [vmem:[#allocation82_spill] sm:$0xff]  ;;  %v8658_v55 = vld [vmem:[#allocation61_spill] sm:$0xff]  ;;  %v8661_v56 = vld [vmem:[#allocation63_spill] sm:$0xff] }
 0xc4d   :  { %v2094_v63 = vpop.f32.mrf.mxu0 }
 0xc4e   :  { %v2119_v52 = vmax.f32 %v2113_v36, %v8649_v6  ;;  %4521 = vmatpush3.bf16.msra.mxu1 %v8650_v59  ;;  %2276 = vmatpush1.bf16.msra.mxu0 %v8651_v48  ;;  %v6799_v27 = vmin.f32 %v2118_v34, %v8652_v43  ;;  %v8660_v34 = vld [vmem:[#allocation24_spill] sm:$0xff]  ;;  %v8663_v63 = vld [vmem:[#allocation35_spill] sm:$0xff]  ;;  %v8665_v59 = vld [vmem:[#allocation65_spill] sm:$0xff] }
 0xc4f   :  { %4522 = vmatprep.subr.bf16.mxu1 %v8653_v54  ;;  %2277 = vmatprep.subr.bf16.mxu0 %v8654_v46  ;;  %v8662_v36 = vld [vmem:[#allocation64_spill] sm:$0xff]  ;;  %v8666_v54 = vld [vmem:[#allocation25_spill] sm:$0xff] }
 0xc50   :  { %v6804_v51 = vmin.f32 %v2119_v52, %v8655_v5  ;;  %v2130_v57 = vpack.c.bf16 %v6799_v27, %v6799_v27  ;;  %v8664_v52 = vld [vmem:[#allocation33_spill] sm:$0xff] }
 0xc52   :  { %8656 = vst [vmem:[#allocation58_spill] sm:$0xff] %v6804_v51  ;;  %4523 = vmatpush3.bf16.msra.mxu1 %v8657_v26  ;;  %v2131_v17 = vpack.c.bf16 %v6804_v51, %v6804_v51  ;;  %2278 = vmatpush1.bf16.msra.mxu0 %v8658_v55  ;;  %v8667_v26 = vld [vmem:[#allocation47_spill] sm:$0xff] }
 0xc53   :  { %2304 = vmatprep.subr.bf16.mxu1 %v8659_v39  ;;  %2345 = vmatprep.subr.bf16.mxu0 %v8660_v34  ;;  %v8668_v39 = vld [vmem:[#allocation26_spill] sm:$0xff]  ;;  %v8672_v34 = vld [vmem:[#allocation52_spill] sm:$0xff] }
 0xc54   :  { %2244 = vmatprep.mubr.bf16.mxu1 %v2131_v17  ;;  %v8669_v17 = vld [vmem:[#allocation50_spill] sm:$0xff] }
 0xc55   :  { %2245 = vmatmul.mubr.bf16.vlgmr.msra.gmra.mxu1 %v2130_v57  ;;  %v8670_v57 = vld [vmem:[#allocation36_spill] sm:$0xff] }
 0xc56   :  { %2305 = vmatpush1.bf16.msra.mxu1 %v8661_v56  ;;  %2336 = vmatprep.mubr.bf16.mxu1 %v8419_v37  ;;  %v8671_v56 = vld [vmem:[#allocation27_spill] sm:$0xff] }
 0xc57   :  { %2306 = vmatprep.subr.bf16.mxu1 %v8662_v36  ;;  %v8673_v36 = vld [vmem:[#allocation28_spill] sm:$0xff] }
 0xc5a   :  { %2307 = vmatpush1.bf16.msra.mxu1 %v8663_v63  ;;  %v8674_v63 = vld [vmem:[#allocation34_spill] sm:$0xff] }
 0xc5b   :  { %2308 = vmatprep.subr.bf16.mxu1 %v8664_v52  ;;  %v8675_v52 = vld [vmem:[#allocation29_spill] sm:$0xff] }
 0xc5e   :  { %2309 = vmatpush1.bf16.msra.mxu1 %v8665_v59  ;;  %v6830_v59 = vld [vmem:[#allocation7 + $0x78] sm:$0xff]  }
 0xc5f   :  { %2310 = vmatprep.subr.bf16.mxu1 %v8666_v54  ;;  %8676 = vst [vmem:[#allocation22_spill] sm:$0xff] %v6830_v59 }
 0xc62   :  { %2311 = vmatpush1.bf16.msra.mxu1 %v8667_v26 }
 0xc63   :  { %2312 = vmatprep.subr.bf16.mxu1 %v8668_v39 }
 0xc66   :  { %2313 = vmatpush1.bf16.msra.mxu1 %v8669_v17 }
 0xc67   :  { %2314 = vmatprep.subr.bf16.mxu1 %v8670_v57 }
 0xc6a   :  { %2315 = vmatpush1.bf16.msra.mxu1 %v8671_v56 }
 0xc6b   :  { %2316 = vmatprep.subr.bf16.mxu1 %v8672_v34 }
 0xc6e   :  { %2317 = vmatpush1.bf16.msra.mxu1 %v8673_v36 }
 0xc6f   :  { %2318 = vmatprep.subr.bf16.mxu1 %v8674_v63 }
 0xc72   :  { %2319 = vmatpush1.bf16.msra.mxu1 %v8675_v52 }
 0xc73   :  { %4530 = vmatprep.subr.bf16.mxu1 %v6830_v59 }
 0xcf5   :  { %v4480_v26 = vpop.f32.mrf.mxu1  ;;  %v4502_v39 = vpop.f32.mrf.mxu0 }
 0xcf7   :  { %v4481_v54 = vpop.f32.mrf.mxu1  ;;  %v4503_v17 = vpop.f32.mrf.mxu0 }
 0xcf8   :  { %v4482_v46 = vadd.f32 %v4481_v54, %v4480_v26  ;;  %v4504_v43 = vadd.f32 %v4503_v17, %v4502_v39  ;;  %v6865_v39 = vld [vmem:[#allocation7 + $0x58] sm:$0xff]   ;;  %v6889_v26 = vld [vmem:[#allocation7 + $0x40] sm:$0xff]  }
 0xcf9   :  { %v4483_v55 = vpop.f32.mrf.mxu1  ;;  %v4505_v57 = vpop.f32.mrf.mxu0  ;;  %8679 = vst [vmem:[#allocation67_spill] sm:$0xff] %v6889_v26  ;;  %v6893_v17 = vld [vmem:[#allocation7 + $0xf8] sm:$0xff]  }
 0xcfa   :  { %v2167_v34 = vadd.f32 %v6435_v16, %v4482_v46  ;;  %8680 = vst [vmem:[#allocation68_spill] sm:$0xff] %v6893_v17  ;;  %v6896_v57 = vld [vmem:[#allocation7] sm:$0xff]  }
 0xcfb   :  { %v4484_v5 = vpop.f32.mrf.mxu1  ;;  %v4506_v56 = vpop.f32.mrf.mxu0  ;;  %8681 = vst [vmem:[#allocation69_spill] sm:$0xff] %v6896_v57 }
 0xcfc   :  { %v2207_v48 = vadd.f32 %v4504_v43, %v2167_v34  ;;  %v6857_v43 = vld [vmem:[#allocation7 + $0x60] sm:$0xff]   ;;  %v6870_v34 = vld [vmem:[#allocation7 + $0x18] sm:$0xff]  }
 0xd15   :  { %v4524_v36 = vpop.f32.mrf.mxu1 }
 0xd17   :  { %v4525_v63 = vpop.f32.mrf.mxu1 }
 0xd18   :  { %v4526_v52 = vadd.f32 %v4525_v63, %v4524_v36  ;;  %v6873_v36 = vld [vmem:[#allocation7 + $0x50] sm:$0xff]  }
 0xd19   :  { %v4527_v6 = vpop.f32.mrf.mxu1  ;;  %v6878_v63 = vld [vmem:[#allocation7 + $0x10] sm:$0xff]  }
 0xd1a   :  { %v2247_v51 = vadd.f32 %v4526_v52, %v2207_v48  ;;  %v6849_v6 = vld [vmem:[#allocation7 + $0x68] sm:$0xff]  }
 0xd1b   :  { %v4528_v53 = vpop.f32.mrf.mxu1  ;;  %v6854_v48 = vld [vmem:[#allocation7 + $0x28] sm:$0xff]  }
 0xd1c   :  { %2252 = vmax.xlane.f32.xlu0 %v2247_v51  ;;  %v6838_v53 = vld [vmem:[#allocation7 + $0x38] sm:$0xff]   ;;  %v6881_v52 = vld [vmem:[#allocation7 + $0x48] sm:$0xff]  }
 0xd1d   :  { %8677 = vst [vmem:[#allocation37_spill] sm:$0xff] %v6881_v52 }
 0xda5   :  { %v2253_v59 = vpop.xlane.xlu0 %2252 }
 0xda6   :  { %v2254_v47 = vsub.f32 %v2247_v51, %v2253_v59  ;;  %v6862_v51 = vld [vmem:[#allocation7 + $0x20] sm:$0xff]   ;;  %v6886_v59 = vld [vmem:[#allocation7 + $0x8] sm:$0xff]  }
 0xda7   :  { %8678 = vst [vmem:[#allocation66_spill] sm:$0xff] %v6886_v59 }
 0xda8   :  { %v2255_v7 = vmul.f32 1.442695, %v2254_v47  ;;  %v6846_v47 = vld [vmem:[#allocation7 + $0x30] sm:$0xff]  }
 0xdaa   :  { %5083 = vpow2.f32 %v2255_v7  ;;  %v6841_v7 = vld [vmem:[#allocation7 + $0x70] sm:$0xff]  }
 0xdb7   :  { %v5084_v55 = vpop.eup %5083 }
 0xdb8   :  { %2257 = vadd.xlane.f32.xlu0 %v5084_v55 }
 0xe41   :  { %v2258_v5 = vpop.xlane.xlu0 %2257 }
 0xe42   :  { %5085 = vrcp.f32 %v2258_v5  ;;  %v6902_v5 = vld [vmem:[#allocation7 + $0xb8] sm:$0xff]  }
 0xe43   :  { %8683 = vst [vmem:[#allocation60_spill] sm:$0xff] %v6902_v5 }
 0xe4f   :  { %v5086_v56 = vpop.eup %5085 }
 0xe50   :  { %v2260_v54 = vmul.f32 %v5086_v56, %v5084_v55  ;;  %v6899_v55 = vld [vmem:[#allocation7 + $0x178] sm:$0xff]   ;;  %v6905_v56 = vld [vmem:[#allocation7 + $0xf0] sm:$0xff]  }
 0xe51   :  { %8682 = vst [vmem:[#allocation70_spill] sm:$0xff] %v6899_v55  ;;  %8684 = vst [vmem:[#allocation39_spill] sm:$0xff] %v6905_v56 }
 0xe52   :  { %v2261_v16 = vsub.f32 %v2260_v54, %v5971_v33  ;;  %v6908_v54 = vld [vmem:[#allocation7 + $0xb0] sm:$0xff]  }
 0xe53   :  { %8685 = vst [vmem:[#allocation71_spill] sm:$0xff] %v6908_v54 }
 0xe54   :  { %v2262_v46 = vpack.c.bf16 %v2261_v16, %v2261_v16  ;;  %v6911_v16 = vld [vmem:[#allocation7 + $0xe8] sm:$0xff]  }
 0xe55   :  { %8686 = vst [vmem:[#allocation62_spill] sm:$0xff] %v6911_v16 }
 0xe56   :  { %2296 = vmatmul.mubr.bf16.vlgmr.msra.gmra.mxu0 %v2262_v46  ;;  %2337 = vmatmul.mubr.bf16.vlgmr.msra.gmra.mxu1 %v2262_v46 }
 0xe57   :  { %2346 = vmatpush1.bf16.msra.mxu0 %v6654_v40  ;;  %2377 = vmatprep.mubr.bf16.mxu0 %v8419_v37 }
 0xe58   :  { %2347 = vmatprep.subr.bf16.mxu0 %v6658_v25  ;;  %4531 = vmatpush3.bf16.msra.mxu1 %v6838_v53 }
 0xe59   :  { %4532 = vmatprep.subr.bf16.mxu1 %v6841_v7 }
 0xe5b   :  { %2348 = vmatpush1.bf16.msra.mxu0 %v6663_v30 }
 0xe5c   :  { %2349 = vmatprep.subr.bf16.mxu0 %v6666_v11  ;;  %4533 = vmatpush3.bf16.msra.mxu1 %v6846_v47 }
 0xe5d   :  { %4534 = vmatprep.subr.bf16.mxu1 %v6849_v6 }
 0xe5f   :  { %2350 = vmatpush1.bf16.msra.mxu0 %v6671_v9 }
 0xe60   :  { %2351 = vmatprep.subr.bf16.mxu0 %v6674_v29  ;;  %4535 = vmatpush3.bf16.msra.mxu1 %v6854_v48 }
 0xe61   :  { %4536 = vmatprep.subr.bf16.mxu1 %v6857_v43 }
 0xe63   :  { %2352 = vmatpush1.bf16.msra.mxu0 %v6679_v18 }
 0xe64   :  { %2353 = vmatprep.subr.bf16.mxu0 %v6682_v1  ;;  %4537 = vmatpush3.bf16.msra.mxu1 %v6862_v51 }
 0xe65   :  { %4538 = vmatprep.subr.bf16.mxu1 %v6865_v39 }
 0xe67   :  { %2354 = vmatpush1.bf16.msra.mxu0 %v6687_v28 }
 0xe68   :  { %2355 = vmatprep.subr.bf16.mxu0 %v6690_v31  ;;  %4539 = vmatpush3.bf16.msra.mxu1 %v6870_v34 }
 0xe69   :  { %4540 = vmatprep.subr.bf16.mxu1 %v6873_v36 }
 0xe6b   :  { %2356 = vmatpush1.bf16.msra.mxu0 %v6695_v61 }
 0xe6c   :  { %2357 = vmatprep.subr.bf16.mxu0 %v6698_v44  ;;  %4541 = vmatpush3.bf16.msra.mxu1 %v6878_v63 }
 0xe6d   :  { %4542 = vmatprep.subr.bf16.mxu1 %v6881_v52 }
 0xe6f   :  { %2358 = vmatpush1.bf16.msra.mxu0 %v6703_v19 }
 0xe70   :  { %2359 = vmatprep.subr.bf16.mxu0 %v6706_v3  ;;  %4543 = vmatpush3.bf16.msra.mxu1 %v6886_v59 }
 0xe71   :  { %4544 = vmatprep.subr.bf16.mxu1 %v6889_v26 }
 0xe73   :  { %2360 = vmatpush1.bf16.msra.mxu0 %v6711_v58 }
 0xe74   :  { %4552 = vmatprep.subr.bf16.mxu0 %v6893_v17  ;;  %4545 = vmatpush3.bf16.msra.mxu1 %v6896_v57  ;;  %v6914_v57 = vld [vmem:[#allocation7 + $0xa8] sm:$0xff]  }
 0xe75   :  { %4574 = vmatprep.subr.bf16.mxu1 %v6899_v55  ;;  %8687 = vst [vmem:[#allocation72_spill] sm:$0xff] %v6914_v57 }
 0xe76   :  { %2378 = vmatmul.mubr.bf16.vlgmr.msra.gmra.mxu0 %v2262_v46  ;;  %v6917_v46 = vld [vmem:[#allocation7 + $0xe0] sm:$0xff]  }
 0xe77   :  { %4553 = vmatpush3.bf16.msra.mxu0 %v6902_v5  ;;  %8688 = vst [vmem:[#allocation40_spill] sm:$0xff] %v6917_v46  ;;  %v6920_v5 = vld [vmem:[#allocation7 + $0xa0] sm:$0xff]  }
 0xe78   :  { %4554 = vmatprep.subr.bf16.mxu0 %v6905_v56  ;;  %8689 = vst [vmem:[#allocation73_spill] sm:$0xff] %v6920_v5  ;;  %v6923_v56 = vld [vmem:[#allocation7 + $0xd8] sm:$0xff]  }
 0xe79   :  { %8690 = vst [vmem:[#allocation41_spill] sm:$0xff] %v6923_v56 }
 0xe7b   :  { %4555 = vmatpush3.bf16.msra.mxu0 %v6908_v54  ;;  %v6926_v54 = vld [vmem:[#allocation7 + $0x98] sm:$0xff]  }
 0xe7c   :  { %4556 = vmatprep.subr.bf16.mxu0 %v6911_v16  ;;  %8691 = vst [vmem:[#allocation74_spill] sm:$0xff] %v6926_v54  ;;  %v6929_v16 = vld [vmem:[#allocation7 + $0xd0] sm:$0xff]  }
 0xe7d   :  { %8692 = vst [vmem:[#allocation42_spill] sm:$0xff] %v6929_v16 }
 0xe7f   :  { %4557 = vmatpush3.bf16.msra.mxu0 %v6914_v57  ;;  %v6932_v57 = vld [vmem:[#allocation7 + $0x90] sm:$0xff]  }
 0xe80   :  { %4558 = vmatprep.subr.bf16.mxu0 %v6917_v46  ;;  %8693 = vst [vmem:[#allocation75_spill] sm:$0xff] %v6932_v57  ;;  %v6935_v46 = vld [vmem:[#allocation7 + $0xc8] sm:$0xff]  }
 0xe81   :  { %8694 = vst [vmem:[#allocation43_spill] sm:$0xff] %v6935_v46 }
 0xe83   :  { %4559 = vmatpush3.bf16.msra.mxu0 %v6920_v5  ;;  %v6938_v5 = vld [vmem:[#allocation7 + $0x88] sm:$0xff]  }
 0xe84   :  { %4560 = vmatprep.subr.bf16.mxu0 %v6923_v56  ;;  %8695 = vst [vmem:[#allocation76_spill] sm:$0xff] %v6938_v5  ;;  %v6941_v56 = vld [vmem:[#allocation7 + $0xc0] sm:$0xff]  }
 0xe85   :  { %8696 = vst [vmem:[#allocation44_spill] sm:$0xff] %v6941_v56 }
 0xe87   :  { %4561 = vmatpush3.bf16.msra.mxu0 %v6926_v54  ;;  %v6944_v54 = vld [vmem:[#allocation7 + $0x80] sm:$0xff]  }
 0xe88   :  { %4562 = vmatprep.subr.bf16.mxu0 %v6929_v16  ;;  %8697 = vst [vmem:[#allocation77_spill] sm:$0xff] %v6944_v54 }
 0xe8b   :  { %4563 = vmatpush3.bf16.msra.mxu0 %v6932_v57 }
 0xe8c   :  { %4564 = vmatprep.subr.bf16.mxu0 %v6935_v46 }
 0xe8f   :  { %4565 = vmatpush3.bf16.msra.mxu0 %v6938_v5 }
 0xe90   :  { %4566 = vmatprep.subr.bf16.mxu0 %v6941_v56 }
 0xe93   :  { %4567 = vmatpush3.bf16.msra.mxu0 %v6944_v54 }
 0xe94   :  { %2553 = vmatprep.subr.bf16.mxu0 %v8622_v4 }
 0xf16   :  { %v2297_v16 = vpop.f32.mrf.mxu0  ;;  %v2338_v57 = vpop.f32.mrf.mxu1 }
 0xf17   :  { %vm2386_vm9 = vcmp.ge.f32.partialorder %v2297_v16, 0.0  ;;  %vm2388_vm10 = vcmp.ge.f32.partialorder %v2338_v57, 0.0 }
 0xf18   :  { %v2392_v46 = vsel %vm2386_vm9, 0.0157, %v8494_v41  ;;  %v2394_v55 = vsel %vm2388_vm10, 0.0157, %v8494_v41  ;;  %v2299_v17 = vpop.f32.mrf.mxu0  ;;  %v2340_v5 = vpop.f32.mrf.mxu1 }
 0xf19   :  { %v2398_v58 = vadd.f32 %v2392_v46, %v6746_v38  ;;  %v2400_v56 = vadd.f32 %v2394_v55, %v6749_v0  ;;  %vm2387_vm11 = vcmp.ge.f32.partialorder %v2299_v17, 0.0  ;;  %vm2389_vm12 = vcmp.ge.f32.partialorder %v2340_v5, 0.0  ;;  %v6984_v5 = vld [vmem:[#allocation7 + $0x170] sm:$0xff]   ;;  %v7005_v46 = vld [vmem:[#allocation7 + $0x120] sm:$0xff]  }
 0xf1a   :  { %v2393_v54 = vsel %vm2387_vm11, 0.0157, %v8494_v41  ;;  %v2395_v4 = vsel %vm2389_vm12, 0.0157, %v8494_v41  ;;  %v2301_v26 = vpop.f32.mrf.mxu0  ;;  %v2342_v59 = vpop.f32.mrf.mxu1  ;;  %8699 = vst [vmem:[#allocation78_spill] sm:$0xff] %v6984_v5  ;;  %8704 = vst [vmem:[#allocation80_spill] sm:$0xff] %v7005_v46 }
 0xf1b   :  { %v2404_v57 = vmax.f32 %v2398_v58, %v6059_v13  ;;  %v2406_v16 = vmax.f32 %v2400_v56, %v6067_v22  ;;  %v2399_v3 = vadd.f32 %v2393_v54, %v6752_v45  ;;  %v2401_v19 = vadd.f32 %v2395_v4, %v6755_v32  ;;  %v6989_v56 = vld [vmem:[#allocation7 + $0x130] sm:$0xff]   ;;  %v6993_v54 = vld [vmem:[#allocation7 + $0x168] sm:$0xff]  }
 0xf1c   :  { %v2302_v52 = vpop.f32.mrf.mxu0  ;;  %v2343_v38 = vpop.f32.mrf.mxu1  ;;  %8700 = vst [vmem:[#allocation46_spill] sm:$0xff] %v6989_v56  ;;  %8701 = vst [vmem:[#allocation79_spill] sm:$0xff] %v6993_v54 }
 0xf1d   :  { %v2405_v0 = vmax.f32 %v2399_v3, %v6061_v15  ;;  %v2407_v17 = vmax.f32 %v2401_v19, %v6071_v24  ;;  %v6961_v55 = vmin.f32 %v2404_v57, %v6065_v21  ;;  %v6964_v26 = vmin.f32 %v2406_v16, %v6077_v35  ;;  %v6980_v52 = vld [vmem:[#allocation7 + $0x138] sm:$0xff]   ;;  %v8709_v16 = vld [vmem:[#allocation49_spill] sm:$0xff] }
 0xf1e   :  { %8698 = vst [vmem:[#allocation45_spill] sm:$0xff] %v6980_v52 }
 0xf1f   :  { %v6967_v58 = vmin.f32 %v2405_v0, %v6069_v23  ;;  %v6970_v59 = vmin.f32 %v2407_v17, %v6079_v49  ;;  %v2416_v19 = vpack.c.bf16 %v6961_v55, %v6961_v55  ;;  %v2418_v32 = vpack.c.bf16 %v6964_v26, %v6964_v26  ;;  %v7028_v0 = vld [vmem:[#allocation7 + $0x148] sm:$0xff]   ;;  %v8712_v17 = vld [vmem:[#allocation30_spill] sm:$0xff] }
 0xf20   :  { %8710 = vst [vmem:[#allocation82_spill] sm:$0xff] %v7028_v0 }
 0xf21   :  { %v2417_v45 = vpack.c.bf16 %v6967_v58, %v6967_v58  ;;  %v2419_v3 = vpack.c.bf16 %v6970_v59, %v6970_v59 }
 0xf23   :  { %2454 = vmatprep.mubr.bf16.mxu1 %v2417_v45  ;;  %2494 = vmatprep.mubr.bf16.mxu0 %v2419_v3  ;;  %v8713_v3 = vld [vmem:[#allocation58_spill] sm:$0xff] }
 0xf24   :  { %2455 = vmatmul.mubr.bf16.vlgmr.msra.gmra.mxu1 %v2416_v19  ;;  %2495 = vmatmul.mubr.bf16.vlgmr.msra.gmra.mxu0 %v2418_v32  ;;  %v8714_v32 = vld [vmem:[#allocation18_spill] sm:$0xff] }
 0xf25   :  { %4575 = vmatpush3.bf16.msra.mxu1 %v6980_v52  ;;  %2554 = vmatpush1.bf16.msra.mxu0 %v8623_v20  ;;  %v6997_v20 = vld [vmem:[#allocation7 + $0x128] sm:$0xff]  }
 0xf26   :  { %4576 = vmatprep.subr.bf16.mxu1 %v6984_v5  ;;  %2555 = vmatprep.subr.bf16.mxu0 %v8625_v62  ;;  %8702 = vst [vmem:[#allocation48_spill] sm:$0xff] %v6997_v20  ;;  %v7001_v62 = vld [vmem:[#allocation7 + $0x160] sm:$0xff]  }
 0xf27   :  { %2585 = vmatprep.mubr.bf16.mxu0 %v8419_v37  ;;  %8703 = vst [vmem:[#allocation55_spill] sm:$0xff] %v7001_v62 }
 0xf29   :  { %4577 = vmatpush3.bf16.msra.mxu1 %v6989_v56  ;;  %2556 = vmatpush1.bf16.msra.mxu0 %v8627_v60  ;;  %v7009_v60 = vld [vmem:[#allocation7 + $0x158] sm:$0xff]  }
 0xf2a   :  { %4578 = vmatprep.subr.bf16.mxu1 %v6993_v54  ;;  %2557 = vmatprep.subr.bf16.mxu0 %v8629_v2  ;;  %8705 = vst [vmem:[#allocation81_spill] sm:$0xff] %v7009_v60  ;;  %v7013_v2 = vld [vmem:[#allocation7 + $0x118] sm:$0xff]  }
 0xf2b   :  { %8706 = vst [vmem:[#allocation59_spill] sm:$0xff] %v7013_v2 }
 0xf2d   :  { %4579 = vmatpush3.bf16.msra.mxu1 %v6997_v20  ;;  %2558 = vmatpush1.bf16.msra.mxu0 %v8631_v8 }
 0xf2e   :  { %4580 = vmatprep.subr.bf16.mxu1 %v7001_v62  ;;  %2559 = vmatprep.subr.bf16.mxu0 %v8633_v10  ;;  %v7017_v10 = vld [vmem:[#allocation7 + $0x150] sm:$0xff]  }
 0xf2f   :  { %8707 = vst [vmem:[#allocation54_spill] sm:$0xff] %v7017_v10 }
 0xf31   :  { %4581 = vmatpush3.bf16.msra.mxu1 %v7005_v46  ;;  %2560 = vmatpush1.bf16.msra.mxu0 %v8635_v50 }
 0xf32   :  { %4582 = vmatprep.subr.bf16.mxu1 %v7009_v60  ;;  %2561 = vmatprep.subr.bf16.mxu0 %v8637_v42  ;;  %v7023_v42 = vld [vmem:[#allocation7 + $0x110] sm:$0xff]  }
 0xf33   :  { %8708 = vst [vmem:[#allocation56_spill] sm:$0xff] %v7023_v42 }
 0xf35   :  { %4583 = vmatpush3.bf16.msra.mxu1 %v7013_v2  ;;  %2562 = vmatpush1.bf16.msra.mxu0 %v8639_v12 }
 0xf36   :  { %v2379_v8 = vpop.f32.mrf.mxu0  ;;  %4584 = vmatprep.subr.bf16.mxu1 %v7017_v10  ;;  %2563 = vmatprep.subr.bf16.mxu0 %v8641_v14  ;;  %v8711_v14 = vld [vmem:[#allocation51_spill] sm:$0xff] }
 0xf37   :  { %vm2390_vm13 = vcmp.ge.f32.partialorder %v2379_v8, 0.0 }
 0xf38   :  { %v2396_v50 = vsel %vm2390_vm13, 0.0157, %v8494_v41  ;;  %v2381_v4 = vpop.f32.mrf.mxu0 }
 0xf39   :  { %v2402_v57 = vadd.f32 %v2396_v50, %v6799_v27  ;;  %vm2391_vm14 = vcmp.ge.f32.partialorder %v2381_v4, 0.0  ;;  %4585 = vmatpush3.bf16.msra.mxu1 %v7023_v42  ;;  %2564 = vmatpush1.bf16.msra.mxu0 %v8709_v16  ;;  %v7035_v50 = vld [vmem:[#allocation7 + $0x108] sm:$0xff]   ;;  %v8717_v16 = vld [vmem:[#allocation19_spill] sm:$0xff]  ;;  %v7042_v42 = vld [vmem:[#allocation7 + $0x140] sm:$0xff]  }
 0xf3a   :  { %v2397_v12 = vsel %vm2391_vm14, 0.0157, %v8494_v41  ;;  %v2383_v38 = vpop.f32.mrf.mxu0  ;;  %4586 = vmatprep.subr.bf16.mxu1 %v7028_v0  ;;  %2565 = vmatprep.subr.bf16.mxu0 %v8711_v14  ;;  %8715 = vst [vmem:[#allocation49_spill] sm:$0xff] %v7035_v50  ;;  %v8716_v4 = vld [vmem:[#allocation53_spill] sm:$0xff]  ;;  %8719 = vst [vmem:[#allocation58_spill] sm:$0xff] %v7042_v42 }
 0xf3b   :  { %v2408_v45 = vmax.f32 %v2402_v57, %v8712_v17  ;;  %v2403_v27 = vadd.f32 %v2397_v12, %v8713_v3  ;;  %v8720_v14 = vld [vmem:[#allocation57_spill] sm:$0xff]  ;;  %v8721_v57 = vld [vmem:[#allocation20_spill] sm:$0xff] }
 0xf3c   :  { %v2384_v19 = vpop.f32.mrf.mxu0  ;;  %v7049_v3 = vld [vmem:[#allocation7 + $0x100] sm:$0xff]  }
 0xf3d   :  { %v2409_v8 = vmax.f32 %v2403_v27, %v8714_v32  ;;  %4587 = vmatpush3.bf16.msra.mxu1 %v7035_v50  ;;  %2566 = vmatpush1.bf16.msra.mxu0 %v8716_v4  ;;  %v7040_v38 = vmin.f32 %v2408_v45, %v8717_v16  ;;  %8723 = vst [vmem:[#allocation57_spill] sm:$0xff] %v7049_v3  ;;  %v8724_v19 = vld [vmem:[#allocation61_spill] sm:$0xff]  ;;  %v8725_v4 = vld [vmem:[#allocation23_spill] sm:$0xff] }
 0xf3e   :  { %4588 = vmatprep.subr.bf16.mxu1 %v7042_v42  ;;  %2567 = vmatprep.subr.bf16.mxu0 %v8720_v14  ;;  %v8726_v42 = vld [vmem:[#allocation24_spill] sm:$0xff]  ;;  %v8732_v16 = vld [vmem:[#allocation25_spill] sm:$0xff]  ;;  %v8733_v50 = vld [vmem:[#allocation47_spill] sm:$0xff] }
 0xf3f   :  { %8718 = vst [vmem:[#allocation51_spill] sm:$0xff] %v7040_v38  ;;  %v7047_v12 = vmin.f32 %v2409_v8, %v8721_v57  ;;  %v2420_v45 = vpack.c.bf16 %v7040_v38, %v7040_v38  ;;  %v8727_v8 = vld [vmem:[#allocation63_spill] sm:$0xff]  ;;  %v8728_v14 = vld [vmem:[#allocation64_spill] sm:$0xff]  ;;  %v8730_v57 = vld [vmem:[#allocation33_spill] sm:$0xff] }
 0xf41   :  { %8722 = vst [vmem:[#allocation53_spill] sm:$0xff] %v7047_v12  ;;  %4589 = vmatpush3.bf16.msra.mxu1 %v7049_v3  ;;  %v2421_v27 = vpack.c.bf16 %v7047_v12, %v7047_v12  ;;  %2568 = vmatpush1.bf16.msra.mxu0 %v8724_v19  ;;  %v8729_v3 = vld [vmem:[#allocation35_spill] sm:$0xff]  ;;  %v8731_v19 = vld [vmem:[#allocation65_spill] sm:$0xff] }
 0xf42   :  { %2594 = vmatprep.subr.bf16.mxu1 %v8725_v4  ;;  %2635 = vmatprep.subr.bf16.mxu0 %v8726_v42  ;;  %v8734_v4 = vld [vmem:[#allocation26_spill] sm:$0xff] }
 0xf43   :  { %2534 = vmatprep.mubr.bf16.mxu1 %v2421_v27  ;;  %v8735_v42 = vld [vmem:[#allocation50_spill] sm:$0xff]  ;;  %v8736_v27 = vld [vmem:[#allocation36_spill] sm:$0xff] }
 0xf44   :  { %2535 = vmatmul.mubr.bf16.vlgmr.msra.gmra.mxu1 %v2420_v45  ;;  %v8737_v45 = vld [vmem:[#allocation27_spill] sm:$0xff] }
 0xf45   :  { %2595 = vmatpush1.bf16.msra.mxu1 %v8727_v8  ;;  %2626 = vmatprep.mubr.bf16.mxu1 %v8419_v37  ;;  %v8738_v8 = vld [vmem:[#allocation52_spill] sm:$0xff] }
 0xf46   :  { %2596 = vmatprep.subr.bf16.mxu1 %v8728_v14  ;;  %v8739_v14 = vld [vmem:[#allocation28_spill] sm:$0xff] }
 0xf49   :  { %2597 = vmatpush1.bf16.msra.mxu1 %v8729_v3  ;;  %v8740_v3 = vld [vmem:[#allocation34_spill] sm:$0xff] }
 0xf4a   :  { %2598 = vmatprep.subr.bf16.mxu1 %v8730_v57  ;;  %v8741_v57 = vld [vmem:[#allocation29_spill] sm:$0xff] }
 0xf4d   :  { %2599 = vmatpush1.bf16.msra.mxu1 %v8731_v19  ;;  %v8742_v19 = vld [vmem:[#allocation22_spill] sm:$0xff] }
 0xf4e   :  { %2600 = vmatprep.subr.bf16.mxu1 %v8732_v16 }
 0xf51   :  { %2601 = vmatpush1.bf16.msra.mxu1 %v8733_v50 }
 0xf52   :  { %2602 = vmatprep.subr.bf16.mxu1 %v8734_v4 }
 0xf55   :  { %2603 = vmatpush1.bf16.msra.mxu1 %v8735_v42 }
 0xf56   :  { %2604 = vmatprep.subr.bf16.mxu1 %v8736_v27 }
 0xf59   :  { %2605 = vmatpush1.bf16.msra.mxu1 %v8737_v45  ;;  %v7079_v45 = vld [vmem:[%s7929_s5] ss:$0 sm:$0xff] }
 0xf5a   :  { %2606 = vmatprep.subr.bf16.mxu1 %v8738_v8 }
 0xf5d   :  { %2607 = vmatpush1.bf16.msra.mxu1 %v8739_v14 }
 0xf5e   :  { %2608 = vmatprep.subr.bf16.mxu1 %v8740_v3 }
 0xf61   :  { %2609 = vmatpush1.bf16.msra.mxu1 %v8741_v57 }
 0xf62   :  { %4596 = vmatprep.subr.bf16.mxu1 %v8742_v19 }
 0xfe4   :  { %v4546_v16 = vpop.f32.mrf.mxu1  ;;  %v4568_v50 = vpop.f32.mrf.mxu0 }
 0xfe6   :  { %v4547_v32 = vpop.f32.mrf.mxu1  ;;  %v4569_v4 = vpop.f32.mrf.mxu0 }
 0xfe7   :  { %v4548_v0 = vadd.f32 %v4547_v32, %v4546_v16  ;;  %v4570_v3 = vadd.f32 %v4569_v4, %v4568_v50  ;;  %v8761_v4 = vld [vmem:[#allocation42_spill] sm:$0xff] }
 0xfe8   :  { %v4549_v12 = vpop.f32.mrf.mxu1  ;;  %v4571_v42 = vpop.f32.mrf.mxu0 }
 0xfe9   :  { %v2457_v8 = vadd.f32 %v7079_v45, %v4548_v0 }
 0xfea   :  { %v4550_v17 = vpop.f32.mrf.mxu1  ;;  %v4572_v27 = vpop.f32.mrf.mxu0 }
 0xfeb   :  { %v2497_v19 = vadd.f32 %v4570_v3, %v2457_v8  ;;  %v8762_v8 = vld [vmem:[#allocation75_spill] sm:$0xff]  ;;  %v8764_v3 = vld [vmem:[#allocation76_spill] sm:$0xff] }
0x1004   :  { %v4590_v14 = vpop.f32.mrf.mxu1 }
0x1006   :  { %v4591_v57 = vpop.f32.mrf.mxu1 }
0x1007   :  { %v4592_v38 = vadd.f32 %v4591_v57, %v4590_v14  ;;  %v8763_v14 = vld [vmem:[#allocation43_spill] sm:$0xff]  ;;  %v8765_v57 = vld [vmem:[#allocation44_spill] sm:$0xff] }
0x1008   :  { %v4593_v10 = vpop.f32.mrf.mxu1 }
0x1009   :  { %v2537_v2 = vadd.f32 %v4592_v38, %v2497_v19  ;;  %v8758_v10 = vld [vmem:[#allocation73_spill] sm:$0xff]  ;;  %v8760_v19 = vld [vmem:[#allocation74_spill] sm:$0xff] }
0x100a   :  { %v4594_v60 = vpop.f32.mrf.mxu1  ;;  %v8759_v38 = vld [vmem:[#allocation41_spill] sm:$0xff] }
0x100b   :  { %2542 = vmax.xlane.f32.xlu0 %v2537_v2  ;;  %v8756_v60 = vld [vmem:[#allocation72_spill] sm:$0xff] }
0x1094   :  { %v2543_v12 = vpop.xlane.xlu0 %2542 }
0x1095   :  { %v2544_v17 = vsub.f32 %v2537_v2, %v2543_v12  ;;  %v8757_v2 = vld [vmem:[#allocation40_spill] sm:$0xff]  ;;  %v8766_v12 = vld [vmem:[#allocation77_spill] sm:$0xff] }
0x1097   :  { %v2545_v42 = vmul.f32 1.442695, %v2544_v17  ;;  %v7131_v17 = vld [vmem:[#allocation8 + $0x154] ss:$24 sps:$4 sm:$0xff]  }
0x1098   :  { %8767 = vst [vmem:[#allocation61_spill] sm:$0xff] %v7131_v17 }
0x1099   :  { %5087 = vpow2.f32 %v2545_v42 }
0x10a6   :  { %v5088_v32 = vpop.eup %5087 }
0x10a7   :  { %2547 = vadd.xlane.f32.xlu0 %v5088_v32 }
0x1130   :  { %v2548_v16 = vpop.xlane.xlu0 %2547 }
0x1131   :  { %5089 = vrcp.f32 %v2548_v16 }
0x113e   :  { %v5090_v27 = vpop.eup %5089 }
0x113f   :  { %v2550_v46 = vmul.f32 %v5090_v27, %v5088_v32 }
0x1141   :  { %v2551_v0 = vsub.f32 %v2550_v46, %v5971_v33  ;;  %v8755_v46 = vld [vmem:[#allocation62_spill] sm:$0xff] }
0x1143   :  { %v2552_v50 = vpack.c.bf16 %v2551_v0, %v2551_v0 }
0x1145   :  { %2586 = vmatmul.mubr.bf16.vlgmr.msra.gmra.mxu0 %v2552_v50  ;;  %2627 = vmatmul.mubr.bf16.vlgmr.msra.gmra.mxu1 %v2552_v50 }
0x1146   :  { %2636 = vmatpush1.bf16.msra.mxu0 %v6654_v40  ;;  %2667 = vmatprep.mubr.bf16.mxu0 %v8419_v37  ;;  %v8743_v40 = vld [vmem:[#allocation37_spill] sm:$0xff] }
0x1147   :  { %2637 = vmatprep.subr.bf16.mxu0 %v6658_v25  ;;  %4597 = vmatpush3.bf16.msra.mxu1 %v6838_v53  ;;  %v8744_v25 = vld [vmem:[#allocation31_spill] sm:$0xff] }
0x1148   :  { %4598 = vmatprep.subr.bf16.mxu1 %v6841_v7 }
0x114a   :  { %2638 = vmatpush1.bf16.msra.mxu0 %v6663_v30  ;;  %v8745_v30 = vld [vmem:[#allocation32_spill] sm:$0xff] }
0x114b   :  { %2639 = vmatprep.subr.bf16.mxu0 %v6666_v11  ;;  %4599 = vmatpush3.bf16.msra.mxu1 %v6846_v47  ;;  %v8746_v11 = vld [vmem:[#allocation66_spill] sm:$0xff] }
0x114c   :  { %4600 = vmatprep.subr.bf16.mxu1 %v6849_v6 }
0x114e   :  { %2640 = vmatpush1.bf16.msra.mxu0 %v6671_v9  ;;  %v8747_v9 = vld [vmem:[#allocation67_spill] sm:$0xff] }
0x114f   :  { %2641 = vmatprep.subr.bf16.mxu0 %v6674_v29  ;;  %4601 = vmatpush3.bf16.msra.mxu1 %v6854_v48  ;;  %v8748_v29 = vld [vmem:[#allocation21_spill] sm:$0xff] }
0x1150   :  { %4602 = vmatprep.subr.bf16.mxu1 %v6857_v43 }
0x1152   :  { %2642 = vmatpush1.bf16.msra.mxu0 %v6679_v18  ;;  %v8749_v18 = vld [vmem:[#allocation68_spill] sm:$0xff] }
0x1153   :  { %2643 = vmatprep.subr.bf16.mxu0 %v6682_v1  ;;  %4603 = vmatpush3.bf16.msra.mxu1 %v6862_v51  ;;  %v8750_v1 = vld [vmem:[#allocation69_spill] sm:$0xff] }
0x1154   :  { %4604 = vmatprep.subr.bf16.mxu1 %v6865_v39 }
0x1156   :  { %2644 = vmatpush1.bf16.msra.mxu0 %v6687_v28  ;;  %v8751_v28 = vld [vmem:[#allocation70_spill] sm:$0xff] }
0x1157   :  { %2645 = vmatprep.subr.bf16.mxu0 %v6690_v31  ;;  %4605 = vmatpush3.bf16.msra.mxu1 %v6870_v34  ;;  %v8752_v31 = vld [vmem:[#allocation60_spill] sm:$0xff] }
0x1158   :  { %4606 = vmatprep.subr.bf16.mxu1 %v6873_v36 }
0x115a   :  { %2646 = vmatpush1.bf16.msra.mxu0 %v6695_v61  ;;  %v8753_v61 = vld [vmem:[#allocation39_spill] sm:$0xff] }
0x115b   :  { %2647 = vmatprep.subr.bf16.mxu0 %v6698_v44  ;;  %4607 = vmatpush3.bf16.msra.mxu1 %v6878_v63  ;;  %v8754_v44 = vld [vmem:[#allocation71_spill] sm:$0xff] }
0x115c   :  { %4608 = vmatprep.subr.bf16.mxu1 %v8743_v40 }
0x115e   :  { %2648 = vmatpush1.bf16.msra.mxu0 %v8744_v25 }
0x115f   :  { %2649 = vmatprep.subr.bf16.mxu0 %v8745_v30  ;;  %4609 = vmatpush3.bf16.msra.mxu1 %v8746_v11 }
0x1160   :  { %4610 = vmatprep.subr.bf16.mxu1 %v8747_v9 }
0x1162   :  { %2650 = vmatpush1.bf16.msra.mxu0 %v8748_v29 }
0x1163   :  { %4618 = vmatprep.subr.bf16.mxu0 %v8749_v18  ;;  %4611 = vmatpush3.bf16.msra.mxu1 %v8750_v1 }
0x1164   :  { %4640 = vmatprep.subr.bf16.mxu1 %v8751_v28 }
0x1165   :  { %2668 = vmatmul.mubr.bf16.vlgmr.msra.gmra.mxu0 %v2552_v50 }
0x1166   :  { %4619 = vmatpush3.bf16.msra.mxu0 %v8752_v31 }
0x1167   :  { %4620 = vmatprep.subr.bf16.mxu0 %v8753_v61 }
0x116a   :  { %4621 = vmatpush3.bf16.msra.mxu0 %v8754_v44 }
0x116b   :  { %4622 = vmatprep.subr.bf16.mxu0 %v8755_v46 }
0x116e   :  { %4623 = vmatpush3.bf16.msra.mxu0 %v8756_v60 }
0x116f   :  { %4624 = vmatprep.subr.bf16.mxu0 %v8757_v2 }
0x1172   :  { %4625 = vmatpush3.bf16.msra.mxu0 %v8758_v10 }
0x1173   :  { %4626 = vmatprep.subr.bf16.mxu0 %v8759_v38 }
0x1176   :  { %4627 = vmatpush3.bf16.msra.mxu0 %v8760_v19 }
0x1177   :  { %4628 = vmatprep.subr.bf16.mxu0 %v8761_v4 }
0x117a   :  { %4629 = vmatpush3.bf16.msra.mxu0 %v8762_v8 }
0x117b   :  { %4630 = vmatprep.subr.bf16.mxu0 %v8763_v14 }
0x117e   :  { %4631 = vmatpush3.bf16.msra.mxu0 %v8764_v3 }
0x117f   :  { %4632 = vmatprep.subr.bf16.mxu0 %v8765_v57 }
0x1182   :  { %4633 = vmatpush3.bf16.msra.mxu0 %v8766_v12 }
0x1183   :  { %2843 = vmatprep.subr.bf16.mxu0 %v7131_v17 }
0x1205   :  { %v2587_v42 = vpop.f32.mrf.mxu0  ;;  %v2628_v32 = vpop.f32.mrf.mxu1 }
0x1206   :  { %vm2676_vm15 = vcmp.ge.f32.partialorder %v2587_v42, 0.0  ;;  %vm2678_vm0 = vcmp.ge.f32.partialorder %v2628_v32, 0.0 }
0x1207   :  { %v2682_v16 = vsel %vm2676_vm15, 0.0157, %v8494_v41  ;;  %v2684_v27 = vsel %vm2678_vm0, 0.0157, %v8494_v41  ;;  %v2589_v0 = vpop.f32.mrf.mxu0  ;;  %v2630_v50 = vpop.f32.mrf.mxu1 }
0x1208   :  { %v2688_v25 = vadd.f32 %v2682_v16, %v6961_v55  ;;  %v2690_v30 = vadd.f32 %v2684_v27, %v6964_v26  ;;  %vm2677_vm1 = vcmp.ge.f32.partialorder %v2589_v0, 0.0  ;;  %vm2679_vm2 = vcmp.ge.f32.partialorder %v2630_v50, 0.0  ;;  %v7176_v50 = vld [vmem:[#allocation8 + $0x120] ss:$24 sps:$4 sm:$0xff]  }
0x1209   :  { %v2683_v29 = vsel %vm2677_vm1, 0.0157, %v8494_v41  ;;  %v2685_v17 = vsel %vm2679_vm2, 0.0157, %v8494_v41  ;;  %v2591_v12 = vpop.f32.mrf.mxu0  ;;  %v2632_v57 = vpop.f32.mrf.mxu1  ;;  %8770 = vst [vmem:[#allocation63_spill] sm:$0xff] %v7176_v50 }
0x120a   :  { %v2694_v42 = vmax.f32 %v2688_v25, %v6059_v13  ;;  %v2696_v32 = vmax.f32 %v2690_v30, %v6067_v22  ;;  %v2689_v3 = vadd.f32 %v2683_v29, %v6967_v58  ;;  %v2691_v14 = vadd.f32 %v2685_v17, %v6970_v59  ;;  %v7171_v17 = vld [vmem:[#allocation8 + $0x124] ss:$24 sps:$4 sm:$0xff]   ;;  %v7180_v25 = vld [vmem:[#allocation8 + $0xf4] ss:$24 sps:$4 sm:$0xff]   ;;  %v7184_v30 = vld [vmem:[#allocation8 + $0xf0] ss:$24 sps:$4 sm:$0xff]  }
0x120b   :  { %v2592_v8 = vpop.f32.mrf.mxu0  ;;  %v2633_v55 = vpop.f32.mrf.mxu1  ;;  %8769 = vst [vmem:[#allocation24_spill] sm:$0xff] %v7171_v17  ;;  %8771 = vst [vmem:[#allocation64_spill] sm:$0xff] %v7180_v25  ;;  %v7188_v29 = vld [vmem:[#allocation8 + $0xc4] ss:$24 sps:$4 sm:$0xff]  }
0x120c   :  { %v2695_v26 = vmax.f32 %v2689_v3, %v6061_v15  ;;  %v2697_v16 = vmax.f32 %v2691_v14, %v6071_v24  ;;  %v7147_v27 = vmin.f32 %v2694_v42, %v6065_v21  ;;  %v7150_v12 = vmin.f32 %v2696_v32, %v6077_v35  ;;  %v7167_v3 = vld [vmem:[#allocation8 + $0x150] ss:$24 sps:$4 sm:$0xff]   ;;  %8772 = vst [vmem:[#allocation35_spill] sm:$0xff] %v7184_v30  ;;  %v8774_v42 = vld [vmem:[#allocation80_spill] sm:$0xff] }
0x120d   :  { %8768 = vst [vmem:[#allocation23_spill] sm:$0xff] %v7167_v3  ;;  %8773 = vst [vmem:[#allocation33_spill] sm:$0xff] %v7188_v29  ;;  %v7192_v32 = vld [vmem:[#allocation8 + $0xc0] ss:$24 sps:$4 sm:$0xff]   ;;  %v8776_v55 = vld [vmem:[#allocation81_spill] sm:$0xff] }
0x120e   :  { %v7153_v57 = vmin.f32 %v2695_v26, %v6069_v23  ;;  %v7156_v0 = vmin.f32 %v2697_v16, %v6079_v49  ;;  %v2706_v8 = vpack.c.bf16 %v7147_v27, %v7147_v27  ;;  %v2708_v14 = vpack.c.bf16 %v7150_v12, %v7150_v12  ;;  %8775 = vst [vmem:[#allocation65_spill] sm:$0xff] %v7192_v32  ;;  %v7196_v26 = vld [vmem:[#allocation8 + $0x94] ss:$24 sps:$4 sm:$0xff]   ;;  %v8778_v16 = vld [vmem:[#allocation59_spill] sm:$0xff] }
0x120f   :  { %8777 = vst [vmem:[#allocation25_spill] sm:$0xff] %v7196_v26 }
0x1210   :  { %v2707_v58 = vpack.c.bf16 %v7153_v57, %v7153_v57  ;;  %v2709_v59 = vpack.c.bf16 %v7156_v0, %v7156_v0 }
0x1212   :  { %2744 = vmatprep.mubr.bf16.mxu1 %v2707_v58  ;;  %2784 = vmatprep.mubr.bf16.mxu0 %v2709_v59  ;;  %v7200_v58 = vld [vmem:[#allocation8 + $0x90] ss:$24 sps:$4 sm:$0xff]  }
0x1213   :  { %2745 = vmatmul.mubr.bf16.vlgmr.msra.gmra.mxu1 %v2706_v8  ;;  %2785 = vmatmul.mubr.bf16.vlgmr.msra.gmra.mxu0 %v2708_v14  ;;  %8779 = vst [vmem:[#allocation47_spill] sm:$0xff] %v7200_v58  ;;  %v8780_v8 = vld [vmem:[#allocation54_spill] sm:$0xff]  ;;  %v7204_v14 = vld [vmem:[#allocation8 + $0x64] ss:$24 sps:$4 sm:$0xff]  }
0x1214   :  { %4641 = vmatpush3.bf16.msra.mxu1 %v6980_v52  ;;  %2844 = vmatpush1.bf16.msra.mxu0 %v7167_v3  ;;  %8781 = vst [vmem:[#allocation26_spill] sm:$0xff] %v7204_v14 }
0x1215   :  { %4642 = vmatprep.subr.bf16.mxu1 %v6984_v5  ;;  %2845 = vmatprep.subr.bf16.mxu0 %v7171_v17 }
0x1216   :  { %2875 = vmatprep.mubr.bf16.mxu0 %v8419_v37 }
0x1218   :  { %4643 = vmatpush3.bf16.msra.mxu1 %v6989_v56  ;;  %2846 = vmatpush1.bf16.msra.mxu0 %v7176_v50  ;;  %v7229_v50 = vld [vmem:[#allocation8 + $0x4] ss:$24 sps:$4 sm:$0xff]  }
0x1219   :  { %4644 = vmatprep.subr.bf16.mxu1 %v6993_v54  ;;  %2847 = vmatprep.subr.bf16.mxu0 %v7180_v25  ;;  %v8790_v25 = vld [vmem:[#allocation49_spill] sm:$0xff]  ;;  %8795 = vst [vmem:[#allocation28_spill] sm:$0xff] %v7229_v50 }
0x121a   :  { %v7222_v54 = vld [vmem:[#allocation8 + $0x30] ss:$24 sps:$4 sm:$0xff]  }
0x121b   :  { %8791 = vst [vmem:[#allocation27_spill] sm:$0xff] %v7222_v54 }
0x121c   :  { %4645 = vmatpush3.bf16.msra.mxu1 %v6997_v20  ;;  %2848 = vmatpush1.bf16.msra.mxu0 %v7184_v30  ;;  %v7215_v30 = vld [vmem:[#allocation8 + $0x34] ss:$24 sps:$4 sm:$0xff]  }
0x121d   :  { %4646 = vmatprep.subr.bf16.mxu1 %v7001_v62  ;;  %2849 = vmatprep.subr.bf16.mxu0 %v7188_v29  ;;  %v8785_v62 = vld [vmem:[#allocation82_spill] sm:$0xff]  ;;  %8786 = vst [vmem:[#allocation36_spill] sm:$0xff] %v7215_v30  ;;  %v8788_v20 = vld [vmem:[#allocation53_spill] sm:$0xff] }
0x1220   :  { %4647 = vmatpush3.bf16.msra.mxu1 %v8774_v42  ;;  %2850 = vmatpush1.bf16.msra.mxu0 %v7192_v32  ;;  %v8782_v42 = vld [vmem:[#allocation51_spill] sm:$0xff] }
0x1221   :  { %4648 = vmatprep.subr.bf16.mxu1 %v8776_v55  ;;  %2851 = vmatprep.subr.bf16.mxu0 %v7196_v26  ;;  %v8783_v26 = vld [vmem:[#allocation56_spill] sm:$0xff] }
0x1224   :  { %4649 = vmatpush3.bf16.msra.mxu1 %v8778_v16  ;;  %2852 = vmatpush1.bf16.msra.mxu0 %v7200_v58  ;;  %v7210_v16 = vld [vmem:[#allocation8 + $0x60] ss:$24 sps:$4 sm:$0xff]  }
0x1225   :  { %v2669_v59 = vpop.f32.mrf.mxu0  ;;  %4650 = vmatprep.subr.bf16.mxu1 %v8780_v8  ;;  %2853 = vmatprep.subr.bf16.mxu0 %v7204_v14  ;;  %8784 = vst [vmem:[#allocation50_spill] sm:$0xff] %v7210_v16 }
0x1226   :  { %vm2680_vm3 = vcmp.ge.f32.partialorder %v2669_v59, 0.0  ;;  %v8787_v59 = vld [vmem:[#allocation30_spill] sm:$0xff] }
0x1227   :  { %v2686_v55 = vsel %vm2680_vm3, 0.0157, %v8494_v41  ;;  %v2671_v32 = vpop.f32.mrf.mxu0 }
0x1228   :  { %v2692_v29 = vadd.f32 %v2686_v55, %v8782_v42  ;;  %vm2681_vm4 = vcmp.ge.f32.partialorder %v2671_v32, 0.0  ;;  %4651 = vmatpush3.bf16.msra.mxu1 %v8783_v26  ;;  %2854 = vmatpush1.bf16.msra.mxu0 %v7210_v16  ;;  %v8789_v55 = vld [vmem:[#allocation18_spill] sm:$0xff] }
0x1229   :  { %v2687_v58 = vsel %vm2681_vm4, 0.0157, %v8494_v41  ;;  %v2673_v8 = vpop.f32.mrf.mxu0  ;;  %4652 = vmatprep.subr.bf16.mxu1 %v8785_v62  ;;  %2855 = vmatprep.subr.bf16.mxu0 %v7215_v30  ;;  %v8794_v62 = vld [vmem:[#allocation58_spill] sm:$0xff] }
0x122a   :  { %v2698_v14 = vmax.f32 %v2692_v29, %v8787_v59  ;;  %v2693_v42 = vadd.f32 %v2687_v58, %v8788_v20  ;;  %v8792_v8 = vld [vmem:[#allocation19_spill] sm:$0xff]  ;;  %v8796_v29 = vld [vmem:[#allocation20_spill] sm:$0xff]  ;;  %v8798_v58 = vld [vmem:[#allocation57_spill] sm:$0xff] }
0x122b   :  { %v2674_v32 = vpop.f32.mrf.mxu0 }
0x122c   :  { %v2699_v26 = vmax.f32 %v2693_v42, %v8789_v55  ;;  %4653 = vmatpush3.bf16.msra.mxu1 %v8790_v25  ;;  %2856 = vmatpush1.bf16.msra.mxu0 %v7222_v54  ;;  %v7226_v16 = vmin.f32 %v2698_v14, %v8792_v8  ;;  %v7238_v32 = vld [vmem:[#allocation8] ss:$24 sps:$4 sm:$0xff]  }
0x122d   :  { %4654 = vmatprep.subr.bf16.mxu1 %v8794_v62  ;;  %2857 = vmatprep.subr.bf16.mxu0 %v7229_v50  ;;  %8799 = vst [vmem:[#allocation29_spill] sm:$0xff] %v7238_v32  ;;  %v7243_v62 = vld [vmem:[#allocation8 + $0x15c] ss:$24 sps:$4 sm:$0xff]  }
0x122e   :  { %8793 = vst [vmem:[#allocation52_spill] sm:$0xff] %v7226_v16  ;;  %v7233_v20 = vmin.f32 %v2699_v26, %v8796_v29  ;;  %v2710_v14 = vpack.c.bf16 %v7226_v16, %v7226_v16  ;;  %8800 = vst [vmem:[#allocation37_spill] sm:$0xff] %v7243_v62  ;;  %v7246_v50 = vld [vmem:[#allocation8 + $0x164] ss:$24 sps:$4 sm:$0xff]   ;;  %v7249_v26 = vld [vmem:[#allocation8 + $0x158] ss:$24 sps:$4 sm:$0xff]  }
0x122f   :  { %8801 = vst [vmem:[#allocation31_spill] sm:$0xff] %v7246_v50  ;;  %8802 = vst [vmem:[#allocation32_spill] sm:$0xff] %v7249_v26 }
0x1230   :  { %8797 = vst [vmem:[#allocation34_spill] sm:$0xff] %v7233_v20  ;;  %4655 = vmatpush3.bf16.msra.mxu1 %v8798_v58  ;;  %v2711_v42 = vpack.c.bf16 %v7233_v20, %v7233_v20  ;;  %2858 = vmatpush1.bf16.msra.mxu0 %v7238_v32  ;;  %v7253_v32 = vld [vmem:[#allocation8 + $0x12c] ss:$24 sps:$4 sm:$0xff]   ;;  %v7256_v58 = vld [vmem:[#allocation8 + $0x128] ss:$24 sps:$4 sm:$0xff]  }
0x1231   :  { %2884 = vmatprep.subr.bf16.mxu1 %v7243_v62  ;;  %2925 = vmatprep.subr.bf16.mxu0 %v7246_v50  ;;  %8803 = vst [vmem:[#allocation66_spill] sm:$0xff] %v7253_v32  ;;  %8804 = vst [vmem:[#allocation67_spill] sm:$0xff] %v7256_v58  ;;  %v7259_v62 = vld [vmem:[#allocation8 + $0xfc] ss:$24 sps:$4 sm:$0xff]  }
0x1232   :  { %2824 = vmatprep.mubr.bf16.mxu1 %v2711_v42  ;;  %8805 = vst [vmem:[#allocation21_spill] sm:$0xff] %v7259_v62  ;;  %v7262_v42 = vld [vmem:[#allocation8 + $0xf8] ss:$24 sps:$4 sm:$0xff]  }
0x1233   :  { %2825 = vmatmul.mubr.bf16.vlgmr.msra.gmra.mxu1 %v2710_v14  ;;  %8806 = vst [vmem:[#allocation68_spill] sm:$0xff] %v7262_v42  ;;  %v7265_v14 = vld [vmem:[#allocation8 + $0xcc] ss:$24 sps:$4 sm:$0xff]  }
0x1234   :  { %2885 = vmatpush1.bf16.msra.mxu1 %v7249_v26  ;;  %2916 = vmatprep.mubr.bf16.mxu1 %v8419_v37  ;;  %8807 = vst [vmem:[#allocation69_spill] sm:$0xff] %v7265_v14  ;;  %v7268_v26 = vld [vmem:[#allocation8 + $0xc8] ss:$24 sps:$4 sm:$0xff]  }
0x1235   :  { %2886 = vmatprep.subr.bf16.mxu1 %v7253_v32  ;;  %8808 = vst [vmem:[#allocation70_spill] sm:$0xff] %v7268_v26  ;;  %v7271_v32 = vld [vmem:[#allocation8 + $0x9c] ss:$24 sps:$4 sm:$0xff]  }
0x1236   :  { %8809 = vst [vmem:[#allocation60_spill] sm:$0xff] %v7271_v32 }
0x1238   :  { %2887 = vmatpush1.bf16.msra.mxu1 %v7256_v58  ;;  %v7274_v58 = vld [vmem:[#allocation8 + $0x98] ss:$24 sps:$4 sm:$0xff]  }
0x1239   :  { %2888 = vmatprep.subr.bf16.mxu1 %v7259_v62  ;;  %8810 = vst [vmem:[#allocation39_spill] sm:$0xff] %v7274_v58  ;;  %v7277_v62 = vld [vmem:[#allocation8 + $0x6c] ss:$24 sps:$4 sm:$0xff]  }
0x123a   :  { %8811 = vst [vmem:[#allocation71_spill] sm:$0xff] %v7277_v62 }
0x123c   :  { %2889 = vmatpush1.bf16.msra.mxu1 %v7262_v42  ;;  %v7280_v42 = vld [vmem:[#allocation8 + $0x68] ss:$24 sps:$4 sm:$0xff]  }
0x123d   :  { %2890 = vmatprep.subr.bf16.mxu1 %v7265_v14  ;;  %8812 = vst [vmem:[#allocation62_spill] sm:$0xff] %v7280_v42  ;;  %v7283_v14 = vld [vmem:[#allocation8 + $0x3c] ss:$24 sps:$4 sm:$0xff]  }
0x123e   :  { %8813 = vst [vmem:[#allocation72_spill] sm:$0xff] %v7283_v14 }
0x1240   :  { %2891 = vmatpush1.bf16.msra.mxu1 %v7268_v26  ;;  %v7286_v26 = vld [vmem:[#allocation8 + $0x38] ss:$24 sps:$4 sm:$0xff]  }
0x1241   :  { %2892 = vmatprep.subr.bf16.mxu1 %v7271_v32  ;;  %8814 = vst [vmem:[#allocation40_spill] sm:$0xff] %v7286_v26  ;;  %v7289_v32 = vld [vmem:[#allocation8 + $0xc] ss:$24 sps:$4 sm:$0xff]  }
0x1242   :  { %8815 = vst [vmem:[#allocation73_spill] sm:$0xff] %v7289_v32 }
0x1244   :  { %2893 = vmatpush1.bf16.msra.mxu1 %v7274_v58  ;;  %v7292_v58 = vld [vmem:[#allocation8 + $0x8] ss:$24 sps:$4 sm:$0xff]  }
0x1245   :  { %2894 = vmatprep.subr.bf16.mxu1 %v7277_v62  ;;  %8816 = vst [vmem:[#allocation41_spill] sm:$0xff] %v7292_v58  ;;  %v8817_v62 = vld [vmem:[#allocation22_spill] sm:$0xff] }
0x1248   :  { %2895 = vmatpush1.bf16.msra.mxu1 %v7280_v42 }
0x1249   :  { %2896 = vmatprep.subr.bf16.mxu1 %v7283_v14 }
0x124c   :  { %2897 = vmatpush1.bf16.msra.mxu1 %v7286_v26 }
0x124d   :  { %2898 = vmatprep.subr.bf16.mxu1 %v7289_v32 }
0x1250   :  { %2899 = vmatpush1.bf16.msra.mxu1 %v7292_v58 }
0x1251   :  { %4662 = vmatprep.subr.bf16.mxu1 %v8817_v62 }
0x12d3   :  { %v4612_v50 = vpop.f32.mrf.mxu1  ;;  %v4634_v42 = vpop.f32.mrf.mxu0 }
0x12d5   :  { %v4613_v29 = vpop.f32.mrf.mxu1  ;;  %v4635_v8 = vpop.f32.mrf.mxu0 }
0x12d6   :  { %v4614_v20 = vadd.f32 %v4613_v29, %v4612_v50  ;;  %v4636_v30 = vadd.f32 %v4635_v8, %v4634_v42 }
0x12d7   :  { %v4615_v54 = vpop.f32.mrf.mxu1  ;;  %v4637_v14 = vpop.f32.mrf.mxu0 }
0x12d8   :  { %v2747_v26 = vadd.f32 %v7079_v45, %v4614_v20 }
0x12d9   :  { %v4616_v25 = vpop.f32.mrf.mxu1  ;;  %v4638_v55 = vpop.f32.mrf.mxu0 }
0x12da   :  { %v2787_v16 = vadd.f32 %v4636_v30, %v2747_v26  ;;  %v7298_v30 = vld [vmem:[#allocation8 + $0x160] ss:$24 sps:$4 sm:$0xff]  }
0x12f3   :  { %v4656_v59 = vpop.f32.mrf.mxu1 }
0x12f5   :  { %v4657_v32 = vpop.f32.mrf.mxu1 }
0x12f6   :  { %v4658_v56 = vadd.f32 %v4657_v32, %v4656_v59 }
0x12f7   :  { %v4659_v17 = vpop.f32.mrf.mxu1 }
0x12f8   :  { %v2827_v58 = vadd.f32 %v4658_v56, %v2787_v16  ;;  %v7310_v56 = vld [vmem:[#allocation8 + $0x104] ss:$24 sps:$4 sm:$0xff]   ;;  %v7318_v17 = vld [vmem:[#allocation8 + $0xd4] ss:$24 sps:$4 sm:$0xff]  }
0x12f9   :  { %v4660_v5 = vpop.f32.mrf.mxu1 }
0x12fa   :  { %2832 = vmax.xlane.f32.xlu1 %v2827_v58  ;;  %v7302_v5 = vld [vmem:[#allocation8 + $0x134] ss:$24 sps:$4 sm:$0xff]  }
0x1383   :  { %v2833_v62 = vpop.xlane.xlu1 %2832 }
0x1384   :  { %v2834_v3 = vsub.f32 %v2827_v58, %v2833_v62 }
0x1386   :  { %v2835_v52 = vmul.f32 1.442695, %v2834_v3  ;;  %v7315_v3 = vld [vmem:[#allocation8 + $0x100] ss:$24 sps:$4 sm:$0xff]  }
0x1388   :  { %5091 = vpow2.f32 %v2835_v52  ;;  %v7307_v52 = vld [vmem:[#allocation8 + $0x130] ss:$24 sps:$4 sm:$0xff]  }
0x1395   :  { %v5092_v54 = vpop.eup %5091 }
0x1396   :  { %2837 = vadd.xlane.f32.xlu0 %v5092_v54 }
0x141f   :  { %v2838_v25 = vpop.xlane.xlu0 %2837 }
0x1420   :  { %5093 = vrcp.f32 %v2838_v25 }
0x142d   :  { %v5094_v50 = vpop.eup %5093 }
0x142e   :  { %v2840_v55 = vmul.f32 %v5094_v50, %v5092_v54 }
0x1430   :  { %v2841_v29 = vsub.f32 %v2840_v55, %v5971_v33  ;;  %v8827_v55 = vld [vmem:[#allocation45_spill] sm:$0xff] }
0x1432   :  { %v2842_v8 = vpack.c.bf16 %v2841_v29, %v2841_v29  ;;  %v8828_v29 = vld [vmem:[#allocation23_spill] sm:$0xff] }
0x1434   :  { %2876 = vmatmul.mubr.bf16.vlgmr.msra.gmra.mxu0 %v2842_v8  ;;  %2917 = vmatmul.mubr.bf16.vlgmr.msra.gmra.mxu1 %v2842_v8 }
0x1435   :  { %2926 = vmatpush1.bf16.msra.mxu0 %v7298_v30  ;;  %2957 = vmatprep.mubr.bf16.mxu0 %v8419_v37 }
0x1436   :  { %2927 = vmatprep.subr.bf16.mxu0 %v7302_v5  ;;  %4663 = vmatpush3.bf16.msra.mxu1 %v6838_v53  ;;  %v7323_v53 = vld [vmem:[#allocation8 + $0xd0] ss:$24 sps:$4 sm:$0xff]  }
0x1437   :  { %4664 = vmatprep.subr.bf16.mxu1 %v6841_v7  ;;  %v7326_v7 = vld [vmem:[#allocation8 + $0xa4] ss:$24 sps:$4 sm:$0xff]  }
0x1439   :  { %2928 = vmatpush1.bf16.msra.mxu0 %v7307_v52 }
0x143a   :  { %2929 = vmatprep.subr.bf16.mxu0 %v7310_v56  ;;  %4665 = vmatpush3.bf16.msra.mxu1 %v6846_v47  ;;  %v7331_v47 = vld [vmem:[#allocation8 + $0xa0] ss:$24 sps:$4 sm:$0xff]  }
0x143b   :  { %4666 = vmatprep.subr.bf16.mxu1 %v6849_v6  ;;  %v7334_v6 = vld [vmem:[#allocation8 + $0x74] ss:$24 sps:$4 sm:$0xff]  }
0x143d   :  { %2930 = vmatpush1.bf16.msra.mxu0 %v7315_v3 }
0x143e   :  { %2931 = vmatprep.subr.bf16.mxu0 %v7318_v17  ;;  %4667 = vmatpush3.bf16.msra.mxu1 %v6854_v48  ;;  %v7339_v48 = vld [vmem:[#allocation8 + $0x70] ss:$24 sps:$4 sm:$0xff]  }
0x143f   :  { %4668 = vmatprep.subr.bf16.mxu1 %v6857_v43  ;;  %v7342_v43 = vld [vmem:[#allocation8 + $0x44] ss:$24 sps:$4 sm:$0xff]  }
0x1441   :  { %2932 = vmatpush1.bf16.msra.mxu0 %v7323_v53 }
0x1442   :  { %2933 = vmatprep.subr.bf16.mxu0 %v7326_v7  ;;  %4669 = vmatpush3.bf16.msra.mxu1 %v6862_v51  ;;  %v7347_v51 = vld [vmem:[#allocation8 + $0x40] ss:$24 sps:$4 sm:$0xff]  }
0x1443   :  { %4670 = vmatprep.subr.bf16.mxu1 %v6865_v39  ;;  %8818 = vst [vmem:[#allocation74_spill] sm:$0xff] %v7347_v51  ;;  %v7350_v39 = vld [vmem:[#allocation8 + $0x14] ss:$24 sps:$4 sm:$0xff]  }
0x1444   :  { %8819 = vst [vmem:[#allocation42_spill] sm:$0xff] %v7350_v39 }
0x1445   :  { %2934 = vmatpush1.bf16.msra.mxu0 %v7331_v47 }
0x1446   :  { %2935 = vmatprep.subr.bf16.mxu0 %v7334_v6  ;;  %4671 = vmatpush3.bf16.msra.mxu1 %v6870_v34  ;;  %v7355_v34 = vld [vmem:[#allocation8 + $0x10] ss:$24 sps:$4 sm:$0xff]  }
0x1447   :  { %4672 = vmatprep.subr.bf16.mxu1 %v6873_v36  ;;  %8820 = vst [vmem:[#allocation51_spill] sm:$0xff] %v7355_v34  ;;  %v8821_v36 = vld [vmem:[#allocation75_spill] sm:$0xff] }
0x1449   :  { %2936 = vmatpush1.bf16.msra.mxu0 %v7339_v48 }
0x144a   :  { %2937 = vmatprep.subr.bf16.mxu0 %v7342_v43  ;;  %4673 = vmatpush3.bf16.msra.mxu1 %v6878_v63  ;;  %v8822_v63 = vld [vmem:[#allocation43_spill] sm:$0xff] }
0x144b   :  { %4674 = vmatprep.subr.bf16.mxu1 %v8743_v40  ;;  %v8823_v40 = vld [vmem:[#allocation76_spill] sm:$0xff] }
0x144d   :  { %2938 = vmatpush1.bf16.msra.mxu0 %v7347_v51 }
0x144e   :  { %2939 = vmatprep.subr.bf16.mxu0 %v7350_v39  ;;  %4675 = vmatpush3.bf16.msra.mxu1 %v8746_v11  ;;  %v8824_v11 = vld [vmem:[#allocation44_spill] sm:$0xff] }
0x144f   :  { %4676 = vmatprep.subr.bf16.mxu1 %v8747_v9  ;;  %v8825_v9 = vld [vmem:[#allocation77_spill] sm:$0xff] }
0x1451   :  { %2940 = vmatpush1.bf16.msra.mxu0 %v7355_v34 }
0x1452   :  { %4684 = vmatprep.subr.bf16.mxu0 %v8749_v18  ;;  %4677 = vmatpush3.bf16.msra.mxu1 %v8750_v1  ;;  %v8826_v18 = vld [vmem:[#allocation61_spill] sm:$0xff] }
0x1453   :  { %4706 = vmatprep.subr.bf16.mxu1 %v8751_v28 }
0x1454   :  { %2958 = vmatmul.mubr.bf16.vlgmr.msra.gmra.mxu0 %v2842_v8  ;;  %v8829_v8 = vld [vmem:[#allocation78_spill] sm:$0xff] }
0x1455   :  { %4685 = vmatpush3.bf16.msra.mxu0 %v8752_v31 }
0x1456   :  { %4686 = vmatprep.subr.bf16.mxu0 %v8753_v61 }
0x1459   :  { %4687 = vmatpush3.bf16.msra.mxu0 %v8754_v44 }
0x145a   :  { %4688 = vmatprep.subr.bf16.mxu0 %v8755_v46 }
0x145d   :  { %4689 = vmatpush3.bf16.msra.mxu0 %v8756_v60 }
0x145e   :  { %4690 = vmatprep.subr.bf16.mxu0 %v8757_v2 }
0x1461   :  { %4691 = vmatpush3.bf16.msra.mxu0 %v8758_v10 }
0x1462   :  { %4692 = vmatprep.subr.bf16.mxu0 %v8759_v38 }
0x1465   :  { %4693 = vmatpush3.bf16.msra.mxu0 %v8760_v19 }
0x1466   :  { %4694 = vmatprep.subr.bf16.mxu0 %v8761_v4 }
0x1469   :  { %4695 = vmatpush3.bf16.msra.mxu0 %v8821_v36  ;;  %v8830_v36 = vld [vmem:[#allocation24_spill] sm:$0xff] }
0x146a   :  { %4696 = vmatprep.subr.bf16.mxu0 %v8822_v63  ;;  %v8831_v63 = vld [vmem:[#allocation46_spill] sm:$0xff] }
0x146d   :  { %4697 = vmatpush3.bf16.msra.mxu0 %v8823_v40  ;;  %v8832_v40 = vld [vmem:[#allocation63_spill] sm:$0xff] }
0x146e   :  { %4698 = vmatprep.subr.bf16.mxu0 %v8824_v11  ;;  %v8833_v11 = vld [vmem:[#allocation79_spill] sm:$0xff] }
0x1471   :  { %4699 = vmatpush3.bf16.msra.mxu0 %v8825_v9  ;;  %v8834_v9 = vld [vmem:[#allocation64_spill] sm:$0xff] }
0x1472   :  { %3133 = vmatprep.subr.bf16.mxu0 %v8826_v18 }
0x14f4   :  { %v2877_v1 = vpop.f32.mrf.mxu0  ;;  %v2918_v28 = vpop.f32.mrf.mxu1 }
0x14f5   :  { %vm2966_vm5 = vcmp.ge.f32.partialorder %v2877_v1, 0.0  ;;  %vm2968_vm6 = vcmp.ge.f32.partialorder %v2918_v28, 0.0  ;;  %v8835_v1 = vld [vmem:[#allocation48_spill] sm:$0xff]  ;;  %v8836_v28 = vld [vmem:[#allocation35_spill] sm:$0xff] }
0x14f6   :  { %v2972_v31 = vsel %vm2966_vm5, 0.0157, %v8494_v41  ;;  %v2974_v61 = vsel %vm2968_vm6, 0.0157, %v8494_v41  ;;  %v2879_v44 = vpop.f32.mrf.mxu0  ;;  %v2920_v46 = vpop.f32.mrf.mxu1 }
0x14f7   :  { %v2978_v60 = vadd.f32 %v2972_v31, %v7147_v27  ;;  %v2980_v2 = vadd.f32 %v2974_v61, %v7150_v12  ;;  %vm2967_vm7 = vcmp.ge.f32.partialorder %v2879_v44, 0.0  ;;  %vm2969_vm8 = vcmp.ge.f32.partialorder %v2920_v46, 0.0  ;;  %v8837_v31 = vld [vmem:[#allocation55_spill] sm:$0xff]  ;;  %v8838_v61 = vld [vmem:[#allocation33_spill] sm:$0xff]  ;;  %v8839_v44 = vld [vmem:[#allocation80_spill] sm:$0xff] }
0x14f8   :  { %v2973_v10 = vsel %vm2967_vm7, 0.0157, %v8494_v41  ;;  %v2975_v38 = vsel %vm2969_vm8, 0.0157, %v8494_v41  ;;  %v2881_v19 = vpop.f32.mrf.mxu0  ;;  %v2922_v4 = vpop.f32.mrf.mxu1  ;;  %v8840_v46 = vld [vmem:[#allocation65_spill] sm:$0xff] }
0x14f9   :  { %v2984_v16 = vmax.f32 %v2978_v60, %v6059_v13  ;;  %v2986_v59 = vmax.f32 %v2980_v2, %v6067_v22  ;;  %v2979_v20 = vadd.f32 %v2973_v10, %v7153_v57  ;;  %v2981_v58 = vadd.f32 %v2975_v38, %v7156_v0  ;;  %v8841_v60 = vld [vmem:[#allocation81_spill] sm:$0xff]  ;;  %v8843_v10 = vld [vmem:[#allocation59_spill] sm:$0xff]  ;;  %v8845_v4 = vld [vmem:[#allocation54_spill] sm:$0xff] }
0x14fa   :  { %v2882_v32 = vpop.f32.mrf.mxu0  ;;  %v2923_v27 = vpop.f32.mrf.mxu1  ;;  %v8842_v2 = vld [vmem:[#allocation25_spill] sm:$0xff]  ;;  %v8844_v38 = vld [vmem:[#allocation47_spill] sm:$0xff] }
0x14fb   :  { %v2985_v12 = vmax.f32 %v2979_v20, %v6061_v15  ;;  %v2987_v26 = vmax.f32 %v2981_v58, %v6071_v24  ;;  %v7390_v42 = vmin.f32 %v2984_v16, %v6065_v21  ;;  %v7393_v14 = vmin.f32 %v2986_v59, %v6077_v35  ;;  %v8846_v16 = vld [vmem:[#allocation26_spill] sm:$0xff]  ;;  %v8847_v58 = vld [vmem:[#allocation52_spill] sm:$0xff] }
0x14fc   :  { %v8848_v27 = vld [vmem:[#allocation56_spill] sm:$0xff] }
0x14fd   :  { %v7396_v62 = vmin.f32 %v2985_v12, %v6069_v23  ;;  %v7399_v54 = vmin.f32 %v2987_v26, %v6079_v49  ;;  %v2996_v25 = vpack.c.bf16 %v7390_v42, %v7390_v42  ;;  %v2998_v50 = vpack.c.bf16 %v7393_v14, %v7393_v14  ;;  %v8849_v12 = vld [vmem:[#allocation50_spill] sm:$0xff] }
0x14ff   :  { %v2997_v57 = vpack.c.bf16 %v7396_v62, %v7396_v62  ;;  %v2999_v0 = vpack.c.bf16 %v7399_v54, %v7399_v54 }
0x1501   :  { %3034 = vmatprep.mubr.bf16.mxu1 %v2997_v57  ;;  %3074 = vmatprep.mubr.bf16.mxu0 %v2999_v0  ;;  %v8850_v0 = vld [vmem:[#allocation82_spill] sm:$0xff] }
0x1502   :  { %3035 = vmatmul.mubr.bf16.vlgmr.msra.gmra.mxu1 %v2996_v25  ;;  %3075 = vmatmul.mubr.bf16.vlgmr.msra.gmra.mxu0 %v2998_v50  ;;  %v8851_v25 = vld [vmem:[#allocation36_spill] sm:$0xff]  ;;  %v8852_v50 = vld [vmem:[#allocation30_spill] sm:$0xff] }
0x1503   :  { %4707 = vmatpush3.bf16.msra.mxu1 %v8827_v55  ;;  %3134 = vmatpush1.bf16.msra.mxu0 %v8828_v29 }
0x1504   :  { %4708 = vmatprep.subr.bf16.mxu1 %v8829_v8  ;;  %3135 = vmatprep.subr.bf16.mxu0 %v8830_v36  ;;  %v8853_v8 = vld [vmem:[#allocation34_spill] sm:$0xff] }
0x1505   :  { %3165 = vmatprep.mubr.bf16.mxu0 %v8419_v37 }
0x1507   :  { %4709 = vmatpush3.bf16.msra.mxu1 %v8831_v63  ;;  %3136 = vmatpush1.bf16.msra.mxu0 %v8832_v40 }
0x1508   :  { %4710 = vmatprep.subr.bf16.mxu1 %v8833_v11  ;;  %3137 = vmatprep.subr.bf16.mxu0 %v8834_v9 }
0x150b   :  { %4711 = vmatpush3.bf16.msra.mxu1 %v8835_v1  ;;  %3138 = vmatpush1.bf16.msra.mxu0 %v8836_v28  ;;  %v8854_v1 = vld [vmem:[#allocation18_spill] sm:$0xff] }
0x150c   :  { %4712 = vmatprep.subr.bf16.mxu1 %v8837_v31  ;;  %3139 = vmatprep.subr.bf16.mxu0 %v8838_v61 }
0x150f   :  { %4713 = vmatpush3.bf16.msra.mxu1 %v8839_v44  ;;  %3140 = vmatpush1.bf16.msra.mxu0 %v8840_v46  ;;  %v8855_v44 = vld [vmem:[#allocation49_spill] sm:$0xff] }
0x1510   :  { %4714 = vmatprep.subr.bf16.mxu1 %v8841_v60  ;;  %3141 = vmatprep.subr.bf16.mxu0 %v8842_v2  ;;  %v8856_v60 = vld [vmem:[#allocation27_spill] sm:$0xff] }
0x1513   :  { %4715 = vmatpush3.bf16.msra.mxu1 %v8843_v10  ;;  %3142 = vmatpush1.bf16.msra.mxu0 %v8844_v38  ;;  %v8857_v10 = vld [vmem:[#allocation19_spill] sm:$0xff] }
0x1514   :  { %v2959_v19 = vpop.f32.mrf.mxu0  ;;  %4716 = vmatprep.subr.bf16.mxu1 %v8845_v4  ;;  %3143 = vmatprep.subr.bf16.mxu0 %v8846_v16  ;;  %v8858_v4 = vld [vmem:[#allocation58_spill] sm:$0xff] }
0x1515   :  { %vm2970_vm9 = vcmp.ge.f32.partialorder %v2959_v19, 0.0 }
0x1516   :  { %v2976_v59 = vsel %vm2970_vm9, 0.0157, %v8494_v41  ;;  %v2961_v20 = vpop.f32.mrf.mxu0 }
0x1517   :  { %v2982_v32 = vadd.f32 %v2976_v59, %v8847_v58  ;;  %vm2971_vm10 = vcmp.ge.f32.partialorder %v2961_v20, 0.0  ;;  %4717 = vmatpush3.bf16.msra.mxu1 %v8848_v27  ;;  %3144 = vmatpush1.bf16.msra.mxu0 %v8849_v12  ;;  %v8859_v59 = vld [vmem:[#allocation28_spill] sm:$0xff] }
0x1518   :  { %v2977_v26 = vsel %vm2971_vm10, 0.0157, %v8494_v41  ;;  %v2963_v57 = vpop.f32.mrf.mxu0  ;;  %4718 = vmatprep.subr.bf16.mxu1 %v8850_v0  ;;  %3145 = vmatprep.subr.bf16.mxu0 %v8851_v25  ;;  %v8860_v20 = vld [vmem:[#allocation20_spill] sm:$0xff]  ;;  %v8864_v0 = vld [vmem:[#allocation37_spill] sm:$0xff] }
0x1519   :  { %v2988_v55 = vmax.f32 %v2982_v32, %v8852_v50  ;;  %v2983_v63 = vadd.f32 %v2977_v26, %v8853_v8  ;;  %v8862_v32 = vld [vmem:[#allocation57_spill] sm:$0xff]  ;;  %v8866_v8 = vld [vmem:[#allocation32_spill] sm:$0xff] }
0x151a   :  { %v2964_v11 = vpop.f32.mrf.mxu0  ;;  %v8863_v26 = vld [vmem:[#allocation29_spill] sm:$0xff] }
0x151b   :  { %v2989_v31 = vmax.f32 %v2983_v63, %v8854_v1  ;;  %4719 = vmatpush3.bf16.msra.mxu1 %v8855_v44  ;;  %3146 = vmatpush1.bf16.msra.mxu0 %v8856_v60  ;;  %v7443_v19 = vmin.f32 %v2988_v55, %v8857_v10  ;;  %v8865_v55 = vld [vmem:[#allocation31_spill] sm:$0xff]  ;;  %v8867_v63 = vld [vmem:[#allocation66_spill] sm:$0xff]  ;;  %v8870_v44 = vld [vmem:[#allocation68_spill] sm:$0xff] }
0x151c   :  { %4720 = vmatprep.subr.bf16.mxu1 %v8858_v4  ;;  %3147 = vmatprep.subr.bf16.mxu0 %v8859_v59  ;;  %v8868_v11 = vld [vmem:[#allocation67_spill] sm:$0xff]  ;;  %v8871_v4 = vld [vmem:[#allocation69_spill] sm:$0xff] }
0x151d   :  { %v7448_v58 = vmin.f32 %v2989_v31, %v8860_v20  ;;  %v3000_v57 = vpack.c.bf16 %v7443_v19, %v7443_v19  ;;  %v8869_v31 = vld [vmem:[#allocation21_spill] sm:$0xff] }
0x151f   :  { %8861 = vst [vmem:[#allocation53_spill] sm:$0xff] %v7448_v58  ;;  %4721 = vmatpush3.bf16.msra.mxu1 %v8862_v32  ;;  %v3001_v27 = vpack.c.bf16 %v7448_v58, %v7448_v58  ;;  %3148 = vmatpush1.bf16.msra.mxu0 %v8863_v26  ;;  %v8872_v32 = vld [vmem:[#allocation70_spill] sm:$0xff] }
0x1520   :  { %3174 = vmatprep.subr.bf16.mxu1 %v8864_v0  ;;  %3215 = vmatprep.subr.bf16.mxu0 %v8865_v55  ;;  %v8873_v0 = vld [vmem:[#allocation60_spill] sm:$0xff] }
0x1521   :  { %3114 = vmatprep.mubr.bf16.mxu1 %v3001_v27  ;;  %v8874_v27 = vld [vmem:[#allocation39_spill] sm:$0xff]  ;;  %v8877_v55 = vld [vmem:[#allocation72_spill] sm:$0xff] }
0x1522   :  { %3115 = vmatmul.mubr.bf16.vlgmr.msra.gmra.mxu1 %v3000_v57  ;;  %v8875_v57 = vld [vmem:[#allocation71_spill] sm:$0xff] }
0x1523   :  { %3175 = vmatpush1.bf16.msra.mxu1 %v8866_v8  ;;  %3206 = vmatprep.mubr.bf16.mxu1 %v8419_v37  ;;  %v8876_v8 = vld [vmem:[#allocation62_spill] sm:$0xff] }
0x1524   :  { %3176 = vmatprep.subr.bf16.mxu1 %v8867_v63  ;;  %v8878_v63 = vld [vmem:[#allocation40_spill] sm:$0xff] }
0x1527   :  { %3177 = vmatpush1.bf16.msra.mxu1 %v8868_v11  ;;  %v8879_v11 = vld [vmem:[#allocation73_spill] sm:$0xff] }
0x1528   :  { %3178 = vmatprep.subr.bf16.mxu1 %v8869_v31  ;;  %v8880_v31 = vld [vmem:[#allocation41_spill] sm:$0xff] }
0x152b   :  { %3179 = vmatpush1.bf16.msra.mxu1 %v8870_v44  ;;  %v7474_v44 = vld [vmem:[#allocation7 + $0x78] sm:$0xff]  }
0x152c   :  { %3180 = vmatprep.subr.bf16.mxu1 %v8871_v4  ;;  %8881 = vst [vmem:[#allocation22_spill] sm:$0xff] %v7474_v44 }
0x152f   :  { %3181 = vmatpush1.bf16.msra.mxu1 %v8872_v32 }
0x1530   :  { %3182 = vmatprep.subr.bf16.mxu1 %v8873_v0 }
0x1533   :  { %3183 = vmatpush1.bf16.msra.mxu1 %v8874_v27 }
0x1534   :  { %3184 = vmatprep.subr.bf16.mxu1 %v8875_v57 }
0x1537   :  { %3185 = vmatpush1.bf16.msra.mxu1 %v8876_v8 }
0x1538   :  { %3186 = vmatprep.subr.bf16.mxu1 %v8877_v55 }
0x153b   :  { %3187 = vmatpush1.bf16.msra.mxu1 %v8878_v63 }
0x153c   :  { %3188 = vmatprep.subr.bf16.mxu1 %v8879_v11 }
0x153f   :  { %3189 = vmatpush1.bf16.msra.mxu1 %v8880_v31 }
0x1540   :  { %4728 = vmatprep.subr.bf16.mxu1 %v7474_v44 }
0x15c2   :  { %v4678_v32 = vpop.f32.mrf.mxu1  ;;  %v4700_v0 = vpop.f32.mrf.mxu0 }
0x15c4   :  { %v4679_v4 = vpop.f32.mrf.mxu1  ;;  %v4701_v27 = vpop.f32.mrf.mxu0 }
0x15c5   :  { %v4680_v59 = vadd.f32 %v4679_v4, %v4678_v32  ;;  %v4702_v10 = vadd.f32 %v4701_v27, %v4700_v0  ;;  %v7509_v0 = vld [vmem:[#allocation7 + $0x58] sm:$0xff]   ;;  %v7533_v32 = vld [vmem:[#allocation7 + $0x40] sm:$0xff]  }
0x15c6   :  { %v4681_v26 = vpop.f32.mrf.mxu1  ;;  %v4703_v57 = vpop.f32.mrf.mxu0  ;;  %8884 = vst [vmem:[#allocation76_spill] sm:$0xff] %v7533_v32  ;;  %v7537_v27 = vld [vmem:[#allocation7 + $0xf8] sm:$0xff]  }
0x15c7   :  { %v3037_v55 = vadd.f32 %v7079_v45, %v4680_v59  ;;  %8885 = vst [vmem:[#allocation44_spill] sm:$0xff] %v7537_v27  ;;  %v7540_v57 = vld [vmem:[#allocation7] sm:$0xff]  }
0x15c8   :  { %v4682_v20 = vpop.f32.mrf.mxu1  ;;  %v4704_v8 = vpop.f32.mrf.mxu0  ;;  %8886 = vst [vmem:[#allocation77_spill] sm:$0xff] %v7540_v57 }
0x15c9   :  { %v3077_v60 = vadd.f32 %v4702_v10, %v3037_v55  ;;  %v7501_v10 = vld [vmem:[#allocation7 + $0x60] sm:$0xff]   ;;  %v7514_v55 = vld [vmem:[#allocation7 + $0x18] sm:$0xff]  }
0x15e2   :  { %v4722_v63 = vpop.f32.mrf.mxu1 }
0x15e4   :  { %v4723_v11 = vpop.f32.mrf.mxu1 }
0x15e5   :  { %v4724_v31 = vadd.f32 %v4723_v11, %v4722_v63  ;;  %v7517_v63 = vld [vmem:[#allocation7 + $0x50] sm:$0xff]  }
0x15e6   :  { %v4725_v1 = vpop.f32.mrf.mxu1  ;;  %v7522_v11 = vld [vmem:[#allocation7 + $0x10] sm:$0xff]  }
0x15e7   :  { %v3117_v58 = vadd.f32 %v4724_v31, %v3077_v60  ;;  %v7493_v1 = vld [vmem:[#allocation7 + $0x68] sm:$0xff]  }
0x15e8   :  { %v4726_v50 = vpop.f32.mrf.mxu1  ;;  %v7498_v60 = vld [vmem:[#allocation7 + $0x28] sm:$0xff]  }
0x15e9   :  { %3122 = vmax.xlane.f32.xlu1 %v3117_v58  ;;  %v7482_v50 = vld [vmem:[#allocation7 + $0x38] sm:$0xff]   ;;  %v7525_v31 = vld [vmem:[#allocation7 + $0x48] sm:$0xff]  }
0x15ea   :  { %8882 = vst [vmem:[#allocation75_spill] sm:$0xff] %v7525_v31 }
0x1672   :  { %v3123_v44 = vpop.xlane.xlu1 %3122 }
0x1673   :  { %v3124_v25 = vsub.f32 %v3117_v58, %v3123_v44  ;;  %v7506_v58 = vld [vmem:[#allocation7 + $0x20] sm:$0xff]   ;;  %v7530_v44 = vld [vmem:[#allocation7 + $0x8] sm:$0xff]  }
0x1674   :  { %8883 = vst [vmem:[#allocation43_spill] sm:$0xff] %v7530_v44 }
0x1675   :  { %v3125_v12 = vmul.f32 1.442695, %v3124_v25  ;;  %v7490_v25 = vld [vmem:[#allocation7 + $0x30] sm:$0xff]  }
0x1677   :  { %5095 = vpow2.f32 %v3125_v12  ;;  %v7485_v12 = vld [vmem:[#allocation7 + $0x70] sm:$0xff]  }
0x1684   :  { %v5096_v26 = vpop.eup %5095 }
0x1685   :  { %3127 = vadd.xlane.f32.xlu0 %v5096_v26 }
0x170e   :  { %v3128_v20 = vpop.xlane.xlu0 %3127 }
0x170f   :  { %5097 = vrcp.f32 %v3128_v20  ;;  %v7546_v20 = vld [vmem:[#allocation7 + $0xb8] sm:$0xff]  }
0x1710   :  { %8888 = vst [vmem:[#allocation45_spill] sm:$0xff] %v7546_v20 }
0x171c   :  { %v5098_v8 = vpop.eup %5097 }
0x171d   :  { %v3130_v4 = vmul.f32 %v5098_v8, %v5096_v26  ;;  %v7543_v26 = vld [vmem:[#allocation7 + $0x178] sm:$0xff]   ;;  %v7549_v8 = vld [vmem:[#allocation7 + $0xf0] sm:$0xff]  }
0x171e   :  { %8887 = vst [vmem:[#allocation61_spill] sm:$0xff] %v7543_v26  ;;  %8889 = vst [vmem:[#allocation23_spill] sm:$0xff] %v7549_v8 }
0x171f   :  { %v3131_v45 = vsub.f32 %v3130_v4, %v5971_v33  ;;  %v7552_v4 = vld [vmem:[#allocation7 + $0xb0] sm:$0xff]  }
0x1720   :  { %8890 = vst [vmem:[#allocation78_spill] sm:$0xff] %v7552_v4 }
0x1721   :  { %v3132_v59 = vpack.c.bf16 %v3131_v45, %v3131_v45  ;;  %v7555_v45 = vld [vmem:[#allocation7 + $0xe8] sm:$0xff]  }
0x1722   :  { %8891 = vst [vmem:[#allocation24_spill] sm:$0xff] %v7555_v45 }
0x1723   :  { %3166 = vmatmul.mubr.bf16.vlgmr.msra.gmra.mxu0 %v3132_v59  ;;  %3207 = vmatmul.mubr.bf16.vlgmr.msra.gmra.mxu1 %v3132_v59 }
0x1724   :  { %3216 = vmatpush1.bf16.msra.mxu0 %v7298_v30  ;;  %3247 = vmatprep.mubr.bf16.mxu0 %v8419_v37 }
0x1725   :  { %3217 = vmatprep.subr.bf16.mxu0 %v7302_v5  ;;  %4729 = vmatpush3.bf16.msra.mxu1 %v7482_v50 }
0x1726   :  { %4730 = vmatprep.subr.bf16.mxu1 %v7485_v12 }
0x1728   :  { %3218 = vmatpush1.bf16.msra.mxu0 %v7307_v52 }
0x1729   :  { %3219 = vmatprep.subr.bf16.mxu0 %v7310_v56  ;;  %4731 = vmatpush3.bf16.msra.mxu1 %v7490_v25 }
0x172a   :  { %4732 = vmatprep.subr.bf16.mxu1 %v7493_v1 }
0x172c   :  { %3220 = vmatpush1.bf16.msra.mxu0 %v7315_v3 }
0x172d   :  { %3221 = vmatprep.subr.bf16.mxu0 %v7318_v17  ;;  %4733 = vmatpush3.bf16.msra.mxu1 %v7498_v60 }
0x172e   :  { %4734 = vmatprep.subr.bf16.mxu1 %v7501_v10 }
0x1730   :  { %3222 = vmatpush1.bf16.msra.mxu0 %v7323_v53 }
0x1731   :  { %3223 = vmatprep.subr.bf16.mxu0 %v7326_v7  ;;  %4735 = vmatpush3.bf16.msra.mxu1 %v7506_v58 }
0x1732   :  { %4736 = vmatprep.subr.bf16.mxu1 %v7509_v0 }
0x1734   :  { %3224 = vmatpush1.bf16.msra.mxu0 %v7331_v47 }
0x1735   :  { %3225 = vmatprep.subr.bf16.mxu0 %v7334_v6  ;;  %4737 = vmatpush3.bf16.msra.mxu1 %v7514_v55 }
0x1736   :  { %4738 = vmatprep.subr.bf16.mxu1 %v7517_v63 }
0x1738   :  { %3226 = vmatpush1.bf16.msra.mxu0 %v7339_v48 }
0x1739   :  { %3227 = vmatprep.subr.bf16.mxu0 %v7342_v43  ;;  %4739 = vmatpush3.bf16.msra.mxu1 %v7522_v11 }
0x173a   :  { %4740 = vmatprep.subr.bf16.mxu1 %v7525_v31 }
0x173c   :  { %3228 = vmatpush1.bf16.msra.mxu0 %v7347_v51 }
0x173d   :  { %3229 = vmatprep.subr.bf16.mxu0 %v7350_v39  ;;  %4741 = vmatpush3.bf16.msra.mxu1 %v7530_v44 }
0x173e   :  { %4742 = vmatprep.subr.bf16.mxu1 %v7533_v32 }
0x1740   :  { %3230 = vmatpush1.bf16.msra.mxu0 %v7355_v34 }
0x1741   :  { %4750 = vmatprep.subr.bf16.mxu0 %v7537_v27  ;;  %4743 = vmatpush3.bf16.msra.mxu1 %v7540_v57  ;;  %v7558_v57 = vld [vmem:[#allocation7 + $0xa8] sm:$0xff]  }
0x1742   :  { %4772 = vmatprep.subr.bf16.mxu1 %v7543_v26  ;;  %8892 = vst [vmem:[#allocation46_spill] sm:$0xff] %v7558_v57 }
0x1743   :  { %3248 = vmatmul.mubr.bf16.vlgmr.msra.gmra.mxu0 %v3132_v59  ;;  %v7561_v59 = vld [vmem:[#allocation7 + $0xe0] sm:$0xff]  }
0x1744   :  { %4751 = vmatpush3.bf16.msra.mxu0 %v7546_v20  ;;  %8893 = vst [vmem:[#allocation63_spill] sm:$0xff] %v7561_v59  ;;  %v7564_v20 = vld [vmem:[#allocation7 + $0xa0] sm:$0xff]  }
0x1745   :  { %4752 = vmatprep.subr.bf16.mxu0 %v7549_v8  ;;  %8894 = vst [vmem:[#allocation79_spill] sm:$0xff] %v7564_v20  ;;  %v7567_v8 = vld [vmem:[#allocation7 + $0xd8] sm:$0xff]  }
0x1746   :  { %8895 = vst [vmem:[#allocation64_spill] sm:$0xff] %v7567_v8 }
0x1748   :  { %4753 = vmatpush3.bf16.msra.mxu0 %v7552_v4  ;;  %v7570_v4 = vld [vmem:[#allocation7 + $0x98] sm:$0xff]  }
0x1749   :  { %4754 = vmatprep.subr.bf16.mxu0 %v7555_v45  ;;  %8896 = vst [vmem:[#allocation48_spill] sm:$0xff] %v7570_v4  ;;  %v7573_v45 = vld [vmem:[#allocation7 + $0xd0] sm:$0xff]  }
0x174a   :  { %8897 = vst [vmem:[#allocation35_spill] sm:$0xff] %v7573_v45 }
0x174c   :  { %4755 = vmatpush3.bf16.msra.mxu0 %v7558_v57  ;;  %v7576_v57 = vld [vmem:[#allocation7 + $0x90] sm:$0xff]  }
0x174d   :  { %4756 = vmatprep.subr.bf16.mxu0 %v7561_v59  ;;  %8898 = vst [vmem:[#allocation55_spill] sm:$0xff] %v7576_v57  ;;  %v7579_v59 = vld [vmem:[#allocation7 + $0xc8] sm:$0xff]  }
0x174e   :  { %8899 = vst [vmem:[#allocation33_spill] sm:$0xff] %v7579_v59 }
0x1750   :  { %4757 = vmatpush3.bf16.msra.mxu0 %v7564_v20  ;;  %v7582_v20 = vld [vmem:[#allocation7 + $0x88] sm:$0xff]  }
0x1751   :  { %4758 = vmatprep.subr.bf16.mxu0 %v7567_v8  ;;  %8900 = vst [vmem:[#allocation80_spill] sm:$0xff] %v7582_v20  ;;  %v7585_v8 = vld [vmem:[#allocation7 + $0xc0] sm:$0xff]  }
0x1752   :  { %8901 = vst [vmem:[#allocation65_spill] sm:$0xff] %v7585_v8 }
0x1754   :  { %4759 = vmatpush3.bf16.msra.mxu0 %v7570_v4  ;;  %v7588_v4 = vld [vmem:[#allocation7 + $0x80] sm:$0xff]  }
0x1755   :  { %4760 = vmatprep.subr.bf16.mxu0 %v7573_v45  ;;  %8902 = vst [vmem:[#allocation81_spill] sm:$0xff] %v7588_v4 }
0x1758   :  { %4761 = vmatpush3.bf16.msra.mxu0 %v7576_v57 }
0x1759   :  { %4762 = vmatprep.subr.bf16.mxu0 %v7579_v59 }
0x175c   :  { %4763 = vmatpush3.bf16.msra.mxu0 %v7582_v20 }
0x175d   :  { %4764 = vmatprep.subr.bf16.mxu0 %v7585_v8 }
0x1760   :  { %4765 = vmatpush3.bf16.msra.mxu0 %v7588_v4 }
0x1761   :  { %3423 = vmatprep.subr.bf16.mxu0 %v8826_v18 }
0x17e3   :  { %v3167_v45 = vpop.f32.mrf.mxu0  ;;  %v3208_v57 = vpop.f32.mrf.mxu1 }
0x17e4   :  { %vm3256_vm11 = vcmp.ge.f32.partialorder %v3167_v45, 0.0  ;;  %vm3258_vm12 = vcmp.ge.f32.partialorder %v3208_v57, 0.0 }
0x17e5   :  { %v3262_v59 = vsel %vm3256_vm11, 0.0157, %v8494_v41  ;;  %v3264_v26 = vsel %vm3258_vm12, 0.0157, %v8494_v41  ;;  %v3169_v27 = vpop.f32.mrf.mxu0  ;;  %v3210_v20 = vpop.f32.mrf.mxu1 }
0x17e6   :  { %v3268_v34 = vadd.f32 %v3262_v59, %v7390_v42  ;;  %v3270_v8 = vadd.f32 %v3264_v26, %v7393_v14  ;;  %vm3257_vm13 = vcmp.ge.f32.partialorder %v3169_v27, 0.0  ;;  %vm3259_vm14 = vcmp.ge.f32.partialorder %v3210_v20, 0.0  ;;  %v7628_v20 = vld [vmem:[#allocation7 + $0x170] sm:$0xff]   ;;  %v7649_v59 = vld [vmem:[#allocation7 + $0x120] sm:$0xff]  }
0x17e7   :  { %v3263_v4 = vsel %vm3257_vm13, 0.0157, %v8494_v41  ;;  %v3265_v18 = vsel %vm3259_vm14, 0.0157, %v8494_v41  ;;  %v3171_v32 = vpop.f32.mrf.mxu0  ;;  %v3212_v44 = vpop.f32.mrf.mxu1  ;;  %8904 = vst [vmem:[#allocation59_spill] sm:$0xff] %v7628_v20  ;;  %8909 = vst [vmem:[#allocation56_spill] sm:$0xff] %v7649_v59 }
0x17e8   :  { %v3274_v57 = vmax.f32 %v3268_v34, %v6059_v13  ;;  %v3276_v45 = vmax.f32 %v3270_v8, %v6067_v22  ;;  %v3269_v39 = vadd.f32 %v3263_v4, %v7396_v62  ;;  %v3271_v51 = vadd.f32 %v3265_v18, %v7399_v54  ;;  %v7633_v8 = vld [vmem:[#allocation7 + $0x130] sm:$0xff]   ;;  %v7637_v4 = vld [vmem:[#allocation7 + $0x168] sm:$0xff]  }
0x17e9   :  { %v3172_v31 = vpop.f32.mrf.mxu0  ;;  %v3213_v42 = vpop.f32.mrf.mxu1  ;;  %8905 = vst [vmem:[#allocation47_spill] sm:$0xff] %v7633_v8  ;;  %8906 = vst [vmem:[#allocation54_spill] sm:$0xff] %v7637_v4 }
0x17ea   :  { %v3275_v14 = vmax.f32 %v3269_v39, %v6061_v15  ;;  %v3277_v27 = vmax.f32 %v3271_v51, %v6071_v24  ;;  %v7605_v26 = vmin.f32 %v3274_v57, %v6065_v21  ;;  %v7608_v32 = vmin.f32 %v3276_v45, %v6077_v35  ;;  %v7624_v31 = vld [vmem:[#allocation7 + $0x138] sm:$0xff]   ;;  %v8914_v45 = vld [vmem:[#allocation50_spill] sm:$0xff] }
0x17eb   :  { %8903 = vst [vmem:[#allocation25_spill] sm:$0xff] %v7624_v31 }
0x17ec   :  { %v7611_v34 = vmin.f32 %v3275_v14, %v6069_v23  ;;  %v7614_v44 = vmin.f32 %v3277_v27, %v6079_v49  ;;  %v3286_v51 = vpack.c.bf16 %v7605_v26, %v7605_v26  ;;  %v3288_v54 = vpack.c.bf16 %v7608_v32, %v7608_v32  ;;  %v7672_v14 = vld [vmem:[#allocation7 + $0x148] sm:$0xff]   ;;  %v8917_v27 = vld [vmem:[#allocation30_spill] sm:$0xff] }
0x17ed   :  { %8915 = vst [vmem:[#allocation57_spill] sm:$0xff] %v7672_v14 }
0x17ee   :  { %v3287_v62 = vpack.c.bf16 %v7611_v34, %v7611_v34  ;;  %v3289_v39 = vpack.c.bf16 %v7614_v44, %v7614_v44 }
0x17f0   :  { %3324 = vmatprep.mubr.bf16.mxu1 %v3287_v62  ;;  %3364 = vmatprep.mubr.bf16.mxu0 %v3289_v39  ;;  %v8918_v39 = vld [vmem:[#allocation53_spill] sm:$0xff] }
0x17f1   :  { %3325 = vmatmul.mubr.bf16.vlgmr.msra.gmra.mxu1 %v3286_v51  ;;  %3365 = vmatmul.mubr.bf16.vlgmr.msra.gmra.mxu0 %v3288_v54  ;;  %v8919_v54 = vld [vmem:[#allocation18_spill] sm:$0xff] }
0x17f2   :  { %4773 = vmatpush3.bf16.msra.mxu1 %v7624_v31  ;;  %3424 = vmatpush1.bf16.msra.mxu0 %v8828_v29  ;;  %v7641_v29 = vld [vmem:[#allocation7 + $0x128] sm:$0xff]  }
0x17f3   :  { %4774 = vmatprep.subr.bf16.mxu1 %v7628_v20  ;;  %3425 = vmatprep.subr.bf16.mxu0 %v8830_v36  ;;  %8907 = vst [vmem:[#allocation26_spill] sm:$0xff] %v7641_v29  ;;  %v7645_v36 = vld [vmem:[#allocation7 + $0x160] sm:$0xff]  }
0x17f4   :  { %3455 = vmatprep.mubr.bf16.mxu0 %v8419_v37  ;;  %8908 = vst [vmem:[#allocation52_spill] sm:$0xff] %v7645_v36 }
0x17f6   :  { %4775 = vmatpush3.bf16.msra.mxu1 %v7633_v8  ;;  %3426 = vmatpush1.bf16.msra.mxu0 %v8832_v40  ;;  %v7653_v40 = vld [vmem:[#allocation7 + $0x158] sm:$0xff]  }
0x17f7   :  { %4776 = vmatprep.subr.bf16.mxu1 %v7637_v4  ;;  %3427 = vmatprep.subr.bf16.mxu0 %v8834_v9  ;;  %8910 = vst [vmem:[#allocation82_spill] sm:$0xff] %v7653_v40  ;;  %v7657_v9 = vld [vmem:[#allocation7 + $0x118] sm:$0xff]  }
0x17f8   :  { %8911 = vst [vmem:[#allocation34_spill] sm:$0xff] %v7657_v9 }
0x17fa   :  { %4777 = vmatpush3.bf16.msra.mxu1 %v7641_v29  ;;  %3428 = vmatpush1.bf16.msra.mxu0 %v8836_v28 }
0x17fb   :  { %4778 = vmatprep.subr.bf16.mxu1 %v7645_v36  ;;  %3429 = vmatprep.subr.bf16.mxu0 %v8838_v61  ;;  %v7661_v61 = vld [vmem:[#allocation7 + $0x150] sm:$0xff]  }
0x17fc   :  { %8912 = vst [vmem:[#allocation49_spill] sm:$0xff] %v7661_v61 }
0x17fe   :  { %4779 = vmatpush3.bf16.msra.mxu1 %v7649_v59  ;;  %3430 = vmatpush1.bf16.msra.mxu0 %v8840_v46 }
0x17ff   :  { %4780 = vmatprep.subr.bf16.mxu1 %v7653_v40  ;;  %3431 = vmatprep.subr.bf16.mxu0 %v8842_v2  ;;  %v7667_v2 = vld [vmem:[#allocation7 + $0x110] sm:$0xff]  }
0x1800   :  { %8913 = vst [vmem:[#allocation58_spill] sm:$0xff] %v7667_v2 }
0x1802   :  { %4781 = vmatpush3.bf16.msra.mxu1 %v7657_v9  ;;  %3432 = vmatpush1.bf16.msra.mxu0 %v8844_v38 }
0x1803   :  { %v3249_v28 = vpop.f32.mrf.mxu0  ;;  %4782 = vmatprep.subr.bf16.mxu1 %v7661_v61  ;;  %3433 = vmatprep.subr.bf16.mxu0 %v8846_v16  ;;  %v8916_v16 = vld [vmem:[#allocation36_spill] sm:$0xff] }
0x1804   :  { %vm3260_vm15 = vcmp.ge.f32.partialorder %v3249_v28, 0.0 }
0x1805   :  { %v3266_v46 = vsel %vm3260_vm15, 0.0157, %v8494_v41  ;;  %v3251_v18 = vpop.f32.mrf.mxu0 }
0x1806   :  { %v3272_v57 = vadd.f32 %v3266_v46, %v7443_v19  ;;  %vm3261_vm0 = vcmp.ge.f32.partialorder %v3251_v18, 0.0  ;;  %4783 = vmatpush3.bf16.msra.mxu1 %v7667_v2  ;;  %3434 = vmatpush1.bf16.msra.mxu0 %v8914_v45  ;;  %v7679_v46 = vld [vmem:[#allocation7 + $0x108] sm:$0xff]   ;;  %v8921_v18 = vld [vmem:[#allocation27_spill] sm:$0xff]  ;;  %v7686_v2 = vld [vmem:[#allocation7 + $0x140] sm:$0xff]  }
0x1807   :  { %v3267_v38 = vsel %vm3261_vm0, 0.0157, %v8494_v41  ;;  %v3253_v42 = vpop.f32.mrf.mxu0  ;;  %4784 = vmatprep.subr.bf16.mxu1 %v7672_v14  ;;  %3435 = vmatprep.subr.bf16.mxu0 %v8916_v16  ;;  %8920 = vst [vmem:[#allocation50_spill] sm:$0xff] %v7679_v46  ;;  %v8922_v45 = vld [vmem:[#allocation19_spill] sm:$0xff]  ;;  %8924 = vst [vmem:[#allocation53_spill] sm:$0xff] %v7686_v2  ;;  %v8925_v16 = vld [vmem:[#allocation28_spill] sm:$0xff] }
0x1808   :  { %v3278_v62 = vmax.f32 %v3272_v57, %v8917_v27  ;;  %v3273_v19 = vadd.f32 %v3267_v38, %v8918_v39  ;;  %v8926_v57 = vld [vmem:[#allocation20_spill] sm:$0xff] }
0x1809   :  { %v3254_v51 = vpop.f32.mrf.mxu0  ;;  %v7693_v39 = vld [vmem:[#allocation7 + $0x100] sm:$0xff]  }
0x180a   :  { %v3279_v28 = vmax.f32 %v3273_v19, %v8919_v54  ;;  %4785 = vmatpush3.bf16.msra.mxu1 %v7679_v46  ;;  %3436 = vmatpush1.bf16.msra.mxu0 %v8921_v18  ;;  %v7684_v42 = vmin.f32 %v3278_v62, %v8922_v45  ;;  %8928 = vst [vmem:[#allocation28_spill] sm:$0xff] %v7693_v39  ;;  %v8929_v51 = vld [vmem:[#allocation29_spill] sm:$0xff]  ;;  %v8938_v46 = vld [vmem:[#allocation70_spill] sm:$0xff] }
0x180b   :  { %4786 = vmatprep.subr.bf16.mxu1 %v7686_v2  ;;  %3437 = vmatprep.subr.bf16.mxu0 %v8925_v16  ;;  %v8930_v18 = vld [vmem:[#allocation37_spill] sm:$0xff]  ;;  %v8931_v2 = vld [vmem:[#allocation31_spill] sm:$0xff]  ;;  %v8933_v16 = vld [vmem:[#allocation66_spill] sm:$0xff] }
0x180c   :  { %8923 = vst [vmem:[#allocation36_spill] sm:$0xff] %v7684_v42  ;;  %v7691_v38 = vmin.f32 %v3279_v28, %v8926_v57  ;;  %v3290_v62 = vpack.c.bf16 %v7684_v42, %v7684_v42  ;;  %v8932_v28 = vld [vmem:[#allocation32_spill] sm:$0xff]  ;;  %v8935_v57 = vld [vmem:[#allocation21_spill] sm:$0xff] }
0x180d   :  { %v8937_v45 = vld [vmem:[#allocation69_spill] sm:$0xff] }
0x180e   :  { %8927 = vst [vmem:[#allocation27_spill] sm:$0xff] %v7691_v38  ;;  %4787 = vmatpush3.bf16.msra.mxu1 %v7693_v39  ;;  %v3291_v19 = vpack.c.bf16 %v7691_v38, %v7691_v38  ;;  %3438 = vmatpush1.bf16.msra.mxu0 %v8929_v51  ;;  %v8934_v39 = vld [vmem:[#allocation67_spill] sm:$0xff]  ;;  %v8936_v51 = vld [vmem:[#allocation68_spill] sm:$0xff] }
0x180f   :  { %3464 = vmatprep.subr.bf16.mxu1 %v8930_v18  ;;  %3505 = vmatprep.subr.bf16.mxu0 %v8931_v2  ;;  %v8939_v18 = vld [vmem:[#allocation60_spill] sm:$0xff]  ;;  %v8940_v2 = vld [vmem:[#allocation39_spill] sm:$0xff] }
0x1810   :  { %3404 = vmatprep.mubr.bf16.mxu1 %v3291_v19  ;;  %v8941_v19 = vld [vmem:[#allocation71_spill] sm:$0xff] }
0x1811   :  { %3405 = vmatmul.mubr.bf16.vlgmr.msra.gmra.mxu1 %v3290_v62  ;;  %v8942_v62 = vld [vmem:[#allocation62_spill] sm:$0xff] }
0x1812   :  { %3465 = vmatpush1.bf16.msra.mxu1 %v8932_v28  ;;  %3496 = vmatprep.mubr.bf16.mxu1 %v8419_v37  ;;  %v8943_v28 = vld [vmem:[#allocation72_spill] sm:$0xff] }
0x1813   :  { %3466 = vmatprep.subr.bf16.mxu1 %v8933_v16  ;;  %v8944_v16 = vld [vmem:[#allocation40_spill] sm:$0xff] }
0x1816   :  { %3467 = vmatpush1.bf16.msra.mxu1 %v8934_v39  ;;  %v8945_v39 = vld [vmem:[#allocation73_spill] sm:$0xff] }
0x1817   :  { %3468 = vmatprep.subr.bf16.mxu1 %v8935_v57  ;;  %v8946_v57 = vld [vmem:[#allocation41_spill] sm:$0xff] }
0x181a   :  { %3469 = vmatpush1.bf16.msra.mxu1 %v8936_v51  ;;  %v8947_v51 = vld [vmem:[#allocation22_spill] sm:$0xff] }
0x181b   :  { %3470 = vmatprep.subr.bf16.mxu1 %v8937_v45 }
0x181e   :  { %3471 = vmatpush1.bf16.msra.mxu1 %v8938_v46 }
0x181f   :  { %3472 = vmatprep.subr.bf16.mxu1 %v8939_v18 }
0x1822   :  { %3473 = vmatpush1.bf16.msra.mxu1 %v8940_v2 }
0x1823   :  { %3474 = vmatprep.subr.bf16.mxu1 %v8941_v19 }
0x1826   :  { %3475 = vmatpush1.bf16.msra.mxu1 %v8942_v62  ;;  %v7723_v62 = vld [vmem:[%s7929_s5] ss:$0 sm:$0xff]  ;;  %s5543_s5 = smov [#allocation11]  }
0x1827   :  { %3476 = vmatprep.subr.bf16.mxu1 %v8943_v28  ;;  %s4009_s30 = sshll.u32 %s5543_s5, 4  ;;  %s4010_s30 = int_to_ptr.vmem [resolvable:$true] %s4009_s30 }
0x1828   :  { %s5482_s8 = scalar_lea.vmem %s4010_s30, 128  ;;  %p5487_p7 = scmp.lt.s32.totalorder %s4010_s30, %s4010_s30 }
0x1829   :  { %p5483_p6 = scmp.ne.s32.totalorder %s4010_s30, %s5482_s8  ;;  %p5488_p8 = scmp.lt.s32.totalorder %s5482_s8, %s5482_s8 }
0x182a   :  { %3477 = vmatpush1.bf16.msra.mxu1 %v8944_v16 }
0x182b   :  { %3478 = vmatprep.subr.bf16.mxu1 %v8945_v39  ;;  %p5489_p9 = por %p5488_p8, %p5487_p7 }
0x182d   :  { %p5490_p10 = pnand %p5489_p9, %p5483_p6 }
0x182e   :  { %3479 = vmatpush1.bf16.msra.mxu1 %v8946_v57 }
0x182f   :  { %4794 = vmatprep.subr.bf16.mxu1 %v8947_v51 }
0x18b1   :  { %v4744_v45 = vpop.f32.mrf.mxu1  ;;  %v4766_v46 = vpop.f32.mrf.mxu0 }
0x18b3   :  { %v4745_v54 = vpop.f32.mrf.mxu1  ;;  %v4767_v18 = vpop.f32.mrf.mxu0 }
0x18b4   :  { %v4746_v14 = vadd.f32 %v4745_v54, %v4744_v45  ;;  %v4768_v39 = vadd.f32 %v4767_v18, %v4766_v46  ;;  %v8966_v18 = vld [vmem:[#allocation35_spill] sm:$0xff] }
0x18b5   :  { %v4747_v38 = vpop.f32.mrf.mxu1  ;;  %v4769_v2 = vpop.f32.mrf.mxu0 }
0x18b6   :  { %v3327_v28 = vadd.f32 %v7723_v62, %v4746_v14 }
0x18b7   :  { %v4748_v27 = vpop.f32.mrf.mxu1  ;;  %v4770_v19 = vpop.f32.mrf.mxu0 }
0x18b8   :  { %v3367_v51 = vadd.f32 %v4768_v39, %v3327_v28  ;;  %v8967_v28 = vld [vmem:[#allocation55_spill] sm:$0xff]  ;;  %v8969_v39 = vld [vmem:[#allocation80_spill] sm:$0xff] }
0x18d1   :  { %v4788_v16 = vpop.f32.mrf.mxu1 }
0x18d3   :  { %v4789_v57 = vpop.f32.mrf.mxu1 }
0x18d4   :  { %v4790_v42 = vadd.f32 %v4789_v57, %v4788_v16  ;;  %v8968_v16 = vld [vmem:[#allocation33_spill] sm:$0xff] }
0x18d5   :  { %v4791_v61 = vpop.f32.mrf.mxu1  ;;  %v8970_v57 = vld [vmem:[#allocation65_spill] sm:$0xff] }
0x18d6   :  { %v3407_v9 = vadd.f32 %v4790_v42, %v3367_v51  ;;  %v8963_v61 = vld [vmem:[#allocation79_spill] sm:$0xff]  ;;  %v8964_v42 = vld [vmem:[#allocation64_spill] sm:$0xff] }
0x18d7   :  { %v4792_v40 = vpop.f32.mrf.mxu1  ;;  %v8965_v51 = vld [vmem:[#allocation48_spill] sm:$0xff] }
0x18d8   :  { %3412 = vmax.xlane.f32.xlu1 %v3407_v9  ;;  %v8961_v40 = vld [vmem:[#allocation46_spill] sm:$0xff] }
0x1961   :  { %v3413_v38 = vpop.xlane.xlu1 %3412 }
0x1962   :  { %v3414_v27 = vsub.f32 %v3407_v9, %v3413_v38  ;;  %v8962_v9 = vld [vmem:[#allocation63_spill] sm:$0xff]  ;;  %v8971_v38 = vld [vmem:[#allocation81_spill] sm:$0xff] }
0x1964   :  { %v3415_v2 = vmul.f32 1.442695, %v3414_v27  ;;  %v5354_v27 = vld [vmem:[#allocation8 + $0x154] ss:$24 sps:$4 sm:$0xff]  }
0x1966   :  { %5099 = vpow2.f32 %v3415_v2 }
0x1973   :  { %v5100_v54 = vpop.eup %5099 }
0x1974   :  { %3417 = vadd.xlane.f32.xlu0 %v5100_v54 }
0x19fd   :  { %v3418_v45 = vpop.xlane.xlu0 %3417 }
0x19fe   :  { %5101 = vrcp.f32 %v3418_v45 }
0x1a0b   :  { %v5102_v19 = vpop.eup %5101 }
0x1a0c   :  { %v3420_v59 = vmul.f32 %v5102_v19, %v5100_v54 }
0x1a0e   :  { %v3421_v14 = vsub.f32 %v3420_v59, %v5971_v33  ;;  %v8960_v59 = vld [vmem:[#allocation24_spill] sm:$0xff] }
0x1a10   :  { %v3422_v46 = vpack.c.bf16 %v3421_v14, %v3421_v14 }
0x1a12   :  { %3456 = vmatmul.mubr.bf16.vlgmr.msra.gmra.mxu0 %v3422_v46  ;;  %3497 = vmatmul.mubr.bf16.vlgmr.msra.gmra.mxu1 %v3422_v46 }
0x1a13   :  { %3506 = vmatpush1.bf16.msra.mxu0 %v7298_v30  ;;  %3537 = vmatprep.mubr.bf16.mxu0 %v8419_v37  ;;  %v8948_v30 = vld [vmem:[#allocation75_spill] sm:$0xff] }
0x1a14   :  { %3507 = vmatprep.subr.bf16.mxu0 %v7302_v5  ;;  %4795 = vmatpush3.bf16.msra.mxu1 %v7482_v50  ;;  %v8949_v5 = vld [vmem:[#allocation74_spill] sm:$0xff] }
0x1a15   :  { %4796 = vmatprep.subr.bf16.mxu1 %v7485_v12 }
0x1a17   :  { %3508 = vmatpush1.bf16.msra.mxu0 %v7307_v52  ;;  %v8950_v52 = vld [vmem:[#allocation42_spill] sm:$0xff] }
0x1a18   :  { %3509 = vmatprep.subr.bf16.mxu0 %v7310_v56  ;;  %4797 = vmatpush3.bf16.msra.mxu1 %v7490_v25  ;;  %v8951_v56 = vld [vmem:[#allocation43_spill] sm:$0xff] }
0x1a19   :  { %4798 = vmatprep.subr.bf16.mxu1 %v7493_v1 }
0x1a1b   :  { %3510 = vmatpush1.bf16.msra.mxu0 %v7315_v3  ;;  %v8952_v3 = vld [vmem:[#allocation76_spill] sm:$0xff] }
0x1a1c   :  { %3511 = vmatprep.subr.bf16.mxu0 %v7318_v17  ;;  %4799 = vmatpush3.bf16.msra.mxu1 %v7498_v60  ;;  %v8953_v17 = vld [vmem:[#allocation51_spill] sm:$0xff] }
0x1a1d   :  { %4800 = vmatprep.subr.bf16.mxu1 %v7501_v10 }
0x1a1f   :  { %3512 = vmatpush1.bf16.msra.mxu0 %v7323_v53  ;;  %v8954_v53 = vld [vmem:[#allocation44_spill] sm:$0xff] }
0x1a20   :  { %3513 = vmatprep.subr.bf16.mxu0 %v7326_v7  ;;  %4801 = vmatpush3.bf16.msra.mxu1 %v7506_v58  ;;  %v8955_v7 = vld [vmem:[#allocation77_spill] sm:$0xff] }
0x1a21   :  { %4802 = vmatprep.subr.bf16.mxu1 %v7509_v0 }
0x1a23   :  { %3514 = vmatpush1.bf16.msra.mxu0 %v7331_v47  ;;  %v8956_v47 = vld [vmem:[#allocation61_spill] sm:$0xff] }
0x1a24   :  { %3515 = vmatprep.subr.bf16.mxu0 %v7334_v6  ;;  %4803 = vmatpush3.bf16.msra.mxu1 %v7514_v55  ;;  %v8957_v6 = vld [vmem:[#allocation45_spill] sm:$0xff] }
0x1a25   :  { %4804 = vmatprep.subr.bf16.mxu1 %v7517_v63 }
0x1a27   :  { %3516 = vmatpush1.bf16.msra.mxu0 %v7339_v48  ;;  %v8958_v48 = vld [vmem:[#allocation23_spill] sm:$0xff] }
0x1a28   :  { %3517 = vmatprep.subr.bf16.mxu0 %v7342_v43  ;;  %4805 = vmatpush3.bf16.msra.mxu1 %v7522_v11  ;;  %v8959_v43 = vld [vmem:[#allocation78_spill] sm:$0xff] }
0x1a29   :  { %4806 = vmatprep.subr.bf16.mxu1 %v8948_v30 }
0x1a2b   :  { %3518 = vmatpush1.bf16.msra.mxu0 %v8949_v5 }
0x1a2c   :  { %3519 = vmatprep.subr.bf16.mxu0 %v8950_v52  ;;  %4807 = vmatpush3.bf16.msra.mxu1 %v8951_v56 }
0x1a2d   :  { %4808 = vmatprep.subr.bf16.mxu1 %v8952_v3 }
0x1a2f   :  { %3520 = vmatpush1.bf16.msra.mxu0 %v8953_v17 }
0x1a30   :  { %4816 = vmatprep.subr.bf16.mxu0 %v8954_v53  ;;  %4809 = vmatpush3.bf16.msra.mxu1 %v8955_v7 }
0x1a31   :  { %4838 = vmatprep.subr.bf16.mxu1 %v8956_v47 }
0x1a32   :  { %3538 = vmatmul.mubr.bf16.vlgmr.msra.gmra.mxu0 %v3422_v46 }
0x1a33   :  { %4817 = vmatpush3.bf16.msra.mxu0 %v8957_v6 }
0x1a34   :  { %4818 = vmatprep.subr.bf16.mxu0 %v8958_v48 }
0x1a37   :  { %4819 = vmatpush3.bf16.msra.mxu0 %v8959_v43 }
0x1a38   :  { %4820 = vmatprep.subr.bf16.mxu0 %v8960_v59 }
0x1a3b   :  { %4821 = vmatpush3.bf16.msra.mxu0 %v8961_v40 }
0x1a3c   :  { %4822 = vmatprep.subr.bf16.mxu0 %v8962_v9 }
0x1a3f   :  { %4823 = vmatpush3.bf16.msra.mxu0 %v8963_v61 }
0x1a40   :  { %4824 = vmatprep.subr.bf16.mxu0 %v8964_v42 }
0x1a43   :  { %4825 = vmatpush3.bf16.msra.mxu0 %v8965_v51 }
0x1a44   :  { %4826 = vmatprep.subr.bf16.mxu0 %v8966_v18 }
0x1a47   :  { %4827 = vmatpush3.bf16.msra.mxu0 %v8967_v28 }
0x1a48   :  { %4828 = vmatprep.subr.bf16.mxu0 %v8968_v16 }
0x1a4b   :  { %4829 = vmatpush3.bf16.msra.mxu0 %v8969_v39 }
0x1a4c   :  { %4830 = vmatprep.subr.bf16.mxu0 %v8970_v57 }
0x1a4f   :  { %4831 = vmatpush3.bf16.msra.mxu0 %v8971_v38 }
0x1a50   :  { %3713 = vmatprep.subr.bf16.mxu0 %v5354_v27 }
0x1ad2   :  { %v3457_v2 = vpop.f32.mrf.mxu0  ;;  %v3498_v54 = vpop.f32.mrf.mxu1 }
0x1ad3   :  { %vm3546_vm1 = vcmp.ge.f32.partialorder %v3457_v2, 0.0  ;;  %vm3548_vm2 = vcmp.ge.f32.partialorder %v3498_v54, 0.0 }
0x1ad4   :  { %v3552_v45 = vsel %vm3546_vm1, 0.0157, %v8494_v41  ;;  %v3554_v19 = vsel %vm3548_vm2, 0.0157, %v8494_v41  ;;  %v3459_v14 = vpop.f32.mrf.mxu0  ;;  %v3500_v46 = vpop.f32.mrf.mxu1 }
0x1ad5   :  { %v3558_v5 = vadd.f32 %v3552_v45, %v7605_v26  ;;  %v3560_v52 = vadd.f32 %v3554_v19, %v7608_v32  ;;  %vm3547_vm3 = vcmp.ge.f32.partialorder %v3459_v14, 0.0  ;;  %vm3549_vm4 = vcmp.ge.f32.partialorder %v3500_v46, 0.0  ;;  %v5356_v46 = vld [vmem:[#allocation8 + $0x124] ss:$24 sps:$4 sm:$0xff]  }
0x1ad6   :  { %v3553_v17 = vsel %vm3547_vm3, 0.0157, %v8494_v41  ;;  %v3555_v27 = vsel %vm3549_vm4, 0.0157, %v8494_v41  ;;  %v3461_v38 = vpop.f32.mrf.mxu0  ;;  %v3502_v57 = vpop.f32.mrf.mxu1 }
0x1ad7   :  { %v3564_v2 = vmax.f32 %v3558_v5, %v6059_v13  ;;  %v3566_v54 = vmax.f32 %v3560_v52, %v6067_v22  ;;  %v3559_v39 = vadd.f32 %v3553_v17, %v7611_v34  ;;  %v3561_v16 = vadd.f32 %v3555_v27, %v7614_v44  ;;  %v5357_v5 = vld [vmem:[#allocation8 + $0x120] ss:$24 sps:$4 sm:$0xff]   ;;  %v5358_v52 = vld [vmem:[#allocation8 + $0xf4] ss:$24 sps:$4 sm:$0xff]   ;;  %v5359_v17 = vld [vmem:[#allocation8 + $0xf0] ss:$24 sps:$4 sm:$0xff]  }
0x1ad8   :  { %v3462_v28 = vpop.f32.mrf.mxu0  ;;  %v3503_v26 = vpop.f32.mrf.mxu1  ;;  %v5360_v27 = vld [vmem:[#allocation8 + $0xc4] ss:$24 sps:$4 sm:$0xff]  }
0x1ad9   :  { %v3565_v32 = vmax.f32 %v3559_v39, %v6061_v15  ;;  %v3567_v45 = vmax.f32 %v3561_v16, %v6071_v24  ;;  %v7788_v19 = vmin.f32 %v3564_v2, %v6065_v21  ;;  %v7791_v38 = vmin.f32 %v3566_v54, %v6077_v35  ;;  %v5355_v39 = vld [vmem:[#allocation8 + $0x150] ss:$24 sps:$4 sm:$0xff]   ;;  %v8972_v2 = vld [vmem:[#allocation56_spill] sm:$0xff] }
0x1ada   :  { %v5361_v54 = vld [vmem:[#allocation8 + $0xc0] ss:$24 sps:$4 sm:$0xff]   ;;  %v8973_v26 = vld [vmem:[#allocation82_spill] sm:$0xff] }
0x1adb   :  { %v7794_v57 = vmin.f32 %v3565_v32, %v6069_v23  ;;  %v7797_v14 = vmin.f32 %v3567_v45, %v6079_v49  ;;  %v3576_v28 = vpack.c.bf16 %v7788_v19, %v7788_v19  ;;  %v3578_v16 = vpack.c.bf16 %v7791_v38, %v7791_v38  ;;  %v5362_v32 = vld [vmem:[#allocation8 + $0x94] ss:$24 sps:$4 sm:$0xff]  }
0x1adc   :  { %v8974_v45 = vld [vmem:[#allocation34_spill] sm:$0xff] }
0x1add   :  { %v3577_v34 = vpack.c.bf16 %v7794_v57, %v7794_v57  ;;  %v3579_v44 = vpack.c.bf16 %v7797_v14, %v7797_v14 }
0x1adf   :  { %3614 = vmatprep.mubr.bf16.mxu1 %v3577_v34  ;;  %3654 = vmatprep.mubr.bf16.mxu0 %v3579_v44  ;;  %v5363_v34 = vld [vmem:[#allocation8 + $0x90] ss:$24 sps:$4 sm:$0xff]  }
0x1ae0   :  { %3615 = vmatmul.mubr.bf16.vlgmr.msra.gmra.mxu1 %v3576_v28  ;;  %3655 = vmatmul.mubr.bf16.vlgmr.msra.gmra.mxu0 %v3578_v16  ;;  %v8975_v28 = vld [vmem:[#allocation49_spill] sm:$0xff]  ;;  %v5364_v16 = vld [vmem:[#allocation8 + $0x64] ss:$24 sps:$4 sm:$0xff]  }
0x1ae1   :  { %4839 = vmatpush3.bf16.msra.mxu1 %v7624_v31  ;;  %3714 = vmatpush1.bf16.msra.mxu0 %v5355_v39 }
0x1ae2   :  { %4840 = vmatprep.subr.bf16.mxu1 %v7628_v20  ;;  %3715 = vmatprep.subr.bf16.mxu0 %v5356_v46 }
0x1ae3   :  { %3745 = vmatprep.mubr.bf16.mxu0 %v8419_v37 }
0x1ae5   :  { %4841 = vmatpush3.bf16.msra.mxu1 %v7633_v8  ;;  %3716 = vmatpush1.bf16.msra.mxu0 %v5357_v5  ;;  %v8976_v5 = vld [vmem:[#allocation36_spill] sm:$0xff] }
0x1ae6   :  { %4842 = vmatprep.subr.bf16.mxu1 %v7637_v4  ;;  %3717 = vmatprep.subr.bf16.mxu0 %v5358_v52 }
0x1ae9   :  { %4843 = vmatpush3.bf16.msra.mxu1 %v7641_v29  ;;  %3718 = vmatpush1.bf16.msra.mxu0 %v5359_v17  ;;  %v8977_v17 = vld [vmem:[#allocation58_spill] sm:$0xff] }
0x1aea   :  { %4844 = vmatprep.subr.bf16.mxu1 %v7645_v36  ;;  %3719 = vmatprep.subr.bf16.mxu0 %v5360_v27  ;;  %v5365_v27 = vld [vmem:[#allocation8 + $0x60] ss:$24 sps:$4 sm:$0xff]   ;;  %v8981_v36 = vld [vmem:[#allocation18_spill] sm:$0xff] }
0x1aed   :  { %4845 = vmatpush3.bf16.msra.mxu1 %v8972_v2  ;;  %3720 = vmatpush1.bf16.msra.mxu0 %v5361_v54 }
0x1aee   :  { %4846 = vmatprep.subr.bf16.mxu1 %v8973_v26  ;;  %3721 = vmatprep.subr.bf16.mxu0 %v5362_v32 }
0x1af1   :  { %4847 = vmatpush3.bf16.msra.mxu1 %v8974_v45  ;;  %3722 = vmatpush1.bf16.msra.mxu0 %v5363_v34  ;;  %v8978_v34 = vld [vmem:[#allocation57_spill] sm:$0xff] }
0x1af2   :  { %v3539_v44 = vpop.f32.mrf.mxu0  ;;  %4848 = vmatprep.subr.bf16.mxu1 %v8975_v28  ;;  %3723 = vmatprep.subr.bf16.mxu0 %v5364_v16  ;;  %v5366_v45 = vld [vmem:[#allocation8 + $0x34] ss:$24 sps:$4 sm:$0xff]  }
0x1af3   :  { %vm3550_vm5 = vcmp.ge.f32.partialorder %v3539_v44, 0.0  ;;  %v8979_v28 = vld [vmem:[#allocation30_spill] sm:$0xff]  ;;  %v8980_v44 = vld [vmem:[#allocation27_spill] sm:$0xff] }
0x1af4   :  { %v3556_v39 = vsel %vm3550_vm5, 0.0157, %v8494_v41  ;;  %v3541_v46 = vpop.f32.mrf.mxu0 }
0x1af5   :  { %v3562_v52 = vadd.f32 %v3556_v39, %v8976_v5  ;;  %vm3551_vm6 = vcmp.ge.f32.partialorder %v3541_v46, 0.0  ;;  %4849 = vmatpush3.bf16.msra.mxu1 %v8977_v17  ;;  %3724 = vmatpush1.bf16.msra.mxu0 %v5365_v27  ;;  %v8982_v39 = vld [vmem:[#allocation50_spill] sm:$0xff]  ;;  %v8983_v5 = vld [vmem:[#allocation19_spill] sm:$0xff]  ;;  %v8985_v17 = vld [vmem:[#allocation53_spill] sm:$0xff] }
0x1af6   :  { %v3557_v54 = vsel %vm3551_vm6, 0.0157, %v8494_v41  ;;  %v3543_v32 = vpop.f32.mrf.mxu0  ;;  %4850 = vmatprep.subr.bf16.mxu1 %v8978_v34  ;;  %3725 = vmatprep.subr.bf16.mxu0 %v5366_v45  ;;  %v5367_v46 = vld [vmem:[#allocation8 + $0x30] ss:$24 sps:$4 sm:$0xff]   ;;  %v8986_v34 = vld [vmem:[#allocation20_spill] sm:$0xff] }
0x1af7   :  { %v3568_v16 = vmax.f32 %v3562_v52, %v8979_v28  ;;  %v3563_v26 = vadd.f32 %v3557_v54, %v8980_v44  ;;  %v5368_v32 = vld [vmem:[#allocation8 + $0x4] ss:$24 sps:$4 sm:$0xff]  }
0x1af8   :  { %v3544_v2 = vpop.f32.mrf.mxu0  ;;  %v8988_v52 = vld [vmem:[#allocation28_spill] sm:$0xff]  ;;  %v5370_v44 = vld [vmem:[#allocation8 + $0x15c] ss:$24 sps:$4 sm:$0xff]  }
0x1af9   :  { %v3569_v29 = vmax.f32 %v3563_v26, %v8981_v36  ;;  %4851 = vmatpush3.bf16.msra.mxu1 %v8982_v39  ;;  %3726 = vmatpush1.bf16.msra.mxu0 %v5367_v46  ;;  %v7828_v27 = vmin.f32 %v3568_v16, %v8983_v5  ;;  %v5369_v26 = vld [vmem:[#allocation8] ss:$24 sps:$4 sm:$0xff]   ;;  %v5371_v16 = vld [vmem:[#allocation8 + $0x164] ss:$24 sps:$4 sm:$0xff]  }
0x1afa   :  { %4852 = vmatprep.subr.bf16.mxu1 %v8985_v17  ;;  %3727 = vmatprep.subr.bf16.mxu0 %v5368_v32  ;;  %v5372_v46 = vld [vmem:[#allocation8 + $0x158] ss:$24 sps:$4 sm:$0xff]   ;;  %v5374_v32 = vld [vmem:[#allocation8 + $0x128] ss:$24 sps:$4 sm:$0xff]  }
0x1afb   :  { %8984 = vst [vmem:[#allocation29_spill] sm:$0xff] %v7828_v27  ;;  %v7832_v45 = vmin.f32 %v3569_v29, %v8986_v34  ;;  %v3580_v54 = vpack.c.bf16 %v7828_v27, %v7828_v27  ;;  %v5373_v29 = vld [vmem:[#allocation8 + $0x12c] ss:$24 sps:$4 sm:$0xff]   ;;  %v5378_v17 = vld [vmem:[#allocation8 + $0xc8] ss:$24 sps:$4 sm:$0xff]  }
0x1afc   :  { %v5377_v34 = vld [vmem:[#allocation8 + $0xcc] ss:$24 sps:$4 sm:$0xff]  }
0x1afd   :  { %8987 = vst [vmem:[#allocation37_spill] sm:$0xff] %v7832_v45  ;;  %4853 = vmatpush3.bf16.msra.mxu1 %v8988_v52  ;;  %v3581_v2 = vpack.c.bf16 %v7832_v45, %v7832_v45  ;;  %3728 = vmatpush1.bf16.msra.mxu0 %v5369_v26  ;;  %v5375_v52 = vld [vmem:[#allocation8 + $0xfc] ss:$24 sps:$4 sm:$0xff]   ;;  %v5376_v26 = vld [vmem:[#allocation8 + $0xf8] ss:$24 sps:$4 sm:$0xff]  }
0x1afe   :  { %3754 = vmatprep.subr.bf16.mxu1 %v5370_v44  ;;  %3795 = vmatprep.subr.bf16.mxu0 %v5371_v16  ;;  %v5379_v44 = vld [vmem:[#allocation8 + $0x9c] ss:$24 sps:$4 sm:$0xff]   ;;  %v5382_v16 = vld [vmem:[#allocation8 + $0x68] ss:$24 sps:$4 sm:$0xff]  }
0x1aff   :  { %3694 = vmatprep.mubr.bf16.mxu1 %v3581_v2  ;;  %v5380_v2 = vld [vmem:[#allocation8 + $0x98] ss:$24 sps:$4 sm:$0xff]  }
0x1b00   :  { %3695 = vmatmul.mubr.bf16.vlgmr.msra.gmra.mxu1 %v3580_v54  ;;  %v5381_v54 = vld [vmem:[#allocation8 + $0x6c] ss:$24 sps:$4 sm:$0xff]  }
0x1b01   :  { %3755 = vmatpush1.bf16.msra.mxu1 %v5372_v46  ;;  %3786 = vmatprep.mubr.bf16.mxu1 %v8419_v37  ;;  %v5383_v46 = vld [vmem:[#allocation8 + $0x3c] ss:$24 sps:$4 sm:$0xff]  }
0x1b02   :  { %3756 = vmatprep.subr.bf16.mxu1 %v5373_v29  ;;  %v5384_v29 = vld [vmem:[#allocation8 + $0x38] ss:$24 sps:$4 sm:$0xff]  }
0x1b05   :  { %3757 = vmatpush1.bf16.msra.mxu1 %v5374_v32  ;;  %v5385_v32 = vld [vmem:[#allocation8 + $0xc] ss:$24 sps:$4 sm:$0xff]  }
0x1b06   :  { %3758 = vmatprep.subr.bf16.mxu1 %v5375_v52  ;;  %v5386_v52 = vld [vmem:[#allocation8 + $0x8] ss:$24 sps:$4 sm:$0xff]  }
0x1b09   :  { %3759 = vmatpush1.bf16.msra.mxu1 %v5376_v26  ;;  %v8989_v26 = vld [vmem:[#allocation22_spill] sm:$0xff] }
0x1b0a   :  { %3760 = vmatprep.subr.bf16.mxu1 %v5377_v34 }
0x1b0d   :  { %3761 = vmatpush1.bf16.msra.mxu1 %v5378_v17 }
0x1b0e   :  { %3762 = vmatprep.subr.bf16.mxu1 %v5379_v44 }
0x1b11   :  { %3763 = vmatpush1.bf16.msra.mxu1 %v5380_v2 }
0x1b12   :  { %3764 = vmatprep.subr.bf16.mxu1 %v5381_v54 }
0x1b15   :  { %3765 = vmatpush1.bf16.msra.mxu1 %v5382_v16 }
0x1b16   :  { %3766 = vmatprep.subr.bf16.mxu1 %v5383_v46 }
0x1b19   :  { %3767 = vmatpush1.bf16.msra.mxu1 %v5384_v29 }
0x1b1a   :  { %3768 = vmatprep.subr.bf16.mxu1 %v5385_v32 }
0x1b1d   :  { %3769 = vmatpush1.bf16.msra.mxu1 %v5386_v52 }
0x1b1e   :  { %4860 = vmatprep.subr.bf16.mxu1 %v8989_v26  ;;  %v8990_v26 = vld [vmem:[#allocation38_spill] sm:$0xff] }
0x1ba0   :  { %v4810_v34 = vpop.f32.mrf.mxu1  ;;  %v4832_v17 = vpop.f32.mrf.mxu0 }
0x1ba2   :  { %v4811_v5 = vpop.f32.mrf.mxu1  ;;  %v4833_v44 = vpop.f32.mrf.mxu0 }
0x1ba3   :  { %v4812_v45 = vadd.f32 %v4811_v5, %v4810_v34  ;;  %v4834_v28 = vadd.f32 %v4833_v44, %v4832_v17 }
0x1ba4   :  { %v4813_v39 = vpop.f32.mrf.mxu1  ;;  %v4835_v2 = vpop.f32.mrf.mxu0 }
0x1ba5   :  { %v3617_v16 = vadd.f32 %v7723_v62, %v4812_v45 }
0x1ba6   :  { %v4814_v36 = vpop.f32.mrf.mxu1  ;;  %v4836_v54 = vpop.f32.mrf.mxu0 }
0x1ba7   :  { %v3657_v27 = vadd.f32 %v4834_v28, %v3617_v16  ;;  %v5387_v54 = vld [vmem:[#allocation8 + $0x160] ss:$24 sps:$4 sm:$0xff]   ;;  %v5388_v16 = vld [vmem:[#allocation8 + $0x134] ss:$24 sps:$4 sm:$0xff]  }
0x1bc0   :  { %v4854_v46 = vpop.f32.mrf.mxu1 }
0x1bc2   :  { %v4855_v29 = vpop.f32.mrf.mxu1 }
0x1bc3   :  { %v4856_v32 = vadd.f32 %v4855_v29, %v4854_v46  ;;  %v5389_v46 = vld [vmem:[#allocation8 + $0x130] ss:$24 sps:$4 sm:$0xff]   ;;  %v5390_v29 = vld [vmem:[#allocation8 + $0x104] ss:$24 sps:$4 sm:$0xff]  }
0x1bc4   :  { %v4857_v4 = vpop.f32.mrf.mxu1 }
0x1bc5   :  { %v3697_v52 = vadd.f32 %v4856_v32, %v3657_v27  ;;  %v5392_v32 = vld [vmem:[#allocation8 + $0xd4] ss:$24 sps:$4 sm:$0xff]  }
0x1bc6   :  { %v4858_v8 = vpop.f32.mrf.mxu1 }
0x1bc7   :  { %3702 = vmax.xlane.f32.xlu1 %v3697_v52 }
0x1bcb   :  { %668 = vmax.xlane.f32.xlu1 %v8990_v26 }
0x1c50   :  { %v3703_v20 = vpop.xlane.xlu1 %3702 }
0x1c51   :  { %v3704_v31 = vsub.f32 %v3697_v52, %v3703_v20 }
0x1c53   :  { %v3705_v39 = vmul.f32 1.442695, %v3704_v31 }
0x1c54   :  { %v669_v2 = vpop.xlane.xlu1 %668 }
0x1c55   :  { %5103 = vpow2.f32 %v3705_v39  ;;  %v670_v36 = vsub.f32 %v8990_v26, %v669_v2 }
0x1c57   :  { %v671_v5 = vmul.f32 1.442695, %v670_v36 }
0x1c59   :  { %5105 = vpow2.f32 %v671_v5 }
0x1c62   :  { %v5104_v45 = vpop.eup %5103 }
0x1c63   :  { %3707 = vadd.xlane.f32.xlu0 %v5104_v45 }
0x1c66   :  { %v5106_v34 = vpop.eup %5105 }
0x1c67   :  { %673 = vadd.xlane.f32.xlu0 %v5106_v34 }
0x1cec   :  { %v3708_v28 = vpop.xlane.xlu0 %3707 }
0x1ced   :  { %5107 = vrcp.f32 %v3708_v28 }
0x1cf0   :  { %v674_v4 = vpop.xlane.xlu0 %673 }
0x1cf1   :  { %5109 = vrcp.f32 %v674_v4  ;;  %v9003_v4 = vld [vmem:[#allocation82_spill] sm:$0xff] }
0x1cfa   :  { %v5108_v8 = vpop.eup %5107 }
0x1cfb   :  { %v3710_v27 = vmul.f32 %v5108_v8, %v5104_v45  ;;  %v9004_v8 = vld [vmem:[#allocation34_spill] sm:$0xff] }
0x1cfd   :  { %v3711_v17 = vsub.f32 %v3710_v27, %v5971_v33  ;;  %v5391_v33 = vld [vmem:[#allocation8 + $0x100] ss:$24 sps:$4 sm:$0xff]  }
0x1cfe   :  { %v5110_v20 = vpop.eup %5109 }
0x1cff   :  { %v3712_v31 = vpack.c.bf16 %v3711_v17, %v3711_v17  ;;  %v676_v44 = vmul.f32 %v5110_v20, %v5106_v34  ;;  %v9005_v17 = vld [vmem:[#allocation49_spill] sm:$0xff] }
0x1d01   :  { %3746 = vmatmul.mubr.bf16.vlgmr.msra.gmra.mxu0 %v3712_v31  ;;  %3787 = vmatmul.mubr.bf16.vlgmr.msra.gmra.mxu1 %v3712_v31  ;;  %677 = vst [vmem:[#allocation11] sm:$0xff] %v676_v44  ;;  %v9006_v44 = vld [vmem:[#allocation29_spill] sm:$0xff] }
0x1d02   :  { %3796 = vmatpush1.bf16.msra.mxu0 %v5387_v54  ;;  %3827 = vmatprep.mubr.bf16.mxu0 %v8419_v37  ;;  %v5393_v37 = vld [vmem:[#allocation8 + $0xd0] ss:$24 sps:$4 sm:$0xff]  }
0x1d03   :  { %3797 = vmatprep.subr.bf16.mxu0 %v5388_v16  ;;  %4861 = vmatpush3.bf16.msra.mxu1 %v7482_v50  ;;  %v5394_v50 = vld [vmem:[#allocation8 + $0xa4] ss:$24 sps:$4 sm:$0xff]   ;;  %v9007_v16 = vld [vmem:[#allocation58_spill] sm:$0xff] }
0x1d04   :  { %4862 = vmatprep.subr.bf16.mxu1 %v7485_v12  ;;  %v5395_v12 = vld [vmem:[#allocation8 + $0xa0] ss:$24 sps:$4 sm:$0xff]  }
0x1d06   :  { %3798 = vmatpush1.bf16.msra.mxu0 %v5389_v46 }
0x1d07   :  { %3799 = vmatprep.subr.bf16.mxu0 %v5390_v29  ;;  %4863 = vmatpush3.bf16.msra.mxu1 %v7490_v25  ;;  %v5396_v25 = vld [vmem:[#allocation8 + $0x74] ss:$24 sps:$4 sm:$0xff]  }
0x1d08   :  { %4864 = vmatprep.subr.bf16.mxu1 %v7493_v1  ;;  %v5397_v1 = vld [vmem:[#allocation8 + $0x70] ss:$24 sps:$4 sm:$0xff]  }
0x1d0a   :  { %3800 = vmatpush1.bf16.msra.mxu0 %v5391_v33  ;;  %v9008_v33 = vld [vmem:[#allocation57_spill] sm:$0xff] }
0x1d0b   :  { %3801 = vmatprep.subr.bf16.mxu0 %v5392_v32  ;;  %4865 = vmatpush3.bf16.msra.mxu1 %v7498_v60  ;;  %v5398_v60 = vld [vmem:[#allocation8 + $0x44] ss:$24 sps:$4 sm:$0xff]   ;;  %v9009_v32 = vld [vmem:[#allocation30_spill] sm:$0xff] }
0x1d0c   :  { %4866 = vmatprep.subr.bf16.mxu1 %v7501_v10  ;;  %v5399_v10 = vld [vmem:[#allocation8 + $0x40] ss:$24 sps:$4 sm:$0xff]  }
0x1d0e   :  { %3802 = vmatpush1.bf16.msra.mxu0 %v5393_v37 }
0x1d0f   :  { %3803 = vmatprep.subr.bf16.mxu0 %v5394_v50  ;;  %4867 = vmatpush3.bf16.msra.mxu1 %v7506_v58  ;;  %v5400_v58 = vld [vmem:[#allocation8 + $0x14] ss:$24 sps:$4 sm:$0xff]  }
0x1d10   :  { %4868 = vmatprep.subr.bf16.mxu1 %v7509_v0  ;;  %v5401_v0 = vld [vmem:[#allocation8 + $0x10] ss:$24 sps:$4 sm:$0xff]  }
0x1d11   :  { %v9010_v50 = vld [vmem:[#allocation37_spill] sm:$0xff] }
0x1d12   :  { %3804 = vmatpush1.bf16.msra.mxu0 %v5395_v12 }
0x1d13   :  { %3805 = vmatprep.subr.bf16.mxu0 %v5396_v25  ;;  %4869 = vmatpush3.bf16.msra.mxu1 %v7514_v55  ;;  %v8991_v55 = vld [vmem:[#allocation55_spill] sm:$0xff] }
0x1d14   :  { %4870 = vmatprep.subr.bf16.mxu1 %v7517_v63  ;;  %v8992_v63 = vld [vmem:[#allocation33_spill] sm:$0xff] }
0x1d16   :  { %3806 = vmatpush1.bf16.msra.mxu0 %v5397_v1  ;;  %v9011_v1 = vld [vmem:[#allocation18_spill] sm:$0xff] }
0x1d17   :  { %3807 = vmatprep.subr.bf16.mxu0 %v5398_v60  ;;  %4871 = vmatpush3.bf16.msra.mxu1 %v7522_v11  ;;  %v8993_v11 = vld [vmem:[#allocation80_spill] sm:$0xff] }
0x1d18   :  { %4872 = vmatprep.subr.bf16.mxu1 %v8948_v30  ;;  %v8994_v30 = vld [vmem:[#allocation65_spill] sm:$0xff] }
0x1d1a   :  { %3808 = vmatpush1.bf16.msra.mxu0 %v5399_v10  ;;  %v9012_v10 = vld [vmem:[#allocation50_spill] sm:$0xff] }
0x1d1b   :  { %3809 = vmatprep.subr.bf16.mxu0 %v5400_v58  ;;  %4873 = vmatpush3.bf16.msra.mxu1 %v8951_v56  ;;  %v8995_v56 = vld [vmem:[#allocation81_spill] sm:$0xff]  ;;  %v9013_v58 = vld [vmem:[#allocation19_spill] sm:$0xff] }
0x1d1c   :  { %4874 = vmatprep.subr.bf16.mxu1 %v8952_v3 }
0x1d1e   :  { %3810 = vmatpush1.bf16.msra.mxu0 %v5401_v0 }
0x1d1f   :  { %4882 = vmatprep.subr.bf16.mxu0 %v8954_v53  ;;  %4875 = vmatpush3.bf16.msra.mxu1 %v8955_v7 }
0x1d20   :  { %4904 = vmatprep.subr.bf16.mxu1 %v8956_v47 }
0x1d21   :  { %3828 = vmatmul.mubr.bf16.vlgmr.msra.gmra.mxu0 %v3712_v31 }
0x1d22   :  { %4883 = vmatpush3.bf16.msra.mxu0 %v8957_v6 }
0x1d23   :  { %4884 = vmatprep.subr.bf16.mxu0 %v8958_v48 }
0x1d26   :  { %4885 = vmatpush3.bf16.msra.mxu0 %v8959_v43 }
0x1d27   :  { %4886 = vmatprep.subr.bf16.mxu0 %v8960_v59 }
0x1d2a   :  { %4887 = vmatpush3.bf16.msra.mxu0 %v8961_v40 }
0x1d2b   :  { %4888 = vmatprep.subr.bf16.mxu0 %v8962_v9 }
0x1d2e   :  { %4889 = vmatpush3.bf16.msra.mxu0 %v8963_v61 }
0x1d2f   :  { %4890 = vmatprep.subr.bf16.mxu0 %v8964_v42 }
0x1d32   :  { %4891 = vmatpush3.bf16.msra.mxu0 %v8965_v51 }
0x1d33   :  { %4892 = vmatprep.subr.bf16.mxu0 %v8966_v18 }
0x1d36   :  { %4893 = vmatpush3.bf16.msra.mxu0 %v8991_v55  ;;  %v9014_v55 = vld [vmem:[#allocation53_spill] sm:$0xff] }
0x1d37   :  { %4894 = vmatprep.subr.bf16.mxu0 %v8992_v63  ;;  %v9015_v63 = vld [vmem:[#allocation20_spill] sm:$0xff] }
0x1d3a   :  { %4895 = vmatpush3.bf16.msra.mxu0 %v8993_v11 }
0x1d3b   :  { %4896 = vmatprep.subr.bf16.mxu0 %v8994_v30  ;;  %v9016_v30 = vld [vmem:[#allocation28_spill] sm:$0xff] }
0x1d3e   :  { %4897 = vmatpush3.bf16.msra.mxu0 %v8995_v56 }
0x1dc1   :  { %v3747_v3 = vpop.f32.mrf.mxu0  ;;  %v3788_v53 = vpop.f32.mrf.mxu1 }
0x1dc2   :  { %vm3836_vm7 = vcmp.ge.f32.partialorder %v3747_v3, 0.0  ;;  %vm3838_vm8 = vcmp.ge.f32.partialorder %v3788_v53, 0.0 }
0x1dc3   :  { %v3842_v7 = vsel %vm3836_vm7, 0.0157, %v8494_v41  ;;  %v3844_v47 = vsel %vm3838_vm8, 0.0157, %v8494_v41  ;;  %v3749_v6 = vpop.f32.mrf.mxu0  ;;  %v3790_v48 = vpop.f32.mrf.mxu1 }
0x1dc4   :  { %v3848_v43 = vadd.f32 %v3842_v7, %v7788_v19  ;;  %v3850_v59 = vadd.f32 %v3844_v47, %v7791_v38  ;;  %vm3837_vm9 = vcmp.ge.f32.partialorder %v3749_v6, 0.0  ;;  %vm3839_vm10 = vcmp.ge.f32.partialorder %v3790_v48, 0.0 }
0x1dc5   :  { %v3843_v40 = vsel %vm3837_vm9, 0.0157, %v8494_v41  ;;  %v3845_v9 = vsel %vm3839_vm10, 0.0157, %v8494_v41  ;;  %v3751_v61 = vpop.f32.mrf.mxu0  ;;  %v3792_v42 = vpop.f32.mrf.mxu1 }
0x1dc6   :  { %v3854_v51 = vmax.f32 %v3848_v43, %v6059_v13  ;;  %v3856_v18 = vmax.f32 %v3850_v59, %v6067_v22  ;;  %v3849_v52 = vadd.f32 %v3843_v40, %v7794_v57  ;;  %v3851_v26 = vadd.f32 %v3845_v9, %v7797_v14  ;;  %v8996_v14 = vld [vmem:[#allocation25_spill] sm:$0xff] }
0x1dc7   :  { %v3752_v39 = vpop.f32.mrf.mxu0  ;;  %v3793_v19 = vpop.f32.mrf.mxu1 }
0x1dc8   :  { %v3855_v38 = vmax.f32 %v3849_v52, %v6061_v15  ;;  %v3857_v2 = vmax.f32 %v3851_v26, %v6071_v24  ;;  %v3860_v36 = vmin.f32 %v3854_v51, %v6065_v21  ;;  %v3862_v5 = vmin.f32 %v3856_v18, %v6077_v35  ;;  %v8997_v15 = vld [vmem:[#allocation59_spill] sm:$0xff]  ;;  %v8999_v21 = vld [vmem:[#allocation54_spill] sm:$0xff] }
0x1dc9   :  { %v8998_v24 = vld [vmem:[#allocation47_spill] sm:$0xff]  ;;  %v9000_v35 = vld [vmem:[#allocation26_spill] sm:$0xff] }
0x1dca   :  { %v3861_v45 = vmin.f32 %v3855_v38, %v6069_v23  ;;  %v3863_v13 = vmin.f32 %v3857_v2, %v6079_v49  ;;  %v3866_v28 = vpack.c.bf16 %v3860_v36, %v3860_v36  ;;  %v3868_v57 = vpack.c.bf16 %v3862_v5, %v3862_v5  ;;  %v9001_v23 = vld [vmem:[#allocation52_spill] sm:$0xff] }
0x1dcb   :  { %v9002_v49 = vld [vmem:[#allocation56_spill] sm:$0xff] }
0x1dcc   :  { %v3867_v34 = vpack.c.bf16 %v3861_v45, %v3861_v45  ;;  %v3869_v22 = vpack.c.bf16 %v3863_v13, %v3863_v13 }
0x1dce   :  { %3904 = vmatprep.mubr.bf16.mxu1 %v3867_v34  ;;  %3944 = vmatprep.mubr.bf16.mxu0 %v3869_v22 }
0x1dcf   :  { %3905 = vmatmul.mubr.bf16.vlgmr.msra.gmra.mxu1 %v3866_v28  ;;  %3945 = vmatmul.mubr.bf16.vlgmr.msra.gmra.mxu0 %v3868_v57 }
0x1dd0   :  { %4905 = vmatpush3.bf16.msra.mxu1 %v8996_v14 }
0x1dd1   :  { %4906 = vmatprep.subr.bf16.mxu1 %v8997_v15 }
0x1dd4   :  { %4907 = vmatpush3.bf16.msra.mxu1 %v8998_v24 }
0x1dd5   :  { %4908 = vmatprep.subr.bf16.mxu1 %v8999_v21 }
0x1dd8   :  { %4909 = vmatpush3.bf16.msra.mxu1 %v9000_v35 }
0x1dd9   :  { %4910 = vmatprep.subr.bf16.mxu1 %v9001_v23 }
0x1ddc   :  { %4911 = vmatpush3.bf16.msra.mxu1 %v9002_v49 }
0x1ddd   :  { %4912 = vmatprep.subr.bf16.mxu1 %v9003_v4 }
0x1de0   :  { %4913 = vmatpush3.bf16.msra.mxu1 %v9004_v8 }
0x1de1   :  { %v3829_v27 = vpop.f32.mrf.mxu0  ;;  %4914 = vmatprep.subr.bf16.mxu1 %v9005_v17 }
0x1de2   :  { %vm3840_vm11 = vcmp.ge.f32.partialorder %v3829_v27, 0.0 }
0x1de3   :  { %v3846_v20 = vsel %vm3840_vm11, 0.0157, %v8494_v41  ;;  %v3831_v31 = vpop.f32.mrf.mxu0 }
0x1de4   :  { %v3852_v54 = vadd.f32 %v3846_v20, %v9006_v44  ;;  %vm3841_vm12 = vcmp.ge.f32.partialorder %v3831_v31, 0.0  ;;  %4915 = vmatpush3.bf16.msra.mxu1 %v9007_v16 }
0x1de5   :  { %v3847_v46 = vsel %vm3841_vm12, 0.0157, %v8494_v41  ;;  %v3833_v29 = vpop.f32.mrf.mxu0  ;;  %4916 = vmatprep.subr.bf16.mxu1 %v9008_v33 }
0x1de6   :  { %v3858_v37 = vmax.f32 %v3852_v54, %v9009_v32  ;;  %v3853_v12 = vadd.f32 %v3847_v46, %v9010_v50 }
0x1de7   :  { %v3834_v25 = vpop.f32.mrf.mxu0 }
0x1de8   :  { %v3859_v60 = vmax.f32 %v3853_v12, %v9011_v1  ;;  %4917 = vmatpush3.bf16.msra.mxu1 %v9012_v10  ;;  %v3864_v0 = vmin.f32 %v3858_v37, %v9013_v58 }
0x1de9   :  { %4918 = vmatprep.subr.bf16.mxu1 %v9014_v55 }
0x1dea   :  { %v3865_v11 = vmin.f32 %v3859_v60, %v9015_v63  ;;  %v3870_v56 = vpack.c.bf16 %v3864_v0, %v3864_v0 }
0x1dec   :  { %4919 = vmatpush3.bf16.msra.mxu1 %v9016_v30  ;;  %v3871_v41 = vpack.c.bf16 %v3865_v11, %v3865_v11 }
0x1dee   :  { %3984 = vmatprep.mubr.bf16.mxu1 %v3871_v41 }
0x1def   :  { %3985 = vmatmul.mubr.bf16.vlgmr.msra.gmra.mxu1 %v3870_v56 }
0x1df0   :  { %5493 = shalt.err (!%p5490_p10)
}
0x1df1   :  { %4012 = dma.vmem_to_hbm [thread:$0]  %s4010_s30, 128, %s7931_s7, [#allocation12]  }
0x1df2   :  { %s5544_s11 = smov [#allocation10]  }
0x1df3   :  { %s3999_s12 = sshll.u32 %s5544_s11, 4  ;;  %s4000_s12 = int_to_ptr.vmem [resolvable:$true] %s3999_s12 }
0x1df4   :  { %s5502_s7 = scalar_lea.vmem %s4000_s12, 128  ;;  %p5507_p12 = scmp.lt.s32.totalorder %s4000_s12, %s4000_s12 }
0x1df5   :  { %p5503_p11 = scmp.ne.s32.totalorder %s4000_s12, %s5502_s7  ;;  %p5508_p13 = scmp.lt.s32.totalorder %s5502_s7, %s5502_s7 }
0x1df7   :  { %p5509_p0 = por %p5508_p13, %p5507_p12 }
0x1df9   :  { %p5510_p1 = pnand %p5509_p0, %p5503_p11 }
0x1e8f   :  { %v4876_v3 = vpop.f32.mrf.mxu1  ;;  %v4898_v53 = vpop.f32.mrf.mxu0 }
0x1e91   :  { %v4877_v7 = vpop.f32.mrf.mxu1  ;;  %v4899_v47 = vpop.f32.mrf.mxu0 }
0x1e92   :  { %v4878_v40 = vadd.f32 %v4877_v7, %v4876_v3  ;;  %v4900_v42 = vadd.f32 %v4899_v47, %v4898_v53 }
0x1e93   :  { %v4879_v6 = vpop.f32.mrf.mxu1  ;;  %v4901_v48 = vpop.f32.mrf.mxu0 }
0x1e94   :  { %v3907_v9 = vadd.f32 %v7723_v62, %v4878_v40 }
0x1e95   :  { %v4880_v43 = vpop.f32.mrf.mxu1  ;;  %v4902_v59 = vpop.f32.mrf.mxu0 }
0x1e96   :  { %v3947_v18 = vadd.f32 %v4900_v42, %v3907_v9 }
0x1eaf   :  { %v4920_v61 = vpop.f32.mrf.mxu1 }
0x1eb1   :  { %v4921_v51 = vpop.f32.mrf.mxu1 }
0x1eb2   :  { %v4922_v52 = vadd.f32 %v4921_v51, %v4920_v61 }
0x1eb3   :  { %v4923_v26 = vpop.f32.mrf.mxu1 }
0x1eb4   :  { %v3987_v39 = vadd.f32 %v4922_v52, %v3947_v18 }
0x1eb5   :  { %v4924_v19 = vpop.f32.mrf.mxu1 }
0x1eb6   :  { %3992 = vst [vmem:[#allocation10] sm:$0xff] %v3987_v39 }
0x1eb7   :  { %5513 = shalt.err (!%p5510_p1)
}
0x1eb8   :  { %4002 = dma.vmem_to_hbm [thread:$0]  %s4000_s12, 128, %s7930_s6, [#allocation4]  }
0x1eb9   :  { %5528 = dma.done.wait [#allocation4], 128  }
0x1eba   :  { %5529 = vsyncadd [#allocation4], 4294967168 }
0x1ebb   :  { %5530 = dma.done.wait [#allocation12], 128  }
0x1ebc   :  { %5531 = vsyncadd [#allocation12], 4294967168 }
0x1ebd   :  { %4019 = vsyncpa [#allocation3], 1 }
0x1ebe   :  { %4020 = vsyncpa [#allocation6], 1 }
0x1ebf   :  { %4021 = vsyncpa [#allocation9], 1 }
0x1ec0   :  { %4022 = vsyncpa [#allocation4], 1 }
0x1ec1   :  { %4023 = vsyncpa [#allocation12], 1 }

</bundles_post_ra>
